<compile_context>
chip_gen: v6e
topology: v6e:2x2x1
jax: 0.10.0
libtpu: 0.0.40
codegen_flags: <defaults>
</compile_context>

<pallas_src>
import functools
import math

import jax
import jax.numpy as jnp
from jax.experimental import pallas as pl
from jax.experimental.pallas import tpu as pltpu

_WDT = jnp.bfloat16   # MXU operand dtype for all weight matrices


# ----------------------------------------------------------------------------
# Fused kernel (one batch element per grid step; everything lives in VMEM)
# ----------------------------------------------------------------------------
def _mm(x, w_ref):
    # bf16 MXU operands, f32 accumulation.
    return jnp.dot(x.astype(w_ref.dtype), w_ref[...],
                   preferred_element_type=jnp.float32)


def _temporal_glu(x, p):
    """Causal (Kt,1) conv -> 2*Cout channels, GLU-gated with aligned residual.

    x: (T, N*Cin) f32.  p['Wc']: (Kt, N*Cin, 2*N*Cout) bf16, columns arranged
    [all p-channels | all q-channels] so the GLU split is lane-aligned.
    """
    wc = p["Wc"]
    kt = wc.shape[0]
    nc_out = wc.shape[2] // 2
    to = x.shape[0] - kt + 1
    acc = _mm(x[0:to], wc[0])
    for k in range(1, kt):                      # im2col via shifted VMEM slices
        acc = acc + _mm(x[k:k + to], wc[k])
    acc = acc + p["bc"][...]
    x_in = _mm(x[kt - 1:], p["Wa"]) + p["ba"][...]          # align residual
    gate = pl.reciprocal(1.0 + jnp.exp(-acc[:, nc_out:]), approx=True)  # sigmoid
    return (acc[:, :nc_out] + x_in) * gate


def _graph_conv_relu(x, p):
    """align -> (gso contraction fused with channel weight) + bias + residual -> ReLU."""
    x_in = _mm(x, p["Wa"]) + p["ba"][...]
    y = _mm(x_in, p["Wg"]) + p["bg"][...] + x_in
    return jnp.maximum(y, 0.0)


def _layer_norm(x, p):
    # nn.LayerNorm([n_vertex, C]) == per-row normalization over all N*C lanes.
    mu = jnp.mean(x, axis=-1, keepdims=True)
    xc = x - mu
    var = jnp.mean(xc * xc, axis=-1, keepdims=True)
    return xc * jax.lax.rsqrt(var + 1e-5) * p["g"][...] + p["b"][...]


def _linear(x, w_ref, b_ref, act=None):
    y = _mm(x, w_ref) + b_ref[...]
    if act == "relu":
        y = jnp.maximum(y, 0.0)
    return y


def _stgcn_kernel(treedef, x_ref, *refs):
    o_ref = refs[-1]
    p = jax.tree_util.tree_unflatten(treedef, list(refs[:-1]))

    x = x_ref[0]                                   # (T, N*C0) f32, lane-dense
    for blk in p["st"]:
        x = _temporal_glu(x, blk["t1"])
        x = _graph_conv_relu(x, blk["gc"])
        x = _temporal_glu(x, blk["t2"])
        x = _layer_norm(x, blk["ln"])              # dropout: identity (eval)
    if "out" in p:                                 # Ko > 1 : OutputBlock
        x = _temporal_glu(x, p["out"]["t1"])
        x = _layer_norm(x, p["out"]["ln"])
        x = _linear(x, p["out"]["W1"], p["out"]["b1"], act="relu")
        x = _linear(x, p["out"]["W2"], p["out"]["b2"])
    elif "fc" in p:                                # Ko == 0 : fc1/relu/fc2
        x = _linear(x, p["fc"]["W1"], p["fc"]["b1"], act="relu")
        x = _linear(x, p["fc"]["W2"], p["fc"]["b2"])
    x = _linear(x, p["proj"]["W1"], p["proj"]["b1"], act="relu")
    x = _linear(x, p["proj"]["W2"], p["proj"]["b2"], act="relu")
    x = _linear(x, p["proj"]["W3"], p["proj"]["b3"])
    o_ref[0] = x                                   # (T_out, N)


def _const_map(ndim):
    return lambda b: (0,) * ndim


def make_forward(prep, batch, t_in, nc0, t_out, n_vertex):
    flat, treedef = jax.tree_util.tree_flatten(prep)
    kernel = functools.partial(_stgcn_kernel, treedef)

    in_specs = [pl.BlockSpec((1, t_in, nc0), lambda b: (b, 0, 0))]
    in_specs += [pl.BlockSpec(l.shape, _const_map(l.ndim)) for l in flat]

    w_elems = sum(int(l.size) for l in flat if l.dtype == jnp.bfloat16)
    cost = pl.CostEstimate(
        flops=int(2 * batch * t_in * w_elems),
        transcendentals=int(batch * t_in * 1024),
        bytes_accessed=int(batch * t_in * nc0 * 4 + sum(int(l.nbytes) for l in flat)
                           + batch * t_out * n_vertex * 4),
    )

    call = pl.pallas_call(
        kernel,
        out_shape=jax.ShapeDtypeStruct((batch, t_out, n_vertex), jnp.float32),
        grid=(batch,),
        in_specs=in_specs,
        out_specs=pl.BlockSpec((1, t_out, n_vertex), lambda b: (b, 0, 0)),
        compiler_params=pltpu.CompilerParams(
            dimension_semantics=("parallel",)),     # second TC on v7x
        cost_estimate=cost,
    )

    def forward(x_nchw):
        # NCHW (B, C0, T, N) -> lane-dense (B, T, N*C0)
        xf = jnp.transpose(x_nchw, (0, 2, 3, 1)).reshape(batch, t_in, nc0)
        y = call(xf, *flat)                         # (B, T_out, N)
        return jnp.transpose(y.reshape(batch, t_out, n_vertex, 1), (0, 3, 1, 2))

    return forward


# ----------------------------------------------------------------------------
# Deterministic synthetic parameters (no checkpoint)
# ----------------------------------------------------------------------------
def _init_linear(key, c_in, c_out):
    k1, k2 = jax.random.split(key)
    w = jax.random.normal(k1, (c_in, c_out), jnp.float32) / math.sqrt(c_in)
    b = jax.random.normal(k2, (c_out,), jnp.float32) * 0.01
    return w, b


def _init_align(key, c_in, c_out):
    # Align: 1x1 conv if c_in > c_out, zero-pad channels if c_in < c_out, else identity.
    if c_in > c_out:
        return _init_linear(key, c_in, c_out)
    if c_in < c_out:
        w = jnp.concatenate([jnp.eye(c_in, dtype=jnp.float32),
                             jnp.zeros((c_in, c_out - c_in), jnp.float32)], axis=1)
    else:
        w = jnp.eye(c_in, dtype=jnp.float32)
    return w, jnp.zeros((c_out,), jnp.float32)


def _init_temporal(key, kt, c_in, c_out):
    k1, k2, k3 = jax.random.split(key, 3)
    # TODO(synk): real CausalConv2d checkpoints store weights as (2*c_out, c_in, Kt, 1);
    # loading one would require permuting into this synthetic (Kt, c_in, 2*c_out) layout.
    wc = jax.random.normal(k1, (kt, c_in, 2 * c_out), jnp.float32) / math.sqrt(kt * c_in)
    bc = jax.random.normal(k2, (2 * c_out,), jnp.float32) * 0.01
    wa, ba = _init_align(k3, c_in, c_out)
    return dict(Wc=wc, bc=bc, Wa=wa, ba=ba)


def _init_graphconv(key, c_in, c_out):
    k1, k2 = jax.random.split(key)
    wa, ba = _init_align(k1, c_in, c_out)
    wg, bg = _init_linear(k2, c_out, c_out)
    return dict(Wa=wa, ba=ba, Wg=wg, bg=bg)


def _init_ln(n_vertex, c):
    return dict(g=jnp.ones((n_vertex, c), jnp.float32),
                b=jnp.zeros((n_vertex, c), jnp.float32))


def make_gso(key, n):
    a = jax.random.uniform(key, (n, n))
    a = (a + a.T) / 2.0
    a = jnp.where(a > 0.5, 1.0, 0.0) + jnp.eye(n)
    dinv = 1.0 / jnp.sqrt(jnp.sum(a, axis=1))
    return (a * dinv[:, None]) * dinv[None, :]


def init_params(key, args, blocks, n_vertex):
    n_blocks = len(blocks) - 3
    keys = iter(jax.random.split(key, 4 * n_blocks + 12))
    st = []
    for l in range(n_blocks):
        c_last = blocks[l][-1]
        ch = blocks[l + 1]
        st.append(dict(
            t1=_init_temporal(next(keys), args.Kt, c_last, ch[0]),
            gc=_init_graphconv(next(keys), ch[0], ch[1]),
            t2=_init_temporal(next(keys), args.Kt, ch[1], ch[2]),
            ln=_init_ln(n_vertex, ch[2]),
        ))
    params = dict(st=st)
    Ko = args.n_his - n_blocks * 2 * (args.Kt - 1)
    if Ko > 1:
        w1, b1 = _init_linear(next(keys), blocks[-2][0], blocks[-2][1])
        w2, b2 = _init_linear(next(keys), blocks[-2][1], blocks[-1][0])
        params["out"] = dict(
            t1=_init_temporal(next(keys), Ko, blocks[-3][-1], blocks[-2][0]),
            ln=_init_ln(n_vertex, blocks[-2][0]),
            W1=w1, b1=b1, W2=w2, b2=b2)
    elif Ko == 0:
        w1, b1 = _init_linear(next(keys), blocks[-3][-1], blocks[-2][0])
        w2, b2 = _init_linear(next(keys), blocks[-2][0], blocks[-1][0])
        params["fc"] = dict(W1=w1, b1=b1, W2=w2, b2=b2)
    w1, b1 = _init_linear(next(keys), blocks[-1][0], 16)
    w2, b2 = _init_linear(next(keys), 16, 8)
    w3, b3 = _init_linear(next(keys), 8, 1)
    params["proj"] = dict(W1=w1, b1=b1, W2=w2, b2=b2, W3=w3, b3=b3)
    return params, Ko


# ----------------------------------------------------------------------------
# One-time kron pre-expansion into the lane-dense (N*Cin, N*Cout) form
# ----------------------------------------------------------------------------
def _kron_id(w, n):
    # per-vertex channel matmul -> block-diagonal kron(I_N, W)
    return jnp.kron(jnp.eye(n, dtype=jnp.float32), w).astype(_WDT)


def _tile_bias(b, n):
    return jnp.tile(b, n).reshape(1, -1).astype(jnp.float32)


def _prep_temporal(p, n):
    kt, _, c2 = p["Wc"].shape
    c_out = c2 // 2
    eye = jnp.eye(n, dtype=jnp.float32)
    wc = jnp.stack([
        jnp.concatenate([jnp.kron(eye, p["Wc"][k, :, :c_out]),     # p-channels
                         jnp.kron(eye, p["Wc"][k, :, c_out:])],    # q-channels
                        axis=1)
        for k in range(kt)
    ]).astype(_WDT)                                # (Kt, N*Cin, 2*N*Cout)
    bc = jnp.concatenate([jnp.tile(p["bc"][:c_out], n),
                          jnp.tile(p["bc"][c_out:], n)]).reshape(1, -1).astype(jnp.float32)
    return dict(Wc=wc, bc=bc, Wa=_kron_id(p["Wa"], n), ba=_tile_bias(p["ba"], n))


def _prep_graphconv(p, gso, n):
    return dict(Wa=_kron_id(p["Wa"], n), ba=_tile_bias(p["ba"], n),
                Wg=jnp.kron(gso.T, p["Wg"]).astype(_WDT),   # gso ⊗ Wg : whole graph conv
                bg=_tile_bias(p["bg"], n))


def _prep_ln(p):
    return dict(g=p["g"].reshape(1, -1).astype(jnp.float32),
                b=p["b"].reshape(1, -1).astype(jnp.float32))


def prepare_params(params, gso, n):
    prep = dict(st=[])
    for blk in params["st"]:
        prep["st"].append(dict(
            t1=_prep_temporal(blk["t1"], n),
            gc=_prep_graphconv(blk["gc"], gso, n),
            t2=_prep_temporal(blk["t2"], n),
            ln=_prep_ln(blk["ln"])))
    if "out" in params:
        po = params["out"]
        prep["out"] = dict(
            t1=_prep_temporal(po["t1"], n), ln=_prep_ln(po["ln"]),
            W1=_kron_id(po["W1"], n), b1=_tile_bias(po["b1"], n),
            W2=_kron_id(po["W2"], n), b2=_tile_bias(po["b2"], n))
    if "fc" in params:
        pf = params["fc"]
        prep["fc"] = dict(W1=_kron_id(pf["W1"], n), b1=_tile_bias(pf["b1"], n),
                          W2=_kron_id(pf["W2"], n), b2=_tile_bias(pf["b2"], n))
    pp = params["proj"]
    prep["proj"] = dict(W1=_kron_id(pp["W1"], n), b1=_tile_bias(pp["b1"], n),
                        W2=_kron_id(pp["W2"], n), b2=_tile_bias(pp["b2"], n),
                        W3=_kron_id(pp["W3"], n), b3=_tile_bias(pp["b3"], n))
    return prep


# ----------------------------------------------------------------------------
if __name__ == "__main__":
    class Args:
        Kt = 3
        Ks = 3
        n_his = 12
        act_func = "glu"
        graph_conv_type = "graph_conv"
        enable_bias = True
        droprate = 0.5            # dropout is identity in this eval-mode forward

    args = Args()
    blocks = [[1], [8, 4, 8], [8, 4, 8], [16, 16], [1]]
    n_vertex = 16
    batch = 2

    key = jax.random.PRNGKey(0)
    kx, kp, kg = jax.random.split(key, 3)
    # PyTorch input layout NCHW: (batch, channels=blocks[0][0], n_his, n_vertex)
    x = jax.random.normal(kx, (batch, blocks[0][0], args.n_his, n_vertex), jnp.float32)
    gso = make_gso(kg, n_vertex)
    params, Ko = init_params(kp, args, blocks, n_vertex)    # Ko = 4 -> OutputBlock path
    prep = prepare_params(params, gso, n_vertex)

    n_blocks = len(blocks) - 3
    t_out = 1 if Ko >= 1 else args.n_his - n_blocks * 2 * (args.Kt - 1)
    fwd = jax.jit(make_forward(prep, batch, args.n_his,
                               n_vertex * blocks[0][0], t_out, n_vertex))
    out = jax.block_until_ready(fwd(x))
    assert out.shape == (batch, 1, t_out, n_vertex), out.shape
    assert bool(jnp.all(jnp.isfinite(out)))
    print("KERNEL_OK")
</pallas_src>

<mosaic_0001>
module attributes {stable_mosaic.version = 11 : i64} {
  func.func @_stgcn_kernel(%arg0: i32, %arg1: memref<1x12x16xf32, #tpu.memory_space<vmem>>, %arg2: memref<256x256xbf16, #tpu.memory_space<vmem>>, %arg3: memref<256x16xbf16, #tpu.memory_space<vmem>>, %arg4: memref<1x256xf32, #tpu.memory_space<vmem>>, %arg5: memref<1x16xf32, #tpu.memory_space<vmem>>, %arg6: memref<1x256xf32, #tpu.memory_space<vmem>>, %arg7: memref<1x256xf32, #tpu.memory_space<vmem>>, %arg8: memref<128x256xbf16, #tpu.memory_space<vmem>>, %arg9: memref<4x128x512xbf16, #tpu.memory_space<vmem>>, %arg10: memref<1x256xf32, #tpu.memory_space<vmem>>, %arg11: memref<1x512xf32, #tpu.memory_space<vmem>>, %arg12: memref<16x256xbf16, #tpu.memory_space<vmem>>, %arg13: memref<256x128xbf16, #tpu.memory_space<vmem>>, %arg14: memref<128x16xbf16, #tpu.memory_space<vmem>>, %arg15: memref<1x256xf32, #tpu.memory_space<vmem>>, %arg16: memref<1x128xf32, #tpu.memory_space<vmem>>, %arg17: memref<1x16xf32, #tpu.memory_space<vmem>>, %arg18: memref<128x64xbf16, #tpu.memory_space<vmem>>, %arg19: memref<64x64xbf16, #tpu.memory_space<vmem>>, %arg20: memref<1x64xf32, #tpu.memory_space<vmem>>, %arg21: memref<1x64xf32, #tpu.memory_space<vmem>>, %arg22: memref<1x128xf32, #tpu.memory_space<vmem>>, %arg23: memref<1x128xf32, #tpu.memory_space<vmem>>, %arg24: memref<16x128xbf16, #tpu.memory_space<vmem>>, %arg25: memref<3x16x256xbf16, #tpu.memory_space<vmem>>, %arg26: memref<1x128xf32, #tpu.memory_space<vmem>>, %arg27: memref<1x256xf32, #tpu.memory_space<vmem>>, %arg28: memref<64x128xbf16, #tpu.memory_space<vmem>>, %arg29: memref<3x64x256xbf16, #tpu.memory_space<vmem>>, %arg30: memref<1x128xf32, #tpu.memory_space<vmem>>, %arg31: memref<1x256xf32, #tpu.memory_space<vmem>>, %arg32: memref<128x64xbf16, #tpu.memory_space<vmem>>, %arg33: memref<64x64xbf16, #tpu.memory_space<vmem>>, %arg34: memref<1x64xf32, #tpu.memory_space<vmem>>, %arg35: memref<1x64xf32, #tpu.memory_space<vmem>>, %arg36: memref<1x128xf32, #tpu.memory_space<vmem>>, %arg37: memref<1x128xf32, #tpu.memory_space<vmem>>, %arg38: memref<128x128xbf16, #tpu.memory_space<vmem>>, %arg39: memref<3x128x256xbf16, #tpu.memory_space<vmem>>, %arg40: memref<1x128xf32, #tpu.memory_space<vmem>>, %arg41: memref<1x256xf32, #tpu.memory_space<vmem>>, %arg42: memref<64x128xbf16, #tpu.memory_space<vmem>>, %arg43: memref<3x64x256xbf16, #tpu.memory_space<vmem>>, %arg44: memref<1x128xf32, #tpu.memory_space<vmem>>, %arg45: memref<1x256xf32, #tpu.memory_space<vmem>>, %arg46: memref<1x1x16xf32, #tpu.memory_space<vmem>>) attributes {dimension_semantics = [#tpu.dimension_semantics<parallel>], iteration_bounds = array<i64: 2>, scalar_prefetch = 0 : i64, scratch_operands = 0 : i64, tpu.core_type = #tpu.core_type<tc>, window_params = [{transform_indices = @transform_0, window_bounds = array<i64: 1, 12, 16>}, {pipeline_mode = #tpu.pipeline_mode<synchronous>, transform_indices = @transform_1, window_bounds = array<i64: 256, 256>}, {pipeline_mode = #tpu.pipeline_mode<synchronous>, transform_indices = @transform_2, window_bounds = array<i64: 256, 16>}, {pipeline_mode = #tpu.pipeline_mode<synchronous>, transform_indices = @transform_3, window_bounds = array<i64: 1, 256>}, {pipeline_mode = #tpu.pipeline_mode<synchronous>, transform_indices = @transform_4, window_bounds = array<i64: 1, 16>}, {pipeline_mode = #tpu.pipeline_mode<synchronous>, transform_indices = @transform_5, window_bounds = array<i64: 1, 256>}, {pipeline_mode = #tpu.pipeline_mode<synchronous>, transform_indices = @transform_6, window_bounds = array<i64: 1, 256>}, {pipeline_mode = #tpu.pipeline_mode<synchronous>, transform_indices = @transform_7, window_bounds = array<i64: 128, 256>}, {pipeline_mode = #tpu.pipeline_mode<synchronous>, transform_indices = @transform_8, window_bounds = array<i64: 4, 128, 512>}, {pipeline_mode = #tpu.pipeline_mode<synchronous>, transform_indices = @transform_9, window_bounds = array<i64: 1, 256>}, {pipeline_mode = #tpu.pipeline_mode<synchronous>, transform_indices = @transform_10, window_bounds = array<i64: 1, 512>}, {pipeline_mode = #tpu.pipeline_mode<synchronous>, transform_indices = @transform_11, window_bounds = array<i64: 16, 256>}, {pipeline_mode = #tpu.pipeline_mode<synchronous>, transform_indices = @transform_12, window_bounds = array<i64: 256, 128>}, {pipeline_mode = #tpu.pipeline_mode<synchronous>, transform_indices = @transform_13, window_bounds = array<i64: 128, 16>}, {pipeline_mode = #tpu.pipeline_mode<synchronous>, transform_indices = @transform_14, window_bounds = array<i64: 1, 256>}, {pipeline_mode = #tpu.pipeline_mode<synchronous>, transform_indices = @transform_15, window_bounds = array<i64: 1, 128>}, {pipeline_mode = #tpu.pipeline_mode<synchronous>, transform_indices = @transform_16, window_bounds = array<i64: 1, 16>}, {pipeline_mode = #tpu.pipeline_mode<synchronous>, transform_indices = @transform_17, window_bounds = array<i64: 128, 64>}, {pipeline_mode = #tpu.pipeline_mode<synchronous>, transform_indices = @transform_18, window_bounds = array<i64: 64, 64>}, {pipeline_mode = #tpu.pipeline_mode<synchronous>, transform_indices = @transform_19, window_bounds = array<i64: 1, 64>}, {pipeline_mode = #tpu.pipeline_mode<synchronous>, transform_indices = @transform_20, window_bounds = array<i64: 1, 64>}, {pipeline_mode = #tpu.pipeline_mode<synchronous>, transform_indices = @transform_21, window_bounds = array<i64: 1, 128>}, {pipeline_mode = #tpu.pipeline_mode<synchronous>, transform_indices = @transform_22, window_bounds = array<i64: 1, 128>}, {pipeline_mode = #tpu.pipeline_mode<synchronous>, transform_indices = @transform_23, window_bounds = array<i64: 16, 128>}, {pipeline_mode = #tpu.pipeline_mode<synchronous>, transform_indices = @transform_24, window_bounds = array<i64: 3, 16, 256>}, {pipeline_mode = #tpu.pipeline_mode<synchronous>, transform_indices = @transform_25, window_bounds = array<i64: 1, 128>}, {pipeline_mode = #tpu.pipeline_mode<synchronous>, transform_indices = @transform_26, window_bounds = array<i64: 1, 256>}, {pipeline_mode = #tpu.pipeline_mode<synchronous>, transform_indices = @transform_27, window_bounds = array<i64: 64, 128>}, {pipeline_mode = #tpu.pipeline_mode<synchronous>, transform_indices = @transform_28, window_bounds = array<i64: 3, 64, 256>}, {pipeline_mode = #tpu.pipeline_mode<synchronous>, transform_indices = @transform_29, window_bounds = array<i64: 1, 128>}, {pipeline_mode = #tpu.pipeline_mode<synchronous>, transform_indices = @transform_30, window_bounds = array<i64: 1, 256>}, {pipeline_mode = #tpu.pipeline_mode<synchronous>, transform_indices = @transform_31, window_bounds = array<i64: 128, 64>}, {pipeline_mode = #tpu.pipeline_mode<synchronous>, transform_indices = @transform_32, window_bounds = array<i64: 64, 64>}, {pipeline_mode = #tpu.pipeline_mode<synchronous>, transform_indices = @transform_33, window_bounds = array<i64: 1, 64>}, {pipeline_mode = #tpu.pipeline_mode<synchronous>, transform_indices = @transform_34, window_bounds = array<i64: 1, 64>}, {pipeline_mode = #tpu.pipeline_mode<synchronous>, transform_indices = @transform_35, window_bounds = array<i64: 1, 128>}, {pipeline_mode = #tpu.pipeline_mode<synchronous>, transform_indices = @transform_36, window_bounds = array<i64: 1, 128>}, {pipeline_mode = #tpu.pipeline_mode<synchronous>, transform_indices = @transform_37, window_bounds = array<i64: 128, 128>}, {pipeline_mode = #tpu.pipeline_mode<synchronous>, transform_indices = @transform_38, window_bounds = array<i64: 3, 128, 256>}, {pipeline_mode = #tpu.pipeline_mode<synchronous>, transform_indices = @transform_39, window_bounds = array<i64: 1, 128>}, {pipeline_mode = #tpu.pipeline_mode<synchronous>, transform_indices = @transform_40, window_bounds = array<i64: 1, 256>}, {pipeline_mode = #tpu.pipeline_mode<synchronous>, transform_indices = @transform_41, window_bounds = array<i64: 64, 128>}, {pipeline_mode = #tpu.pipeline_mode<synchronous>, transform_indices = @transform_42, window_bounds = array<i64: 3, 64, 256>}, {pipeline_mode = #tpu.pipeline_mode<synchronous>, transform_indices = @transform_43, window_bounds = array<i64: 1, 128>}, {pipeline_mode = #tpu.pipeline_mode<synchronous>, transform_indices = @transform_44, window_bounds = array<i64: 1, 256>}, {transform_indices = @transform_45, window_bounds = array<i64: 1, 1, 16>}]} {
    %c0 = arith.constant 0 : index
    %c0_0 = arith.constant 0 : index
    %c0_1 = arith.constant 0 : index
    %0 = vector.load %arg1[%c0, %c0_0, %c0_1] : memref<1x12x16xf32, #tpu.memory_space<vmem>>, vector<1x12x16xf32>
    %1 = vector.shape_cast %0 : vector<1x12x16xf32> to vector<12x16xf32>
    %2 = vector.extract_strided_slice %1 {offsets = [0, 0], sizes = [10, 16], strides = [1, 1]} : vector<12x16xf32> to vector<10x16xf32>
    %c0_2 = arith.constant 0 : index
    %c0_3 = arith.constant 0 : index
    %c0_4 = arith.constant 0 : index
    %3 = vector.load %arg25[%c0_2, %c0_3, %c0_4] : memref<3x16x256xbf16, #tpu.memory_space<vmem>>, vector<1x16x256xbf16>
    %4 = vector.shape_cast %3 : vector<1x16x256xbf16> to vector<16x256xbf16>
    %5 = arith.truncf %2 : vector<10x16xf32> to vector<10x16xbf16>
    %cst = arith.constant dense<0.000000e+00> : vector<10x256xf32>
    %6 = tpu.matmul %5, %4, %cst {dimension_numbers = #tpu.dot_dimension_numbers<[1], [0], [0], [1], [0, 0, 1, 1], [], []>} : vector<10x16xbf16>, vector<16x256xbf16>, vector<10x256xf32> -> vector<10x256xf32>
    %7 = vector.extract_strided_slice %1 {offsets = [1, 0], sizes = [10, 16], strides = [1, 1]} : vector<12x16xf32> to vector<10x16xf32>
    %c1 = arith.constant 1 : index
    %c0_5 = arith.constant 0 : index
    %c0_6 = arith.constant 0 : index
    %8 = vector.load %arg25[%c1, %c0_5, %c0_6] : memref<3x16x256xbf16, #tpu.memory_space<vmem>>, vector<1x16x256xbf16>
    %9 = vector.shape_cast %8 : vector<1x16x256xbf16> to vector<16x256xbf16>
    %10 = arith.truncf %7 : vector<10x16xf32> to vector<10x16xbf16>
    %cst_7 = arith.constant dense<0.000000e+00> : vector<10x256xf32>
    %11 = tpu.matmul %10, %9, %cst_7 {dimension_numbers = #tpu.dot_dimension_numbers<[1], [0], [0], [1], [0, 0, 1, 1], [], []>} : vector<10x16xbf16>, vector<16x256xbf16>, vector<10x256xf32> -> vector<10x256xf32>
    %12 = arith.addf %6, %11 : vector<10x256xf32>
    %13 = vector.extract_strided_slice %1 {offsets = [2, 0], sizes = [10, 16], strides = [1, 1]} : vector<12x16xf32> to vector<10x16xf32>
    %c2 = arith.constant 2 : index
    %c0_8 = arith.constant 0 : index
    %c0_9 = arith.constant 0 : index
    %14 = vector.load %arg25[%c2, %c0_8, %c0_9] : memref<3x16x256xbf16, #tpu.memory_space<vmem>>, vector<1x16x256xbf16>
    %15 = vector.shape_cast %14 : vector<1x16x256xbf16> to vector<16x256xbf16>
    %16 = arith.truncf %13 : vector<10x16xf32> to vector<10x16xbf16>
    %cst_10 = arith.constant dense<0.000000e+00> : vector<10x256xf32>
    %17 = tpu.matmul %16, %15, %cst_10 {dimension_numbers = #tpu.dot_dimension_numbers<[1], [0], [0], [1], [0, 0, 1, 1], [], []>} : vector<10x16xbf16>, vector<16x256xbf16>, vector<10x256xf32> -> vector<10x256xf32>
    %18 = arith.addf %12, %17 : vector<10x256xf32>
    %c0_11 = arith.constant 0 : index
    %c0_12 = arith.constant 0 : index
    %19 = vector.load %arg27[%c0_11, %c0_12] : memref<1x256xf32, #tpu.memory_space<vmem>>, vector<1x256xf32>
    %20 = vector.broadcast %19 : vector<1x256xf32> to vector<10x256xf32>
    %21 = arith.addf %18, %20 : vector<10x256xf32>
    %22 = vector.extract_strided_slice %1 {offsets = [2, 0], sizes = [10, 16], strides = [1, 1]} : vector<12x16xf32> to vector<10x16xf32>
    %23 = arith.truncf %22 : vector<10x16xf32> to vector<10x16xbf16>
    %c0_13 = arith.constant 0 : index
    %c0_14 = arith.constant 0 : index
    %24 = vector.load %arg24[%c0_13, %c0_14] : memref<16x128xbf16, #tpu.memory_space<vmem>>, vector<16x128xbf16>
    %cst_15 = arith.constant dense<0.000000e+00> : vector<10x128xf32>
    %25 = tpu.matmul %23, %24, %cst_15 {dimension_numbers = #tpu.dot_dimension_numbers<[1], [0], [0], [1], [0, 0, 1, 1], [], []>} : vector<10x16xbf16>, vector<16x128xbf16>, vector<10x128xf32> -> vector<10x128xf32>
    %c0_16 = arith.constant 0 : index
    %c0_17 = arith.constant 0 : index
    %26 = vector.load %arg26[%c0_16, %c0_17] : memref<1x128xf32, #tpu.memory_space<vmem>>, vector<1x128xf32>
    %27 = vector.broadcast %26 : vector<1x128xf32> to vector<10x128xf32>
    %28 = arith.addf %25, %27 : vector<10x128xf32>
    %29 = vector.extract_strided_slice %21 {offsets = [0, 128], sizes = [10, 128], strides = [1, 1]} : vector<10x256xf32> to vector<10x128xf32>
    %cst_18 = arith.constant 0.000000e+00 : f32
    %30 = vector.broadcast %cst_18 : f32 to vector<10x128xf32>
    %31 = arith.subf %30, %29 : vector<10x128xf32>
    %32 = math.exp %31 : vector<10x128xf32>
    %cst_19 = arith.constant 1.000000e+00 : f32
    %33 = vector.broadcast %cst_19 : f32 to vector<10x128xf32>
    %34 = arith.addf %33, %32 : vector<10x128xf32>
    %35 = tpu.reciprocal %34 {approx = true} : vector<10x128xf32> -> vector<10x128xf32>
    %36 = vector.extract_strided_slice %21 {offsets = [0, 0], sizes = [10, 128], strides = [1, 1]} : vector<10x256xf32> to vector<10x128xf32>
    %37 = arith.addf %36, %28 : vector<10x128xf32>
    %38 = arith.mulf %37, %35 : vector<10x128xf32>
    %39 = arith.truncf %38 : vector<10x128xf32> to vector<10x128xbf16>
    %c0_20 = arith.constant 0 : index
    %c0_21 = arith.constant 0 : index
    %40 = vector.load %arg18[%c0_20, %c0_21] : memref<128x64xbf16, #tpu.memory_space<vmem>>, vector<128x64xbf16>
    %cst_22 = arith.constant dense<0.000000e+00> : vector<10x64xf32>
    %41 = tpu.matmul %39, %40, %cst_22 {dimension_numbers = #tpu.dot_dimension_numbers<[1], [0], [0], [1], [0, 0, 1, 1], [], []>} : vector<10x128xbf16>, vector<128x64xbf16>, vector<10x64xf32> -> vector<10x64xf32>
    %c0_23 = arith.constant 0 : index
    %c0_24 = arith.constant 0 : index
    %42 = vector.load %arg20[%c0_23, %c0_24] : memref<1x64xf32, #tpu.memory_space<vmem>>, vector<1x64xf32>
    %43 = vector.broadcast %42 : vector<1x64xf32> to vector<10x64xf32>
    %44 = arith.addf %41, %43 : vector<10x64xf32>
    %45 = arith.truncf %44 : vector<10x64xf32> to vector<10x64xbf16>
    %c0_25 = arith.constant 0 : index
    %c0_26 = arith.constant 0 : index
    %46 = vector.load %arg19[%c0_25, %c0_26] : memref<64x64xbf16, #tpu.memory_space<vmem>>, vector<64x64xbf16>
    %cst_27 = arith.constant dense<0.000000e+00> : vector<10x64xf32>
    %47 = tpu.matmul %45, %46, %cst_27 {dimension_numbers = #tpu.dot_dimension_numbers<[1], [0], [0], [1], [0, 0, 1, 1], [], []>} : vector<10x64xbf16>, vector<64x64xbf16>, vector<10x64xf32> -> vector<10x64xf32>
    %c0_28 = arith.constant 0 : index
    %c0_29 = arith.constant 0 : index
    %48 = vector.load %arg21[%c0_28, %c0_29] : memref<1x64xf32, #tpu.memory_space<vmem>>, vector<1x64xf32>
    %49 = vector.broadcast %48 : vector<1x64xf32> to vector<10x64xf32>
    %50 = arith.addf %47, %49 : vector<10x64xf32>
    %51 = arith.addf %50, %44 : vector<10x64xf32>
    %cst_30 = arith.constant 0.000000e+00 : f32
    %52 = vector.broadcast %cst_30 : f32 to vector<10x64xf32>
    %53 = arith.maximumf %51, %52 : vector<10x64xf32>
    %54 = vector.extract_strided_slice %53 {offsets = [0, 0], sizes = [8, 64], strides = [1, 1]} : vector<10x64xf32> to vector<8x64xf32>
    %c0_31 = arith.constant 0 : index
    %c0_32 = arith.constant 0 : index
    %c0_33 = arith.constant 0 : index
    %55 = vector.load %arg29[%c0_31, %c0_32, %c0_33] : memref<3x64x256xbf16, #tpu.memory_space<vmem>>, vector<1x64x256xbf16>
    %56 = vector.shape_cast %55 : vector<1x64x256xbf16> to vector<64x256xbf16>
    %57 = arith.truncf %54 : vector<8x64xf32> to vector<8x64xbf16>
    %cst_34 = arith.constant dense<0.000000e+00> : vector<8x256xf32>
    %58 = tpu.matmul %57, %56, %cst_34 {dimension_numbers = #tpu.dot_dimension_numbers<[1], [0], [0], [1], [0, 0, 1, 1], [], []>} : vector<8x64xbf16>, vector<64x256xbf16>, vector<8x256xf32> -> vector<8x256xf32>
    %59 = vector.extract_strided_slice %53 {offsets = [1, 0], sizes = [8, 64], strides = [1, 1]} : vector<10x64xf32> to vector<8x64xf32>
    %c1_35 = arith.constant 1 : index
    %c0_36 = arith.constant 0 : index
    %c0_37 = arith.constant 0 : index
    %60 = vector.load %arg29[%c1_35, %c0_36, %c0_37] : memref<3x64x256xbf16, #tpu.memory_space<vmem>>, vector<1x64x256xbf16>
    %61 = vector.shape_cast %60 : vector<1x64x256xbf16> to vector<64x256xbf16>
    %62 = arith.truncf %59 : vector<8x64xf32> to vector<8x64xbf16>
    %cst_38 = arith.constant dense<0.000000e+00> : vector<8x256xf32>
    %63 = tpu.matmul %62, %61, %cst_38 {dimension_numbers = #tpu.dot_dimension_numbers<[1], [0], [0], [1], [0, 0, 1, 1], [], []>} : vector<8x64xbf16>, vector<64x256xbf16>, vector<8x256xf32> -> vector<8x256xf32>
    %64 = arith.addf %58, %63 : vector<8x256xf32>
    %65 = vector.extract_strided_slice %53 {offsets = [2, 0], sizes = [8, 64], strides = [1, 1]} : vector<10x64xf32> to vector<8x64xf32>
    %c2_39 = arith.constant 2 : index
    %c0_40 = arith.constant 0 : index
    %c0_41 = arith.constant 0 : index
    %66 = vector.load %arg29[%c2_39, %c0_40, %c0_41] : memref<3x64x256xbf16, #tpu.memory_space<vmem>>, vector<1x64x256xbf16>
    %67 = vector.shape_cast %66 : vector<1x64x256xbf16> to vector<64x256xbf16>
    %68 = arith.truncf %65 : vector<8x64xf32> to vector<8x64xbf16>
    %cst_42 = arith.constant dense<0.000000e+00> : vector<8x256xf32>
    %69 = tpu.matmul %68, %67, %cst_42 {dimension_numbers = #tpu.dot_dimension_numbers<[1], [0], [0], [1], [0, 0, 1, 1], [], []>} : vector<8x64xbf16>, vector<64x256xbf16>, vector<8x256xf32> -> vector<8x256xf32>
    %70 = arith.addf %64, %69 : vector<8x256xf32>
    %c0_43 = arith.constant 0 : index
    %c0_44 = arith.constant 0 : index
    %71 = vector.load %arg31[%c0_43, %c0_44] : memref<1x256xf32, #tpu.memory_space<vmem>>, vector<1x256xf32>
    %72 = vector.broadcast %71 : vector<1x256xf32> to vector<8x256xf32>
    %73 = arith.addf %70, %72 : vector<8x256xf32>
    %74 = vector.extract_strided_slice %53 {offsets = [2, 0], sizes = [8, 64], strides = [1, 1]} : vector<10x64xf32> to vector<8x64xf32>
    %75 = arith.truncf %74 : vector<8x64xf32> to vector<8x64xbf16>
    %c0_45 = arith.constant 0 : index
    %c0_46 = arith.constant 0 : index
    %76 = vector.load %arg28[%c0_45, %c0_46] : memref<64x128xbf16, #tpu.memory_space<vmem>>, vector<64x128xbf16>
    %cst_47 = arith.constant dense<0.000000e+00> : vector<8x128xf32>
    %77 = tpu.matmul %75, %76, %cst_47 {dimension_numbers = #tpu.dot_dimension_numbers<[1], [0], [0], [1], [0, 0, 1, 1], [], []>} : vector<8x64xbf16>, vector<64x128xbf16>, vector<8x128xf32> -> vector<8x128xf32>
    %c0_48 = arith.constant 0 : index
    %c0_49 = arith.constant 0 : index
    %78 = vector.load %arg30[%c0_48, %c0_49] : memref<1x128xf32, #tpu.memory_space<vmem>>, vector<1x128xf32>
    %79 = vector.broadcast %78 : vector<1x128xf32> to vector<8x128xf32>
    %80 = arith.addf %77, %79 : vector<8x128xf32>
    %81 = vector.extract_strided_slice %73 {offsets = [0, 128], sizes = [8, 128], strides = [1, 1]} : vector<8x256xf32> to vector<8x128xf32>
    %cst_50 = arith.constant 0.000000e+00 : f32
    %82 = vector.broadcast %cst_50 : f32 to vector<8x128xf32>
    %83 = arith.subf %82, %81 : vector<8x128xf32>
    %84 = math.exp %83 : vector<8x128xf32>
    %cst_51 = arith.constant 1.000000e+00 : f32
    %85 = vector.broadcast %cst_51 : f32 to vector<8x128xf32>
    %86 = arith.addf %85, %84 : vector<8x128xf32>
    %87 = tpu.reciprocal %86 {approx = true} : vector<8x128xf32> -> vector<8x128xf32>
    %88 = vector.extract_strided_slice %73 {offsets = [0, 0], sizes = [8, 128], strides = [1, 1]} : vector<8x256xf32> to vector<8x128xf32>
    %89 = arith.addf %88, %80 : vector<8x128xf32>
    %90 = arith.mulf %89, %87 : vector<8x128xf32>
    %cst_52 = arith.constant dense<0.000000e+00> : vector<8xf32>
    %91 = vector.multi_reduction <add>, %90, %cst_52 [1] : vector<8x128xf32> to vector<8xf32>
    %92 = vector.shape_cast %91 : vector<8xf32> to vector<8x1xf32>
    %cst_53 = arith.constant 1.280000e+02 : f32
    %93 = vector.broadcast %cst_53 : f32 to vector<8x1xf32>
    %94 = arith.divf %92, %93 : vector<8x1xf32>
    %95 = vector.broadcast %94 : vector<8x1xf32> to vector<8x128xf32>
    %96 = arith.subf %90, %95 : vector<8x128xf32>
    %97 = arith.mulf %96, %96 : vector<8x128xf32>
    %cst_54 = arith.constant dense<0.000000e+00> : vector<8xf32>
    %98 = vector.multi_reduction <add>, %97, %cst_54 [1] : vector<8x128xf32> to vector<8xf32>
    %99 = vector.shape_cast %98 : vector<8xf32> to vector<8x1xf32>
    %cst_55 = arith.constant 1.280000e+02 : f32
    %100 = vector.broadcast %cst_55 : f32 to vector<8x1xf32>
    %101 = arith.divf %99, %100 : vector<8x1xf32>
    %cst_56 = arith.constant 9.99999974E-6 : f32
    %102 = vector.broadcast %cst_56 : f32 to vector<8x1xf32>
    %103 = arith.addf %101, %102 : vector<8x1xf32>
    %104 = math.rsqrt %103 : vector<8x1xf32>
    %105 = vector.broadcast %104 : vector<8x1xf32> to vector<8x128xf32>
    %106 = arith.mulf %96, %105 : vector<8x128xf32>
    %c0_57 = arith.constant 0 : index
    %c0_58 = arith.constant 0 : index
    %107 = vector.load %arg23[%c0_57, %c0_58] : memref<1x128xf32, #tpu.memory_space<vmem>>, vector<1x128xf32>
    %108 = vector.broadcast %107 : vector<1x128xf32> to vector<8x128xf32>
    %109 = arith.mulf %106, %108 : vector<8x128xf32>
    %c0_59 = arith.constant 0 : index
    %c0_60 = arith.constant 0 : index
    %110 = vector.load %arg22[%c0_59, %c0_60] : memref<1x128xf32, #tpu.memory_space<vmem>>, vector<1x128xf32>
    %111 = vector.broadcast %110 : vector<1x128xf32> to vector<8x128xf32>
    %112 = arith.addf %109, %111 : vector<8x128xf32>
    %113 = vector.extract_strided_slice %112 {offsets = [0, 0], sizes = [6, 128], strides = [1, 1]} : vector<8x128xf32> to vector<6x128xf32>
    %c0_61 = arith.constant 0 : index
    %c0_62 = arith.constant 0 : index
    %c0_63 = arith.constant 0 : index
    %114 = vector.load %arg39[%c0_61, %c0_62, %c0_63] : memref<3x128x256xbf16, #tpu.memory_space<vmem>>, vector<1x128x256xbf16>
    %115 = vector.shape_cast %114 : vector<1x128x256xbf16> to vector<128x256xbf16>
    %116 = arith.truncf %113 : vector<6x128xf32> to vector<6x128xbf16>
    %cst_64 = arith.constant dense<0.000000e+00> : vector<6x256xf32>
    %117 = tpu.matmul %116, %115, %cst_64 {dimension_numbers = #tpu.dot_dimension_numbers<[1], [0], [0], [1], [0, 0, 1, 1], [], []>} : vector<6x128xbf16>, vector<128x256xbf16>, vector<6x256xf32> -> vector<6x256xf32>
    %118 = vector.extract_strided_slice %112 {offsets = [1, 0], sizes = [6, 128], strides = [1, 1]} : vector<8x128xf32> to vector<6x128xf32>
    %c1_65 = arith.constant 1 : index
    %c0_66 = arith.constant 0 : index
    %c0_67 = arith.constant 0 : index
    %119 = vector.load %arg39[%c1_65, %c0_66, %c0_67] : memref<3x128x256xbf16, #tpu.memory_space<vmem>>, vector<1x128x256xbf16>
    %120 = vector.shape_cast %119 : vector<1x128x256xbf16> to vector<128x256xbf16>
    %121 = arith.truncf %118 : vector<6x128xf32> to vector<6x128xbf16>
    %cst_68 = arith.constant dense<0.000000e+00> : vector<6x256xf32>
    %122 = tpu.matmul %121, %120, %cst_68 {dimension_numbers = #tpu.dot_dimension_numbers<[1], [0], [0], [1], [0, 0, 1, 1], [], []>} : vector<6x128xbf16>, vector<128x256xbf16>, vector<6x256xf32> -> vector<6x256xf32>
    %123 = arith.addf %117, %122 : vector<6x256xf32>
    %124 = vector.extract_strided_slice %112 {offsets = [2, 0], sizes = [6, 128], strides = [1, 1]} : vector<8x128xf32> to vector<6x128xf32>
    %c2_69 = arith.constant 2 : index
    %c0_70 = arith.constant 0 : index
    %c0_71 = arith.constant 0 : index
    %125 = vector.load %arg39[%c2_69, %c0_70, %c0_71] : memref<3x128x256xbf16, #tpu.memory_space<vmem>>, vector<1x128x256xbf16>
    %126 = vector.shape_cast %125 : vector<1x128x256xbf16> to vector<128x256xbf16>
    %127 = arith.truncf %124 : vector<6x128xf32> to vector<6x128xbf16>
    %cst_72 = arith.constant dense<0.000000e+00> : vector<6x256xf32>
    %128 = tpu.matmul %127, %126, %cst_72 {dimension_numbers = #tpu.dot_dimension_numbers<[1], [0], [0], [1], [0, 0, 1, 1], [], []>} : vector<6x128xbf16>, vector<128x256xbf16>, vector<6x256xf32> -> vector<6x256xf32>
    %129 = arith.addf %123, %128 : vector<6x256xf32>
    %c0_73 = arith.constant 0 : index
    %c0_74 = arith.constant 0 : index
    %130 = vector.load %arg41[%c0_73, %c0_74] : memref<1x256xf32, #tpu.memory_space<vmem>>, vector<1x256xf32>
    %131 = vector.broadcast %130 : vector<1x256xf32> to vector<6x256xf32>
    %132 = arith.addf %129, %131 : vector<6x256xf32>
    %133 = vector.extract_strided_slice %112 {offsets = [2, 0], sizes = [6, 128], strides = [1, 1]} : vector<8x128xf32> to vector<6x128xf32>
    %134 = arith.truncf %133 : vector<6x128xf32> to vector<6x128xbf16>
    %c0_75 = arith.constant 0 : index
    %c0_76 = arith.constant 0 : index
    %135 = vector.load %arg38[%c0_75, %c0_76] : memref<128x128xbf16, #tpu.memory_space<vmem>>, vector<128x128xbf16>
    %cst_77 = arith.constant dense<0.000000e+00> : vector<6x128xf32>
    %136 = tpu.matmul %134, %135, %cst_77 {dimension_numbers = #tpu.dot_dimension_numbers<[1], [0], [0], [1], [0, 0, 1, 1], [], []>} : vector<6x128xbf16>, vector<128x128xbf16>, vector<6x128xf32> -> vector<6x128xf32>
    %c0_78 = arith.constant 0 : index
    %c0_79 = arith.constant 0 : index
    %137 = vector.load %arg40[%c0_78, %c0_79] : memref<1x128xf32, #tpu.memory_space<vmem>>, vector<1x128xf32>
    %138 = vector.broadcast %137 : vector<1x128xf32> to vector<6x128xf32>
    %139 = arith.addf %136, %138 : vector<6x128xf32>
    %140 = vector.extract_strided_slice %132 {offsets = [0, 128], sizes = [6, 128], strides = [1, 1]} : vector<6x256xf32> to vector<6x128xf32>
    %cst_80 = arith.constant 0.000000e+00 : f32
    %141 = vector.broadcast %cst_80 : f32 to vector<6x128xf32>
    %142 = arith.subf %141, %140 : vector<6x128xf32>
    %143 = math.exp %142 : vector<6x128xf32>
    %cst_81 = arith.constant 1.000000e+00 : f32
    %144 = vector.broadcast %cst_81 : f32 to vector<6x128xf32>
    %145 = arith.addf %144, %143 : vector<6x128xf32>
    %146 = tpu.reciprocal %145 {approx = true} : vector<6x128xf32> -> vector<6x128xf32>
    %147 = vector.extract_strided_slice %132 {offsets = [0, 0], sizes = [6, 128], strides = [1, 1]} : vector<6x256xf32> to vector<6x128xf32>
    %148 = arith.addf %147, %139 : vector<6x128xf32>
    %149 = arith.mulf %148, %146 : vector<6x128xf32>
    %150 = arith.truncf %149 : vector<6x128xf32> to vector<6x128xbf16>
    %c0_82 = arith.constant 0 : index
    %c0_83 = arith.constant 0 : index
    %151 = vector.load %arg32[%c0_82, %c0_83] : memref<128x64xbf16, #tpu.memory_space<vmem>>, vector<128x64xbf16>
    %cst_84 = arith.constant dense<0.000000e+00> : vector<6x64xf32>
    %152 = tpu.matmul %150, %151, %cst_84 {dimension_numbers = #tpu.dot_dimension_numbers<[1], [0], [0], [1], [0, 0, 1, 1], [], []>} : vector<6x128xbf16>, vector<128x64xbf16>, vector<6x64xf32> -> vector<6x64xf32>
    %c0_85 = arith.constant 0 : index
    %c0_86 = arith.constant 0 : index
    %153 = vector.load %arg34[%c0_85, %c0_86] : memref<1x64xf32, #tpu.memory_space<vmem>>, vector<1x64xf32>
    %154 = vector.broadcast %153 : vector<1x64xf32> to vector<6x64xf32>
    %155 = arith.addf %152, %154 : vector<6x64xf32>
    %156 = arith.truncf %155 : vector<6x64xf32> to vector<6x64xbf16>
    %c0_87 = arith.constant 0 : index
    %c0_88 = arith.constant 0 : index
    %157 = vector.load %arg33[%c0_87, %c0_88] : memref<64x64xbf16, #tpu.memory_space<vmem>>, vector<64x64xbf16>
    %cst_89 = arith.constant dense<0.000000e+00> : vector<6x64xf32>
    %158 = tpu.matmul %156, %157, %cst_89 {dimension_numbers = #tpu.dot_dimension_numbers<[1], [0], [0], [1], [0, 0, 1, 1], [], []>} : vector<6x64xbf16>, vector<64x64xbf16>, vector<6x64xf32> -> vector<6x64xf32>
    %c0_90 = arith.constant 0 : index
    %c0_91 = arith.constant 0 : index
    %159 = vector.load %arg35[%c0_90, %c0_91] : memref<1x64xf32, #tpu.memory_space<vmem>>, vector<1x64xf32>
    %160 = vector.broadcast %159 : vector<1x64xf32> to vector<6x64xf32>
    %161 = arith.addf %158, %160 : vector<6x64xf32>
    %162 = arith.addf %161, %155 : vector<6x64xf32>
    %cst_92 = arith.constant 0.000000e+00 : f32
    %163 = vector.broadcast %cst_92 : f32 to vector<6x64xf32>
    %164 = arith.maximumf %162, %163 : vector<6x64xf32>
    %165 = vector.extract_strided_slice %164 {offsets = [0, 0], sizes = [4, 64], strides = [1, 1]} : vector<6x64xf32> to vector<4x64xf32>
    %c0_93 = arith.constant 0 : index
    %c0_94 = arith.constant 0 : index
    %c0_95 = arith.constant 0 : index
    %166 = vector.load %arg43[%c0_93, %c0_94, %c0_95] : memref<3x64x256xbf16, #tpu.memory_space<vmem>>, vector<1x64x256xbf16>
    %167 = vector.shape_cast %166 : vector<1x64x256xbf16> to vector<64x256xbf16>
    %168 = arith.truncf %165 : vector<4x64xf32> to vector<4x64xbf16>
    %cst_96 = arith.constant dense<0.000000e+00> : vector<4x256xf32>
    %169 = tpu.matmul %168, %167, %cst_96 {dimension_numbers = #tpu.dot_dimension_numbers<[1], [0], [0], [1], [0, 0, 1, 1], [], []>} : vector<4x64xbf16>, vector<64x256xbf16>, vector<4x256xf32> -> vector<4x256xf32>
    %170 = vector.extract_strided_slice %164 {offsets = [1, 0], sizes = [4, 64], strides = [1, 1]} : vector<6x64xf32> to vector<4x64xf32>
    %c1_97 = arith.constant 1 : index
    %c0_98 = arith.constant 0 : index
    %c0_99 = arith.constant 0 : index
    %171 = vector.load %arg43[%c1_97, %c0_98, %c0_99] : memref<3x64x256xbf16, #tpu.memory_space<vmem>>, vector<1x64x256xbf16>
    %172 = vector.shape_cast %171 : vector<1x64x256xbf16> to vector<64x256xbf16>
    %173 = arith.truncf %170 : vector<4x64xf32> to vector<4x64xbf16>
    %cst_100 = arith.constant dense<0.000000e+00> : vector<4x256xf32>
    %174 = tpu.matmul %173, %172, %cst_100 {dimension_numbers = #tpu.dot_dimension_numbers<[1], [0], [0], [1], [0, 0, 1, 1], [], []>} : vector<4x64xbf16>, vector<64x256xbf16>, vector<4x256xf32> -> vector<4x256xf32>
    %175 = arith.addf %169, %174 : vector<4x256xf32>
    %176 = vector.extract_strided_slice %164 {offsets = [2, 0], sizes = [4, 64], strides = [1, 1]} : vector<6x64xf32> to vector<4x64xf32>
    %c2_101 = arith.constant 2 : index
    %c0_102 = arith.constant 0 : index
    %c0_103 = arith.constant 0 : index
    %177 = vector.load %arg43[%c2_101, %c0_102, %c0_103] : memref<3x64x256xbf16, #tpu.memory_space<vmem>>, vector<1x64x256xbf16>
    %178 = vector.shape_cast %177 : vector<1x64x256xbf16> to vector<64x256xbf16>
    %179 = arith.truncf %176 : vector<4x64xf32> to vector<4x64xbf16>
    %cst_104 = arith.constant dense<0.000000e+00> : vector<4x256xf32>
    %180 = tpu.matmul %179, %178, %cst_104 {dimension_numbers = #tpu.dot_dimension_numbers<[1], [0], [0], [1], [0, 0, 1, 1], [], []>} : vector<4x64xbf16>, vector<64x256xbf16>, vector<4x256xf32> -> vector<4x256xf32>
    %181 = arith.addf %175, %180 : vector<4x256xf32>
    %c0_105 = arith.constant 0 : index
    %c0_106 = arith.constant 0 : index
    %182 = vector.load %arg45[%c0_105, %c0_106] : memref<1x256xf32, #tpu.memory_space<vmem>>, vector<1x256xf32>
    %183 = vector.broadcast %182 : vector<1x256xf32> to vector<4x256xf32>
    %184 = arith.addf %181, %183 : vector<4x256xf32>
    %185 = vector.extract_strided_slice %164 {offsets = [2, 0], sizes = [4, 64], strides = [1, 1]} : vector<6x64xf32> to vector<4x64xf32>
    %186 = arith.truncf %185 : vector<4x64xf32> to vector<4x64xbf16>
    %c0_107 = arith.constant 0 : index
    %c0_108 = arith.constant 0 : index
    %187 = vector.load %arg42[%c0_107, %c0_108] : memref<64x128xbf16, #tpu.memory_space<vmem>>, vector<64x128xbf16>
    %cst_109 = arith.constant dense<0.000000e+00> : vector<4x128xf32>
    %188 = tpu.matmul %186, %187, %cst_109 {dimension_numbers = #tpu.dot_dimension_numbers<[1], [0], [0], [1], [0, 0, 1, 1], [], []>} : vector<4x64xbf16>, vector<64x128xbf16>, vector<4x128xf32> -> vector<4x128xf32>
    %c0_110 = arith.constant 0 : index
    %c0_111 = arith.constant 0 : index
    %189 = vector.load %arg44[%c0_110, %c0_111] : memref<1x128xf32, #tpu.memory_space<vmem>>, vector<1x128xf32>
    %190 = vector.broadcast %189 : vector<1x128xf32> to vector<4x128xf32>
    %191 = arith.addf %188, %190 : vector<4x128xf32>
    %192 = vector.extract_strided_slice %184 {offsets = [0, 128], sizes = [4, 128], strides = [1, 1]} : vector<4x256xf32> to vector<4x128xf32>
    %cst_112 = arith.constant 0.000000e+00 : f32
    %193 = vector.broadcast %cst_112 : f32 to vector<4x128xf32>
    %194 = arith.subf %193, %192 : vector<4x128xf32>
    %195 = math.exp %194 : vector<4x128xf32>
    %cst_113 = arith.constant 1.000000e+00 : f32
    %196 = vector.broadcast %cst_113 : f32 to vector<4x128xf32>
    %197 = arith.addf %196, %195 : vector<4x128xf32>
    %198 = tpu.reciprocal %197 {approx = true} : vector<4x128xf32> -> vector<4x128xf32>
    %199 = vector.extract_strided_slice %184 {offsets = [0, 0], sizes = [4, 128], strides = [1, 1]} : vector<4x256xf32> to vector<4x128xf32>
    %200 = arith.addf %199, %191 : vector<4x128xf32>
    %201 = arith.mulf %200, %198 : vector<4x128xf32>
    %cst_114 = arith.constant dense<0.000000e+00> : vector<4xf32>
    %202 = vector.multi_reduction <add>, %201, %cst_114 [1] : vector<4x128xf32> to vector<4xf32>
    %203 = vector.shape_cast %202 : vector<4xf32> to vector<4x1xf32>
    %cst_115 = arith.constant 1.280000e+02 : f32
    %204 = vector.broadcast %cst_115 : f32 to vector<4x1xf32>
    %205 = arith.divf %203, %204 : vector<4x1xf32>
    %206 = vector.broadcast %205 : vector<4x1xf32> to vector<4x128xf32>
    %207 = arith.subf %201, %206 : vector<4x128xf32>
    %208 = arith.mulf %207, %207 : vector<4x128xf32>
    %cst_116 = arith.constant dense<0.000000e+00> : vector<4xf32>
    %209 = vector.multi_reduction <add>, %208, %cst_116 [1] : vector<4x128xf32> to vector<4xf32>
    %210 = vector.shape_cast %209 : vector<4xf32> to vector<4x1xf32>
    %cst_117 = arith.constant 1.280000e+02 : f32
    %211 = vector.broadcast %cst_117 : f32 to vector<4x1xf32>
    %212 = arith.divf %210, %211 : vector<4x1xf32>
    %cst_118 = arith.constant 9.99999974E-6 : f32
    %213 = vector.broadcast %cst_118 : f32 to vector<4x1xf32>
    %214 = arith.addf %212, %213 : vector<4x1xf32>
    %215 = math.rsqrt %214 : vector<4x1xf32>
    %216 = vector.broadcast %215 : vector<4x1xf32> to vector<4x128xf32>
    %217 = arith.mulf %207, %216 : vector<4x128xf32>
    %c0_119 = arith.constant 0 : index
    %c0_120 = arith.constant 0 : index
    %218 = vector.load %arg37[%c0_119, %c0_120] : memref<1x128xf32, #tpu.memory_space<vmem>>, vector<1x128xf32>
    %219 = vector.broadcast %218 : vector<1x128xf32> to vector<4x128xf32>
    %220 = arith.mulf %217, %219 : vector<4x128xf32>
    %c0_121 = arith.constant 0 : index
    %c0_122 = arith.constant 0 : index
    %221 = vector.load %arg36[%c0_121, %c0_122] : memref<1x128xf32, #tpu.memory_space<vmem>>, vector<1x128xf32>
    %222 = vector.broadcast %221 : vector<1x128xf32> to vector<4x128xf32>
    %223 = arith.addf %220, %222 : vector<4x128xf32>
    %224 = vector.extract_strided_slice %223 {offsets = [0, 0], sizes = [1, 128], strides = [1, 1]} : vector<4x128xf32> to vector<1x128xf32>
    %c0_123 = arith.constant 0 : index
    %c0_124 = arith.constant 0 : index
    %c0_125 = arith.constant 0 : index
    %225 = vector.load %arg9[%c0_123, %c0_124, %c0_125] : memref<4x128x512xbf16, #tpu.memory_space<vmem>>, vector<1x128x512xbf16>
    %226 = vector.shape_cast %225 : vector<1x128x512xbf16> to vector<128x512xbf16>
    %227 = arith.truncf %224 : vector<1x128xf32> to vector<1x128xbf16>
    %cst_126 = arith.constant dense<0.000000e+00> : vector<1x512xf32>
    %228 = tpu.matmul %227, %226, %cst_126 {dimension_numbers = #tpu.dot_dimension_numbers<[1], [0], [0], [1], [0, 0, 1, 1], [], []>} : vector<1x128xbf16>, vector<128x512xbf16>, vector<1x512xf32> -> vector<1x512xf32>
    %229 = vector.extract_strided_slice %223 {offsets = [1, 0], sizes = [1, 128], strides = [1, 1]} : vector<4x128xf32> to vector<1x128xf32>
    %c1_127 = arith.constant 1 : index
    %c0_128 = arith.constant 0 : index
    %c0_129 = arith.constant 0 : index
    %230 = vector.load %arg9[%c1_127, %c0_128, %c0_129] : memref<4x128x512xbf16, #tpu.memory_space<vmem>>, vector<1x128x512xbf16>
    %231 = vector.shape_cast %230 : vector<1x128x512xbf16> to vector<128x512xbf16>
    %232 = arith.truncf %229 : vector<1x128xf32> to vector<1x128xbf16>
    %cst_130 = arith.constant dense<0.000000e+00> : vector<1x512xf32>
    %233 = tpu.matmul %232, %231, %cst_130 {dimension_numbers = #tpu.dot_dimension_numbers<[1], [0], [0], [1], [0, 0, 1, 1], [], []>} : vector<1x128xbf16>, vector<128x512xbf16>, vector<1x512xf32> -> vector<1x512xf32>
    %234 = arith.addf %228, %233 : vector<1x512xf32>
    %235 = vector.extract_strided_slice %223 {offsets = [2, 0], sizes = [1, 128], strides = [1, 1]} : vector<4x128xf32> to vector<1x128xf32>
    %c2_131 = arith.constant 2 : index
    %c0_132 = arith.constant 0 : index
    %c0_133 = arith.constant 0 : index
    %236 = vector.load %arg9[%c2_131, %c0_132, %c0_133] : memref<4x128x512xbf16, #tpu.memory_space<vmem>>, vector<1x128x512xbf16>
    %237 = vector.shape_cast %236 : vector<1x128x512xbf16> to vector<128x512xbf16>
    %238 = arith.truncf %235 : vector<1x128xf32> to vector<1x128xbf16>
    %cst_134 = arith.constant dense<0.000000e+00> : vector<1x512xf32>
    %239 = tpu.matmul %238, %237, %cst_134 {dimension_numbers = #tpu.dot_dimension_numbers<[1], [0], [0], [1], [0, 0, 1, 1], [], []>} : vector<1x128xbf16>, vector<128x512xbf16>, vector<1x512xf32> -> vector<1x512xf32>
    %240 = arith.addf %234, %239 : vector<1x512xf32>
    %241 = vector.extract_strided_slice %223 {offsets = [3, 0], sizes = [1, 128], strides = [1, 1]} : vector<4x128xf32> to vector<1x128xf32>
    %c3 = arith.constant 3 : index
    %c0_135 = arith.constant 0 : index
    %c0_136 = arith.constant 0 : index
    %242 = vector.load %arg9[%c3, %c0_135, %c0_136] : memref<4x128x512xbf16, #tpu.memory_space<vmem>>, vector<1x128x512xbf16>
    %243 = vector.shape_cast %242 : vector<1x128x512xbf16> to vector<128x512xbf16>
    %244 = arith.truncf %241 : vector<1x128xf32> to vector<1x128xbf16>
    %cst_137 = arith.constant dense<0.000000e+00> : vector<1x512xf32>
    %245 = tpu.matmul %244, %243, %cst_137 {dimension_numbers = #tpu.dot_dimension_numbers<[1], [0], [0], [1], [0, 0, 1, 1], [], []>} : vector<1x128xbf16>, vector<128x512xbf16>, vector<1x512xf32> -> vector<1x512xf32>
    %246 = arith.addf %240, %245 : vector<1x512xf32>
    %c0_138 = arith.constant 0 : index
    %c0_139 = arith.constant 0 : index
    %247 = vector.load %arg11[%c0_138, %c0_139] : memref<1x512xf32, #tpu.memory_space<vmem>>, vector<1x512xf32>
    %248 = arith.addf %246, %247 : vector<1x512xf32>
    %249 = vector.extract_strided_slice %223 {offsets = [3, 0], sizes = [1, 128], strides = [1, 1]} : vector<4x128xf32> to vector<1x128xf32>
    %250 = arith.truncf %249 : vector<1x128xf32> to vector<1x128xbf16>
    %c0_140 = arith.constant 0 : index
    %c0_141 = arith.constant 0 : index
    %251 = vector.load %arg8[%c0_140, %c0_141] : memref<128x256xbf16, #tpu.memory_space<vmem>>, vector<128x256xbf16>
    %cst_142 = arith.constant dense<0.000000e+00> : vector<1x256xf32>
    %252 = tpu.matmul %250, %251, %cst_142 {dimension_numbers = #tpu.dot_dimension_numbers<[1], [0], [0], [1], [0, 0, 1, 1], [], []>} : vector<1x128xbf16>, vector<128x256xbf16>, vector<1x256xf32> -> vector<1x256xf32>
    %c0_143 = arith.constant 0 : index
    %c0_144 = arith.constant 0 : index
    %253 = vector.load %arg10[%c0_143, %c0_144] : memref<1x256xf32, #tpu.memory_space<vmem>>, vector<1x256xf32>
    %254 = arith.addf %252, %253 : vector<1x256xf32>
    %255 = vector.extract_strided_slice %248 {offsets = [0, 256], sizes = [1, 256], strides = [1, 1]} : vector<1x512xf32> to vector<1x256xf32>
    %cst_145 = arith.constant 0.000000e+00 : f32
    %256 = vector.broadcast %cst_145 : f32 to vector<1x256xf32>
    %257 = arith.subf %256, %255 : vector<1x256xf32>
    %258 = math.exp %257 : vector<1x256xf32>
    %cst_146 = arith.constant 1.000000e+00 : f32
    %259 = vector.broadcast %cst_146 : f32 to vector<1x256xf32>
    %260 = arith.addf %259, %258 : vector<1x256xf32>
    %261 = tpu.reciprocal %260 {approx = true} : vector<1x256xf32> -> vector<1x256xf32>
    %262 = vector.extract_strided_slice %248 {offsets = [0, 0], sizes = [1, 256], strides = [1, 1]} : vector<1x512xf32> to vector<1x256xf32>
    %263 = arith.addf %262, %254 : vector<1x256xf32>
    %264 = arith.mulf %263, %261 : vector<1x256xf32>
    %cst_147 = arith.constant dense<0.000000e+00> : vector<1xf32>
    %265 = vector.multi_reduction <add>, %264, %cst_147 [1] : vector<1x256xf32> to vector<1xf32>
    %266 = vector.shape_cast %265 : vector<1xf32> to vector<1x1xf32>
    %cst_148 = arith.constant 2.560000e+02 : f32
    %267 = vector.broadcast %cst_148 : f32 to vector<1x1xf32>
    %268 = arith.divf %266, %267 : vector<1x1xf32>
    %269 = vector.broadcast %268 : vector<1x1xf32> to vector<1x256xf32>
    %270 = arith.subf %264, %269 : vector<1x256xf32>
    %271 = arith.mulf %270, %270 : vector<1x256xf32>
    %cst_149 = arith.constant dense<0.000000e+00> : vector<1xf32>
    %272 = vector.multi_reduction <add>, %271, %cst_149 [1] : vector<1x256xf32> to vector<1xf32>
    %273 = vector.shape_cast %272 : vector<1xf32> to vector<1x1xf32>
    %cst_150 = arith.constant 2.560000e+02 : f32
    %274 = vector.broadcast %cst_150 : f32 to vector<1x1xf32>
    %275 = arith.divf %273, %274 : vector<1x1xf32>
    %cst_151 = arith.constant 9.99999974E-6 : f32
    %276 = vector.broadcast %cst_151 : f32 to vector<1x1xf32>
    %277 = arith.addf %275, %276 : vector<1x1xf32>
    %278 = math.rsqrt %277 : vector<1x1xf32>
    %279 = vector.broadcast %278 : vector<1x1xf32> to vector<1x256xf32>
    %280 = arith.mulf %270, %279 : vector<1x256xf32>
    %c0_152 = arith.constant 0 : index
    %c0_153 = arith.constant 0 : index
    %281 = vector.load %arg7[%c0_152, %c0_153] : memref<1x256xf32, #tpu.memory_space<vmem>>, vector<1x256xf32>
    %282 = arith.mulf %280, %281 : vector<1x256xf32>
    %c0_154 = arith.constant 0 : index
    %c0_155 = arith.constant 0 : index
    %283 = vector.load %arg6[%c0_154, %c0_155] : memref<1x256xf32, #tpu.memory_space<vmem>>, vector<1x256xf32>
    %284 = arith.addf %282, %283 : vector<1x256xf32>
    %285 = arith.truncf %284 : vector<1x256xf32> to vector<1x256xbf16>
    %c0_156 = arith.constant 0 : index
    %c0_157 = arith.constant 0 : index
    %286 = vector.load %arg2[%c0_156, %c0_157] : memref<256x256xbf16, #tpu.memory_space<vmem>>, vector<256x256xbf16>
    %cst_158 = arith.constant dense<0.000000e+00> : vector<1x256xf32>
    %287 = tpu.matmul %285, %286, %cst_158 {dimension_numbers = #tpu.dot_dimension_numbers<[1], [0], [0], [1], [0, 0, 1, 1], [], []>} : vector<1x256xbf16>, vector<256x256xbf16>, vector<1x256xf32> -> vector<1x256xf32>
    %c0_159 = arith.constant 0 : index
    %c0_160 = arith.constant 0 : index
    %288 = vector.load %arg4[%c0_159, %c0_160] : memref<1x256xf32, #tpu.memory_space<vmem>>, vector<1x256xf32>
    %289 = arith.addf %287, %288 : vector<1x256xf32>
    %cst_161 = arith.constant 0.000000e+00 : f32
    %290 = vector.broadcast %cst_161 : f32 to vector<1x256xf32>
    %291 = arith.maximumf %289, %290 : vector<1x256xf32>
    %292 = arith.truncf %291 : vector<1x256xf32> to vector<1x256xbf16>
    %c0_162 = arith.constant 0 : index
    %c0_163 = arith.constant 0 : index
    %293 = vector.load %arg3[%c0_162, %c0_163] : memref<256x16xbf16, #tpu.memory_space<vmem>>, vector<256x16xbf16>
    %cst_164 = arith.constant dense<0.000000e+00> : vector<1x16xf32>
    %294 = tpu.matmul %292, %293, %cst_164 {dimension_numbers = #tpu.dot_dimension_numbers<[1], [0], [0], [1], [0, 0, 1, 1], [], []>} : vector<1x256xbf16>, vector<256x16xbf16>, vector<1x16xf32> -> vector<1x16xf32>
    %c0_165 = arith.constant 0 : index
    %c0_166 = arith.constant 0 : index
    %295 = vector.load %arg5[%c0_165, %c0_166] : memref<1x16xf32, #tpu.memory_space<vmem>>, vector<1x16xf32>
    %296 = arith.addf %294, %295 : vector<1x16xf32>
    %297 = arith.truncf %296 : vector<1x16xf32> to vector<1x16xbf16>
    %c0_167 = arith.constant 0 : index
    %c0_168 = arith.constant 0 : index
    %298 = vector.load %arg12[%c0_167, %c0_168] : memref<16x256xbf16, #tpu.memory_space<vmem>>, vector<16x256xbf16>
    %cst_169 = arith.constant dense<0.000000e+00> : vector<1x256xf32>
    %299 = tpu.matmul %297, %298, %cst_169 {dimension_numbers = #tpu.dot_dimension_numbers<[1], [0], [0], [1], [0, 0, 1, 1], [], []>} : vector<1x16xbf16>, vector<16x256xbf16>, vector<1x256xf32> -> vector<1x256xf32>
    %c0_170 = arith.constant 0 : index
    %c0_171 = arith.constant 0 : index
    %300 = vector.load %arg15[%c0_170, %c0_171] : memref<1x256xf32, #tpu.memory_space<vmem>>, vector<1x256xf32>
    %301 = arith.addf %299, %300 : vector<1x256xf32>
    %cst_172 = arith.constant 0.000000e+00 : f32
    %302 = vector.broadcast %cst_172 : f32 to vector<1x256xf32>
    %303 = arith.maximumf %301, %302 : vector<1x256xf32>
    %304 = arith.truncf %303 : vector<1x256xf32> to vector<1x256xbf16>
    %c0_173 = arith.constant 0 : index
    %c0_174 = arith.constant 0 : index
    %305 = vector.load %arg13[%c0_173, %c0_174] : memref<256x128xbf16, #tpu.memory_space<vmem>>, vector<256x128xbf16>
    %cst_175 = arith.constant dense<0.000000e+00> : vector<1x128xf32>
    %306 = tpu.matmul %304, %305, %cst_175 {dimension_numbers = #tpu.dot_dimension_numbers<[1], [0], [0], [1], [0, 0, 1, 1], [], []>} : vector<1x256xbf16>, vector<256x128xbf16>, vector<1x128xf32> -> vector<1x128xf32>
    %c0_176 = arith.constant 0 : index
    %c0_177 = arith.constant 0 : index
    %307 = vector.load %arg16[%c0_176, %c0_177] : memref<1x128xf32, #tpu.memory_space<vmem>>, vector<1x128xf32>
    %308 = arith.addf %306, %307 : vector<1x128xf32>
    %cst_178 = arith.constant 0.000000e+00 : f32
    %309 = vector.broadcast %cst_178 : f32 to vector<1x128xf32>
    %310 = arith.maximumf %308, %309 : vector<1x128xf32>
    %311 = arith.truncf %310 : vector<1x128xf32> to vector<1x128xbf16>
    %c0_179 = arith.constant 0 : index
    %c0_180 = arith.constant 0 : index
    %312 = vector.load %arg14[%c0_179, %c0_180] : memref<128x16xbf16, #tpu.memory_space<vmem>>, vector<128x16xbf16>
    %cst_181 = arith.constant dense<0.000000e+00> : vector<1x16xf32>
    %313 = tpu.matmul %311, %312, %cst_181 {dimension_numbers = #tpu.dot_dimension_numbers<[1], [0], [0], [1], [0, 0, 1, 1], [], []>} : vector<1x128xbf16>, vector<128x16xbf16>, vector<1x16xf32> -> vector<1x16xf32>
    %c0_182 = arith.constant 0 : index
    %c0_183 = arith.constant 0 : index
    %314 = vector.load %arg17[%c0_182, %c0_183] : memref<1x16xf32, #tpu.memory_space<vmem>>, vector<1x16xf32>
    %315 = arith.addf %313, %314 : vector<1x16xf32>
    %c0_184 = arith.constant 0 : index
    %c0_185 = arith.constant 0 : index
    %c0_186 = arith.constant 0 : index
    %316 = vector.load %arg46[%c0_184, %c0_185, %c0_186] : memref<1x1x16xf32, #tpu.memory_space<vmem>>, vector<1x1x16xf32>
    %317 = vector.shape_cast %316 : vector<1x1x16xf32> to vector<1x16xf32>
    %318 = vector.shape_cast %315 : vector<1x16xf32> to vector<1x1x16xf32>
    tpu.vector_store %arg46[%c0_184, %c0_185, %c0_186], %318 {strides = array<i32>} : memref<1x1x16xf32, #tpu.memory_space<vmem>>, vector<1x1x16xf32>,
    return
  }
  func.func @transform_0(%arg0: i32) -> (i32, i32, i32) {
    %c0_i32 = arith.constant 0 : i32
    %c0_i32_0 = arith.constant 0 : i32
    %c0_i32_1 = arith.constant 0 : i32
    return %arg0, %c0_i32, %c0_i32_0 : i32, i32, i32
  }
  func.func @transform_1(%arg0: i32) -> (i32, i32) {
    %c0_i32 = arith.constant 0 : i32
    %c0_i32_0 = arith.constant 0 : i32
    %c0_i32_1 = arith.constant 0 : i32
    return %c0_i32, %c0_i32_0 : i32, i32
  }
  func.func @transform_2(%arg0: i32) -> (i32, i32) {
    %c0_i32 = arith.constant 0 : i32
    %c0_i32_0 = arith.constant 0 : i32
    %c0_i32_1 = arith.constant 0 : i32
    return %c0_i32, %c0_i32_0 : i32, i32
  }
  func.func @transform_3(%arg0: i32) -> (i32, i32) {
    %c0_i32 = arith.constant 0 : i32
    %c0_i32_0 = arith.constant 0 : i32
    %c0_i32_1 = arith.constant 0 : i32
    return %c0_i32, %c0_i32_0 : i32, i32
  }
  func.func @transform_4(%arg0: i32) -> (i32, i32) {
    %c0_i32 = arith.constant 0 : i32
    %c0_i32_0 = arith.constant 0 : i32
    %c0_i32_1 = arith.constant 0 : i32
    return %c0_i32, %c0_i32_0 : i32, i32
  }
  func.func @transform_5(%arg0: i32) -> (i32, i32) {
    %c0_i32 = arith.constant 0 : i32
    %c0_i32_0 = arith.constant 0 : i32
    %c0_i32_1 = arith.constant 0 : i32
    return %c0_i32, %c0_i32_0 : i32, i32
  }
  func.func @transform_6(%arg0: i32) -> (i32, i32) {
    %c0_i32 = arith.constant 0 : i32
    %c0_i32_0 = arith.constant 0 : i32
    %c0_i32_1 = arith.constant 0 : i32
    return %c0_i32, %c0_i32_0 : i32, i32
  }
  func.func @transform_7(%arg0: i32) -> (i32, i32) {
    %c0_i32 = arith.constant 0 : i32
    %c0_i32_0 = arith.constant 0 : i32
    %c0_i32_1 = arith.constant 0 : i32
    return %c0_i32, %c0_i32_0 : i32, i32
  }
  func.func @transform_8(%arg0: i32) -> (i32, i32, i32) {
    %c0_i32 = arith.constant 0 : i32
    %c0_i32_0 = arith.constant 0 : i32
    %c0_i32_1 = arith.constant 0 : i32
    %c0_i32_2 = arith.constant 0 : i32
    return %c0_i32, %c0_i32_0, %c0_i32_1 : i32, i32, i32
  }
  func.func @transform_9(%arg0: i32) -> (i32, i32) {
    %c0_i32 = arith.constant 0 : i32
    %c0_i32_0 = arith.constant 0 : i32
    %c0_i32_1 = arith.constant 0 : i32
    return %c0_i32, %c0_i32_0 : i32, i32
  }
  func.func @transform_10(%arg0: i32) -> (i32, i32) {
    %c0_i32 = arith.constant 0 : i32
    %c0_i32_0 = arith.constant 0 : i32
    %c0_i32_1 = arith.constant 0 : i32
    return %c0_i32, %c0_i32_0 : i32, i32
  }
  func.func @transform_11(%arg0: i32) -> (i32, i32) {
    %c0_i32 = arith.constant 0 : i32
    %c0_i32_0 = arith.constant 0 : i32
    %c0_i32_1 = arith.constant 0 : i32
    return %c0_i32, %c0_i32_0 : i32, i32
  }
  func.func @transform_12(%arg0: i32) -> (i32, i32) {
    %c0_i32 = arith.constant 0 : i32
    %c0_i32_0 = arith.constant 0 : i32
    %c0_i32_1 = arith.constant 0 : i32
    return %c0_i32, %c0_i32_0 : i32, i32
  }
  func.func @transform_13(%arg0: i32) -> (i32, i32) {
    %c0_i32 = arith.constant 0 : i32
    %c0_i32_0 = arith.constant 0 : i32
    %c0_i32_1 = arith.constant 0 : i32
    return %c0_i32, %c0_i32_0 : i32, i32
  }
  func.func @transform_14(%arg0: i32) -> (i32, i32) {
    %c0_i32 = arith.constant 0 : i32
    %c0_i32_0 = arith.constant 0 : i32
    %c0_i32_1 = arith.constant 0 : i32
    return %c0_i32, %c0_i32_0 : i32, i32
  }
  func.func @transform_15(%arg0: i32) -> (i32, i32) {
    %c0_i32 = arith.constant 0 : i32
    %c0_i32_0 = arith.constant 0 : i32
    %c0_i32_1 = arith.constant 0 : i32
    return %c0_i32, %c0_i32_0 : i32, i32
  }
  func.func @transform_16(%arg0: i32) -> (i32, i32) {
    %c0_i32 = arith.constant 0 : i32
    %c0_i32_0 = arith.constant 0 : i32
    %c0_i32_1 = arith.constant 0 : i32
    return %c0_i32, %c0_i32_0 : i32, i32
  }
  func.func @transform_17(%arg0: i32) -> (i32, i32) {
    %c0_i32 = arith.constant 0 : i32
    %c0_i32_0 = arith.constant 0 : i32
    %c0_i32_1 = arith.constant 0 : i32
    return %c0_i32, %c0_i32_0 : i32, i32
  }
  func.func @transform_18(%arg0: i32) -> (i32, i32) {
    %c0_i32 = arith.constant 0 : i32
    %c0_i32_0 = arith.constant 0 : i32
    %c0_i32_1 = arith.constant 0 : i32
    return %c0_i32, %c0_i32_0 : i32, i32
  }
  func.func @transform_19(%arg0: i32) -> (i32, i32) {
    %c0_i32 = arith.constant 0 : i32
    %c0_i32_0 = arith.constant 0 : i32
    %c0_i32_1 = arith.constant 0 : i32
    return %c0_i32, %c0_i32_0 : i32, i32
  }
  func.func @transform_20(%arg0: i32) -> (i32, i32) {
    %c0_i32 = arith.constant 0 : i32
    %c0_i32_0 = arith.constant 0 : i32
    %c0_i32_1 = arith.constant 0 : i32
    return %c0_i32, %c0_i32_0 : i32, i32
  }
  func.func @transform_21(%arg0: i32) -> (i32, i32) {
    %c0_i32 = arith.constant 0 : i32
    %c0_i32_0 = arith.constant 0 : i32
    %c0_i32_1 = arith.constant 0 : i32
    return %c0_i32, %c0_i32_0 : i32, i32
  }
  func.func @transform_22(%arg0: i32) -> (i32, i32) {
    %c0_i32 = arith.constant 0 : i32
    %c0_i32_0 = arith.constant 0 : i32
    %c0_i32_1 = arith.constant 0 : i32
    return %c0_i32, %c0_i32_0 : i32, i32
  }
  func.func @transform_23(%arg0: i32) -> (i32, i32) {
    %c0_i32 = arith.constant 0 : i32
    %c0_i32_0 = arith.constant 0 : i32
    %c0_i32_1 = arith.constant 0 : i32
    return %c0_i32, %c0_i32_0 : i32, i32
  }
  func.func @transform_24(%arg0: i32) -> (i32, i32, i32) {
    %c0_i32 = arith.constant 0 : i32
    %c0_i32_0 = arith.constant 0 : i32
    %c0_i32_1 = arith.constant 0 : i32
    %c0_i32_2 = arith.constant 0 : i32
    return %c0_i32, %c0_i32_0, %c0_i32_1 : i32, i32, i32
  }
  func.func @transform_25(%arg0: i32) -> (i32, i32) {
    %c0_i32 = arith.constant 0 : i32
    %c0_i32_0 = arith.constant 0 : i32
    %c0_i32_1 = arith.constant 0 : i32
    return %c0_i32, %c0_i32_0 : i32, i32
  }
  func.func @transform_26(%arg0: i32) -> (i32, i32) {
    %c0_i32 = arith.constant 0 : i32
    %c0_i32_0 = arith.constant 0 : i32
    %c0_i32_1 = arith.constant 0 : i32
    return %c0_i32, %c0_i32_0 : i32, i32
  }
  func.func @transform_27(%arg0: i32) -> (i32, i32) {
    %c0_i32 = arith.constant 0 : i32
    %c0_i32_0 = arith.constant 0 : i32
    %c0_i32_1 = arith.constant 0 : i32
    return %c0_i32, %c0_i32_0 : i32, i32
  }
  func.func @transform_28(%arg0: i32) -> (i32, i32, i32) {
    %c0_i32 = arith.constant 0 : i32
    %c0_i32_0 = arith.constant 0 : i32
    %c0_i32_1 = arith.constant 0 : i32
    %c0_i32_2 = arith.constant 0 : i32
    return %c0_i32, %c0_i32_0, %c0_i32_1 : i32, i32, i32
  }
  func.func @transform_29(%arg0: i32) -> (i32, i32) {
    %c0_i32 = arith.constant 0 : i32
    %c0_i32_0 = arith.constant 0 : i32
    %c0_i32_1 = arith.constant 0 : i32
    return %c0_i32, %c0_i32_0 : i32, i32
  }
  func.func @transform_30(%arg0: i32) -> (i32, i32) {
    %c0_i32 = arith.constant 0 : i32
    %c0_i32_0 = arith.constant 0 : i32
    %c0_i32_1 = arith.constant 0 : i32
    return %c0_i32, %c0_i32_0 : i32, i32
  }
  func.func @transform_31(%arg0: i32) -> (i32, i32) {
    %c0_i32 = arith.constant 0 : i32
    %c0_i32_0 = arith.constant 0 : i32
    %c0_i32_1 = arith.constant 0 : i32
    return %c0_i32, %c0_i32_0 : i32, i32
  }
  func.func @transform_32(%arg0: i32) -> (i32, i32) {
    %c0_i32 = arith.constant 0 : i32
    %c0_i32_0 = arith.constant 0 : i32
    %c0_i32_1 = arith.constant 0 : i32
    return %c0_i32, %c0_i32_0 : i32, i32
  }
  func.func @transform_33(%arg0: i32) -> (i32, i32) {
    %c0_i32 = arith.constant 0 : i32
    %c0_i32_0 = arith.constant 0 : i32
    %c0_i32_1 = arith.constant 0 : i32
    return %c0_i32, %c0_i32_0 : i32, i32
  }
  func.func @transform_34(%arg0: i32) -> (i32, i32) {
    %c0_i32 = arith.constant 0 : i32
    %c0_i32_0 = arith.constant 0 : i32
    %c0_i32_1 = arith.constant 0 : i32
    return %c0_i32, %c0_i32_0 : i32, i32
  }
  func.func @transform_35(%arg0: i32) -> (i32, i32) {
    %c0_i32 = arith.constant 0 : i32
    %c0_i32_0 = arith.constant 0 : i32
    %c0_i32_1 = arith.constant 0 : i32
    return %c0_i32, %c0_i32_0 : i32, i32
  }
  func.func @transform_36(%arg0: i32) -> (i32, i32) {
    %c0_i32 = arith.constant 0 : i32
    %c0_i32_0 = arith.constant 0 : i32
    %c0_i32_1 = arith.constant 0 : i32
    return %c0_i32, %c0_i32_0 : i32, i32
  }
  func.func @transform_37(%arg0: i32) -> (i32, i32) {
    %c0_i32 = arith.constant 0 : i32
    %c0_i32_0 = arith.constant 0 : i32
    %c0_i32_1 = arith.constant 0 : i32
    return %c0_i32, %c0_i32_0 : i32, i32
  }
  func.func @transform_38(%arg0: i32) -> (i32, i32, i32) {
    %c0_i32 = arith.constant 0 : i32
    %c0_i32_0 = arith.constant 0 : i32
    %c0_i32_1 = arith.constant 0 : i32
    %c0_i32_2 = arith.constant 0 : i32
    return %c0_i32, %c0_i32_0, %c0_i32_1 : i32, i32, i32
  }
  func.func @transform_39(%arg0: i32) -> (i32, i32) {
    %c0_i32 = arith.constant 0 : i32
    %c0_i32_0 = arith.constant 0 : i32
    %c0_i32_1 = arith.constant 0 : i32
    return %c0_i32, %c0_i32_0 : i32, i32
  }
  func.func @transform_40(%arg0: i32) -> (i32, i32) {
    %c0_i32 = arith.constant 0 : i32
    %c0_i32_0 = arith.constant 0 : i32
    %c0_i32_1 = arith.constant 0 : i32
    return %c0_i32, %c0_i32_0 : i32, i32
  }
  func.func @transform_41(%arg0: i32) -> (i32, i32) {
    %c0_i32 = arith.constant 0 : i32
    %c0_i32_0 = arith.constant 0 : i32
    %c0_i32_1 = arith.constant 0 : i32
    return %c0_i32, %c0_i32_0 : i32, i32
  }
  func.func @transform_42(%arg0: i32) -> (i32, i32, i32) {
    %c0_i32 = arith.constant 0 : i32
    %c0_i32_0 = arith.constant 0 : i32
    %c0_i32_1 = arith.constant 0 : i32
    %c0_i32_2 = arith.constant 0 : i32
    return %c0_i32, %c0_i32_0, %c0_i32_1 : i32, i32, i32
  }
  func.func @transform_43(%arg0: i32) -> (i32, i32) {
    %c0_i32 = arith.constant 0 : i32
    %c0_i32_0 = arith.constant 0 : i32
    %c0_i32_1 = arith.constant 0 : i32
    return %c0_i32, %c0_i32_0 : i32, i32
  }
  func.func @transform_44(%arg0: i32) -> (i32, i32) {
    %c0_i32 = arith.constant 0 : i32
    %c0_i32_0 = arith.constant 0 : i32
    %c0_i32_1 = arith.constant 0 : i32
    return %c0_i32, %c0_i32_0 : i32, i32
  }
  func.func @transform_45(%arg0: i32) -> (i32, i32, i32) {
    %c0_i32 = arith.constant 0 : i32
    %c0_i32_0 = arith.constant 0 : i32
    %c0_i32_1 = arith.constant 0 : i32
    return %arg0, %c0_i32, %c0_i32_0 : i32, i32, i32
  }
}

</mosaic_0001>

<bundles_post_ra>
// kernel: forward.1
= control target key start
LH: loop header
LB: loop body
LE: loop exit
PB: predicated region body
PF: predicated region fallthrough
CT: control target
= control target key end

     0   :  { %s8638_s6 = smov 1   ;;  %s8639_s10 = smov 2   ;;  %s9505_s0 = inlined_call_operand.smem [shape: u32[46], index: -1, kind: input, shape index: {}] }
   0x1   :  { %s8727_s5 = sld [smem:[%s9505_s0]]   ;;  %s8640_s14 = smov 3  }
   0x2   :  { %s8732_s9 = sld [smem:[%s9505_s0 + %s8638_s6]]   ;;  %s8641_s18 = smov 4  }
   0x3   :  { %s8737_s13 = sld [smem:[%s9505_s0 + %s8639_s10]]   ;;  %s8642_s22 = smov 5  }
   0x4   :  { %s8742_s17 = sld [smem:[%s9505_s0 + %s8640_s14]]   ;;  %s8643_s26 = smov 6  }
   0x5   :  { %s8747_s21 = sld [smem:[%s9505_s0 + %s8641_s18]]   ;;  %s8644_s30 = smov 7  }
   0x6   :  { %s8752_s25 = sld [smem:[%s9505_s0 + %s8642_s22]]   ;;  %s8645_s4 = smov 8  }
   0x7   :  { %9526 = sst [smem:[#allocation59_spill]] %s8727_s5  ;;  %s8646_s10 = smov 9  }
   0x8   :  { %9527 = sst [smem:[#allocation60_spill]] %s8732_s9  ;;  %s8647_s15 = smov 10  }
   0x9   :  { %9528 = sst [smem:[#allocation61_spill]] %s8737_s13  ;;  %s8648_s20 = smov 11  }
   0xa   :  { %9529 = sst [smem:[#allocation62_spill]] %s8742_s17  ;;  %s8650_s1 = smov 13  }
   0xb   :  { %9530 = sst [smem:[#allocation63_spill]] %s8747_s21  ;;  %s8651_s7 = smov 14  }
   0xc   :  { %9531 = sst [smem:[#allocation64_spill]] %s8752_s25  ;;  %s8653_s22 = smov 16  }
   0xd   :  { %s8757_s29 = sld [smem:[%s9505_s0 + %s8643_s26]]   ;;  %s8649_s26 = smov 12  }
   0xe   :  { %s8762_s3 = sld [smem:[%s9505_s0 + %s8644_s30]]   ;;  %s8654_s28 = smov 17  }
   0xf   :  { %s8767_s8 = sld [smem:[%s9505_s0 + %s8645_s4]]  }
  0x10   :  { %s8772_s14 = sld [smem:[%s9505_s0 + %s8646_s10]]  }
  0x11   :  { %s8777_s19 = sld [smem:[%s9505_s0 + %s8647_s15]]   ;;  %s8652_s15 = smov 15  }
  0x12   :  { %s8782_s24 = sld [smem:[%s9505_s0 + %s8648_s20]]  }
  0x13   :  { %9532 = sst [smem:[#allocation65_spill]] %s8757_s29 }
  0x14   :  { %9533 = sst [smem:[#allocation66_spill]] %s8762_s3 }
  0x15   :  { %s8787_s30 = sld [smem:[%s9505_s0 + %s8649_s26]]  }
  0x16   :  { %9534 = sst [smem:[#allocation67_spill]] %s8772_s14 }
  0x17   :  { %9535 = sst [smem:[#allocation68_spill]] %s8777_s19 }
  0x18   :  { %9536 = sst [smem:[#allocation69_spill]] %s8782_s24 }
  0x19   :  { %s8792_s6 = sld [smem:[%s9505_s0 + %s8650_s1]]  }
  0x1a   :  { %s8797_s12 = sld [smem:[%s9505_s0 + %s8651_s7]]   ;;  %s8655_s7 = smov 18  }
  0x1b   :  { %s8802_s20 = sld [smem:[%s9505_s0 + %s8652_s15]]   ;;  %s8656_s15 = smov 19  }
  0x1c   :  { %s8807_s27 = sld [smem:[%s9505_s0 + %s8653_s22]]   ;;  %s8657_s22 = smov 20  }
  0x1d   :  { %s8812_s4 = sld [smem:[%s9505_s0 + %s8654_s28]]   ;;  %s8658_s28 = smov 21  }
  0x1e   :  { %s8817_s21 = sld [smem:[%s9505_s0 + %s8655_s7]]   ;;  %s8659_s7 = smov 22  }
  0x1f   :  { %9537 = sst [smem:[#allocation70_spill]] %s8792_s6 }
  0x20   :  { %9538 = sst [smem:[#allocation71_spill]] %s8797_s12 }
  0x21   :  { %9539 = sst [smem:[#allocation72_spill]] %s8802_s20 }
  0x22   :  { %9540 = sst [smem:[#allocation73_spill]] %s8807_s27 }
  0x23   :  { %9541 = sst [smem:[#allocation74_spill]] %s8812_s4 }
  0x24   :  { %9542 = sst [smem:[#allocation75_spill]] %s8817_s21 }
  0x25   :  { %s8822_s17 = sld [smem:[%s9505_s0 + %s8656_s15]]   ;;  %s8660_s15 = smov 23  }
  0x26   :  { %s8827_s27 = sld [smem:[%s9505_s0 + %s8657_s22]]   ;;  %s8661_s22 = smov 24  }
  0x27   :  { %s8832_s25 = sld [smem:[%s9505_s0 + %s8658_s28]]   ;;  %s8662_s28 = smov 25  }
  0x28   :  { %s8837_s29 = sld [smem:[%s9505_s0 + %s8659_s7]]   ;;  %s8663_s7 = smov 26  }
  0x29   :  { %s8842_s13 = sld [smem:[%s9505_s0 + %s8660_s15]]   ;;  %s8664_s15 = smov 27  }
  0x2a   :  { %s8847_s14 = sld [smem:[%s9505_s0 + %s8661_s22]]   ;;  %s8665_s22 = smov 28  }
  0x2b   :  { %s8867_s5 = sld [smem:[%s9505_s0 + %s8665_s22]]   ;;  %s8669_s22 = smov 32  }
  0x2c   :  { %9543 = sst [smem:[#allocation76_spill]] %s8827_s27 }
  0x2d   :  { %9544 = sst [smem:[#allocation77_spill]] %s8832_s25 }
  0x2e   :  { %9545 = sst [smem:[#allocation78_spill]] %s8837_s29 }
  0x2f   :  { %9546 = sst [smem:[#allocation79_spill]] %s8842_s13 }
  0x30   :  { %s8852_s25 = sld [smem:[%s9505_s0 + %s8662_s28]]   ;;  %s8666_s28 = smov 29  }
  0x31   :  { %s8857_s29 = sld [smem:[%s9505_s0 + %s8663_s7]]   ;;  %s8667_s7 = smov 30  }
  0x32   :  { %s8862_s13 = sld [smem:[%s9505_s0 + %s8664_s15]]   ;;  %s8668_s15 = smov 31  }
  0x33   :  { %9550 = sst [smem:[#allocation83_spill]] %s8867_s5 }
  0x34   :  { %s8887_s27 = sld [smem:[%s9505_s0 + %s8669_s22]]   ;;  %s8673_s22 = smov 36  }
  0x36   :  { %9547 = sst [smem:[#allocation80_spill]] %s8852_s25 }
  0x37   :  { %9548 = sst [smem:[#allocation81_spill]] %s8857_s29 }
  0x38   :  { %9549 = sst [smem:[#allocation82_spill]] %s8862_s13 }
  0x39   :  { %s8872_s25 = sld [smem:[%s9505_s0 + %s8666_s28]]   ;;  %s8670_s28 = smov 33  }
  0x3a   :  { %s8877_s29 = sld [smem:[%s9505_s0 + %s8667_s7]]   ;;  %s8671_s7 = smov 34  }
  0x3b   :  { %s8882_s13 = sld [smem:[%s9505_s0 + %s8668_s15]]   ;;  %s8672_s15 = smov 35  }
  0x3c   :  { %9553 = sst [smem:[#allocation86_spill]] %s8887_s27 }
  0x3d   :  { %s8902_s21 = sld [smem:[%s9505_s0 + %s8672_s15]]   ;;  %s8676_s15 = smov 39  }
  0x3e   :  { %s8907_s27 = sld [smem:[%s9505_s0 + %s8673_s22]]   ;;  %s8677_s22 = smov 40  }
  0x3f   :  { %9551 = sst [smem:[#allocation84_spill]] %s8872_s25 }
  0x40   :  { %9552 = sst [smem:[#allocation85_spill]] %s8877_s29 }
  0x41   :  { %s8892_s25 = sld [smem:[%s9505_s0 + %s8670_s28]]   ;;  %s8674_s28 = smov 37  }
  0x42   :  { %s8897_s29 = sld [smem:[%s9505_s0 + %s8671_s7]]   ;;  %s8675_s7 = smov 38  }
  0x43   :  { %9555 = sst [smem:[#allocation88_spill]] %s8902_s21 }
  0x44   :  { %9556 = sst [smem:[#allocation89_spill]] %s8907_s27 }
  0x45   :  { %s8912_s20 = sld [smem:[%s9505_s0 + %s8674_s28]]   ;;  %s8678_s28 = smov 41  }
  0x46   :  { %s8922_s21 = sld [smem:[%s9505_s0 + %s8676_s15]]   ;;  %s8680_s15 = smov 43  }
  0x47   :  { %s8927_s27 = sld [smem:[%s9505_s0 + %s8677_s22]]   ;;  %s8681_s22 = smov 44  }
  0x48   :  { %9554 = sst [smem:[#allocation87_spill]] %s8897_s29 }
  0x49   :  { %s8917_s29 = sld [smem:[%s9505_s0 + %s8675_s7]]   ;;  %s8679_s7 = smov 42  }
  0x4a   :  { %s8932_s6 = sld [smem:[%s9505_s0 + %s8678_s28]]   ;;  %s8682_s28 = smov 45  }
  0x4b   :  { %s8947_s24 = sld [smem:[%s9505_s0 + %s8681_s22]]  }
  0x4c   :  { %9558 = sst [smem:[#allocation91_spill]] %s8922_s21 }
  0x4d   :  { %s8942_s21 = sld [smem:[%s9505_s0 + %s8680_s15]]  }
  0x4f   :  { %9557 = sst [smem:[#allocation90_spill]] %s8917_s29 }
  0x50   :  { %9559 = sst [smem:[#allocation92_spill]] %s8932_s6 }
  0x51   :  { %s8937_s29 = sld [smem:[%s9505_s0 + %s8679_s7]]  }
  0x52   :  { %s8952_s6 = sld [smem:[%s9505_s0 + %s8682_s28]]  }
  0x53   :  { %96 = vsyncpa [#allocation3], 0 }
  0x54   :  { %97 = vsyncpa [#allocation6], 0 }
  0x55   :  { %98 = vsyncpa [#allocation9], 0 }
  0x56   :  { %99 = vsyncpa [#allocation12], 0 }
  0x57   :  { %100 = vsyncpa [#allocation15], 0 }
  0x58   :  { %101 = vsyncpa [#allocation18], 0 }
  0x59   :  { %102 = vsyncpa [#allocation21], 0 }
  0x5a   :  { %103 = vsyncpa [#allocation24], 0 }
  0x5b   :  { %104 = vsyncpa [#allocation27], 0 }
  0x5c   :  { %105 = vsyncpa [#allocation30], 0 }
  0x5d   :  { %106 = vsyncpa [#allocation33], 0 }
  0x5e   :  { %107 = vsyncpa [#allocation36], 0 }
  0x5f   :  { %108 = vsyncpa [#allocation39], 0 }
  0x60   :  { %109 = vsyncpa [#allocation42], 0 }
  0x61   :  { %110 = vsyncpa [#allocation4], 0 }
  0x62   :  { %112 = vsyncpa [#allocation4 + $0x1], 0  ;;  %s8954_s7 = smov 0   ;;  %s8956_s0 = smov 0  }
  0x63   :  { %s8958_s10 = smov 0   ;;  %s8960_s11 = smov 0  }
  0x64 LB: > { %9560 = sst [smem:[#allocation93_spill]] %s8624_s7  ;;  %s8975_s15 = sadd.s32 4294967295, %s8636_s11   ;;  %s8636_s11 = sphi %s8960_s11, %s9642_s11   ;;  %s8632_s10 = sphi %s8958_s10, %s9647_s10   ;;  %s8628_s0 = sphi %s8956_s0, %s9646_s0   ;;  %s8624_s7 = sphi %s8954_s7, %s9645_s7  }
  0x65   : > { %9561 = sst [smem:[#allocation94_spill]] %s8632_s10  ;;  %s6269_s16 = sadd.s32 4294967294, %s8636_s11  }
  0x66   : > { %9562 = sst [smem:[#allocation95_spill]] %s8636_s11  ;;  %s8979_s18 = sadd.s32 1, %s8636_s11  }
  0x67   : > { %9563 = sst [smem:[#allocation96_spill]] %s8979_s18  ;;  %s1075_s22 = sadd.s32 1, %s8632_s10 }
  0x68   : > { %s1072_s23 = ssub.s32 %s8636_s11, %s8979_s18  ;;  %p1085_p0 = scmp.ne.s32.totalorder %s8632_s10, %s8628_s0 }
  0x69   : > { %p1073_p1 = scmp.eq.s32.totalorder %s1072_s23, 0  ;;  %p1086_p2 = scmp.eq.s32.totalorder %s8975_s15, 1 }
  0x6a   : > { %p1091_p3 = scmp.ne.s32.totalorder %s8628_s0, %s8624_s7  ;;  %p1092_p4 = scmp.eq.s32.totalorder %s6269_s16, 1 }
  0x6b   : > { %s8990_s26 = scalar_select %p1073_p1, %s8632_s10, %s1075_s22  }
  0x6c   : > { %p8992_p5 = por %p1086_p2, %p1085_p0  ;;  %p8996_p6 = por %p1092_p4, %p1091_p3 }
  0x6d   : > { %9564 = sst [smem:[#allocation97_spill]] %s8990_s26  ;;  %p6270_p7 = scmp.ge.s32.totalorder %s8636_s11, 1 }
  0x6e   : > { %s9565_s28 = scalar_select %p8992_p5, 1, 0 }
  0x6f   : > { %s9566_s1 = scalar_select %p8996_p6, 1, 0 }
  0x70   : > { %p1099_p8 = scmp.lt.s32.totalorder %s8636_s11, 3  ;;  %p9515_p9 = scmp.eq.s32.totalorder %s8975_s15, 0 }
  0x71   : > { %9567 = sst [smem:[#allocation98_spill]] %s9566_s1  ;;  %s8683_s16 = smov [#allocation5]  }
  0x72   : > { %p9003_p10 = pnand %p6270_p7, %p1099_p8  ;;  %s1139_s22 = sshll.u32 %s8683_s16, 4  ;;  %s1140_s22 = int_to_ptr.vmem [resolvable:$true] %s1139_s22 }
  0x73   : > { %s8684_s26 = smov [#allocation8]   ;;  %s8685_s18 = smov [#allocation11]  }
  0x74   : > { %s9568_s2 = scalar_select %p9003_p10, 1, 0 }
  0x75   : > { %p7061_p11 = pneg %p9003_p10  ;;  %s1169_s10 = sshll.u32 %s8684_s26, 4  ;;  %s1170_s10 = int_to_ptr.vmem [resolvable:$true] %s1169_s10 }
  0x76   : > { %s1192_s1 = sshll.u32 %s8685_s18, 4  ;;  %s7855_s11 = scalar_lea.vmem %s1140_s22, 2048  ;;  %s1193_s1 = int_to_ptr.vmem [resolvable:$true] %s1192_s1 }
  0x77   : > { %p9011_p12 = pnand %p9515_p9, %p7061_p11  ;;  %p7856_p0 = scmp.ne.s32.totalorder %s1140_s22, %s7855_s11 }
  0x78   : > { %p7863_p3 = scmp.lt.s32.totalorder %s1140_s22, %s1140_s22  ;;  %p7864_p4 = scmp.lt.s32.totalorder %s7855_s11, %s7855_s11 }
  0x79   : > { %p9017_p13 = pneg %p9011_p12 }
  0x7a   : > { %p7865_p7 = por %p7864_p4, %p7863_p3 }
  0x7b   : > { %p7858_p1 = pnand %p7856_p0, %p9017_p13 }
  0x7d   : > { %p7859_p2 = pneg %p7858_p1 }
  0x7f   : > { %p7866_p8 = pnand %p7865_p7, %p7859_p2 }
  0x81   : > { %7869 = shalt.err (!%p7866_p8)
}
  0x82   : > { %s9518_s26 = smov 128   ;;  %s9571_s3 = sld [smem:[#allocation66_spill]] }
  0x83   : > { %s9520_s18 = smov 8   ;;  %s7881_s16 = scalar_lea.vmem %s1170_s10, 64 }
  0x84   : > { %p7882_p11 = scmp.ne.s32.totalorder %s1170_s10, %s7881_s16  ;;  %p7889_p9 = scmp.lt.s32.totalorder %s1170_s10, %s1170_s10 }
  0x85   : > { %p7890_p6 = scmp.lt.s32.totalorder %s7881_s16, %s7881_s16 }
  0x86   : > { %p7884_p0 = pnand %p7882_p11, %p9017_p13 }
  0x87   : > { %p7891_p3 = por %p7890_p6, %p7889_p9 }
  0x88   : > { %7067 = dma.hbm_to_vmem [thread:$0]  (!%p9011_p12), %s9571_s3, 2048, %s1140_s22, [#allocation6], %s9518_s26, %s9518_s26, %s9520_s18  }
  0x89   : > { %p7885_p1 = pneg %p7884_p0 }
  0x8b   : > { %p7892_p2 = pnand %p7891_p3, %p7885_p1 }
  0x8d   : > { %7895 = shalt.err (!%p7892_p2)
}
  0x8e   : > { %s9572_s19 = sld [smem:[#allocation68_spill]]  ;;  %s7907_s11 = scalar_lea.vmem %s1193_s1, 2048 }
  0x8f   : > { %p7908_p4 = scmp.ne.s32.totalorder %s1193_s1, %s7907_s11  ;;  %p7915_p5 = scmp.lt.s32.totalorder %s1193_s1, %s1193_s1 }
  0x90   : > { %p7916_p10 = scmp.lt.s32.totalorder %s7907_s11, %s7907_s11 }
  0x91   : > { %p7910_p7 = pnand %p7908_p4, %p9017_p13 }
  0x92   : > { %p7917_p11 = por %p7916_p10, %p7915_p5 }
  0x93   : > { %p7911_p8 = pneg %p7910_p7 }
  0x94   : > { %7073 = dma.hbm_to_vmem [thread:$0]  (!%p9011_p12), %s9572_s19, 64, %s1170_s10, [#allocation9]  }
  0x95   : > { %p7918_p0 = pnand %p7917_p11, %p7911_p8 }
  0x97   : > { %7921 = shalt.err (!%p7918_p0)
}
  0x98   : > { %s9522_s22 = smov 64   ;;  %s9524_s16 = smov 4  }
  0x99   : > { %7079 = dma.hbm_to_vmem [thread:$0]  (!%p9011_p12), %s8787_s30, 2048, %s1193_s1, [#allocation12], %s9522_s22, %s9522_s22, %s9524_s16  }
  0x9a   : > { %s8690_s10 = smov [#allocation14]   ;;  %s8691_s18 = smov [#allocation17]  }
  0x9b   : > { %s1219_s26 = sshll.u32 %s8690_s10, 4  ;;  %s1243_s3 = sshll.u32 %s8691_s18, 4  ;;  %s1220_s26 = int_to_ptr.vmem [resolvable:$true] %s1219_s26  ;;  %s1244_s3 = int_to_ptr.vmem [resolvable:$true] %s1243_s3 }
  0x9c   : > { %s7933_s19 = scalar_lea.vmem %s1220_s26, 32  ;;  %p7941_p10 = scmp.lt.s32.totalorder %s1220_s26, %s1220_s26 }
  0x9d   : > { %p7934_p6 = scmp.ne.s32.totalorder %s1220_s26, %s7933_s19  ;;  %p7942_p1 = scmp.lt.s32.totalorder %s7933_s19, %s7933_s19 }
  0x9f   : > { %p7936_p5 = pnand %p7934_p6, %p9017_p13  ;;  %p7943_p3 = por %p7942_p1, %p7941_p10 }
  0xa1   : > { %p7937_p9 = pneg %p7936_p5 }
  0xa3   : > { %p7944_p2 = pnand %p7943_p3, %p7937_p9 }
  0xa5   : > { %7947 = shalt.err (!%p7944_p2)
}
  0xa6   : > { %s9573_s12 = sld [smem:[#allocation71_spill]]  ;;  %s7959_s1 = scalar_lea.vmem %s1244_s3, 1024 }
  0xa7   : > { %p7960_p4 = scmp.ne.s32.totalorder %s1244_s3, %s7959_s1  ;;  %p7967_p11 = scmp.lt.s32.totalorder %s1244_s3, %s1244_s3 }
  0xa8   : > { %p7968_p0 = scmp.lt.s32.totalorder %s7959_s1, %s7959_s1 }
  0xa9   : > { %p7962_p7 = pnand %p7960_p4, %p9017_p13 }
  0xaa   : > { %p7969_p6 = por %p7968_p0, %p7967_p11 }
  0xab   : > { %p7963_p8 = pneg %p7962_p7 }
  0xac   : > { %7085 = dma.hbm_to_vmem [thread:$0]  (!%p9011_p12), %s9573_s12, 32, %s1220_s26, [#allocation15]  }
  0xad   : > { %p7970_p5 = pnand %p7969_p6, %p7963_p8 }
  0xaf   : > { %7973 = shalt.err (!%p7970_p5)
}
  0xb0   : > { %s9574_s4 = sld [smem:[#allocation74_spill]]  ;;  %s8692_s19 = smov [#allocation20]  }
  0xb1   : > { %s1270_s26 = sshll.u32 %s8692_s19, 4  ;;  %s8693_s18 = smov [#allocation23]   ;;  %s1271_s26 = int_to_ptr.vmem [resolvable:$true] %s1270_s26 }
  0xb2   : > { %s1300_s11 = sshll.u32 %s8693_s18, 4  ;;  %s7985_s10 = scalar_lea.vmem %s1271_s26, 16  ;;  %s1301_s11 = int_to_ptr.vmem [resolvable:$true] %s1300_s11 }
  0xb3   : > { %p7986_p9 = scmp.ne.s32.totalorder %s1271_s26, %s7985_s10  ;;  %s7992_s1 = scalar_lea.vmem %s1271_s26, 32 }
  0xb4   : > { %p7993_p3 = scmp.lt.s32.totalorder %s1271_s26, %s1271_s26  ;;  %p7994_p2 = scmp.lt.s32.totalorder %s7992_s1, %s7985_s10 }
  0xb5   : > { %p7988_p10 = pnand %p7986_p9, %p9017_p13 }
  0xb6   : > { %7091 = dma.hbm_to_vmem [thread:$0]  (!%p9011_p12), %s9574_s4, 1024, %s1244_s3, [#allocation18], %s9522_s22, %s9522_s22, %s9524_s16  }
  0xb7   : > { %p7989_p1 = pneg %p7988_p10  ;;  %p7995_p4 = por %p7994_p2, %p7993_p3 }
  0xb9   : > { %p7996_p7 = pnand %p7995_p4, %p7989_p1 }
  0xbb   : > { %7999 = shalt.err (!%p7996_p7)
}
  0xbc   : > { %7097 = dma.hbm_to_vmem [thread:$0]  (!%p9011_p12), %s8822_s17, 16, %s1271_s26, [#allocation21]  }
  0xbd   : > { %s8011_s3 = scalar_lea.vmem %s1301_s11, 768  ;;  %p8019_p6 = scmp.lt.s32.totalorder %s1301_s11, %s1301_s11 }
  0xbe   : > { %p8012_p8 = scmp.ne.s32.totalorder %s1301_s11, %s8011_s3  ;;  %p8020_p5 = scmp.lt.s32.totalorder %s8011_s3, %s8011_s3 }
  0xc0   : > { %p8014_p11 = pnand %p8012_p8, %p9017_p13  ;;  %p8021_p9 = por %p8020_p5, %p8019_p6 }
  0xc2   : > { %p8015_p0 = pneg %p8014_p11 }
  0xc4   : > { %p8022_p10 = pnand %p8021_p9, %p8015_p0 }
  0xc6   : > { %8025 = shalt.err (!%p8022_p10)
}
  0xc7   : > { %s9575_s19 = smov 8   ;;  %s9576_s18 = smov 128  }
  0xc8   : > { %7103 = dma.hbm_to_vmem [thread:$0]  (!%p9011_p12), %s8847_s14, 768, %s1301_s11, [#allocation24], %s9576_s18, %s9576_s18, %s9575_s19  }
  0xc9   : > { %s8694_s26 = smov [#allocation26]   ;;  %s8695_s1 = smov [#allocation29]  }
  0xca   : > { %s1330_s10 = sshll.u32 %s8694_s26, 4  ;;  %s1357_s22 = sshll.u32 %s8695_s1, 4  ;;  %s1331_s10 = int_to_ptr.vmem [resolvable:$true] %s1330_s10  ;;  %s1358_s22 = int_to_ptr.vmem [resolvable:$true] %s1357_s22 }
  0xcb   : > { %s8037_s16 = scalar_lea.vmem %s1331_s10, 3072  ;;  %p8045_p4 = scmp.lt.s32.totalorder %s1331_s10, %s1331_s10 }
  0xcc   : > { %p8038_p1 = scmp.ne.s32.totalorder %s1331_s10, %s8037_s16  ;;  %p8046_p7 = scmp.lt.s32.totalorder %s8037_s16, %s8037_s16 }
  0xce   : > { %p8040_p3 = pnand %p8038_p1, %p9017_p13  ;;  %p8047_p8 = por %p8046_p7, %p8045_p4 }
  0xd0   : > { %p8041_p2 = pneg %p8040_p3 }
  0xd2   : > { %p8048_p11 = pnand %p8047_p8, %p8041_p2 }
  0xd4   : > { %8051 = shalt.err (!%p8048_p11)
}
  0xd5   : > { %s9577_s5 = sld [smem:[#allocation83_spill]]  ;;  %s8063_s11 = scalar_lea.vmem %s1358_s22, 1024 }
  0xd6   : > { %p8064_p0 = scmp.ne.s32.totalorder %s1358_s22, %s8063_s11  ;;  %p8071_p9 = scmp.lt.s32.totalorder %s1358_s22, %s1358_s22 }
  0xd7   : > { %p8072_p10 = scmp.lt.s32.totalorder %s8063_s11, %s8063_s11 }
  0xd8   : > { %p8066_p6 = pnand %p8064_p0, %p9017_p13 }
  0xd9   : > { %p8073_p1 = por %p8072_p10, %p8071_p9 }
  0xda   : > { %p8067_p5 = pneg %p8066_p6 }
  0xdb   : > { %7109 = dma.hbm_to_vmem [thread:$0]  (!%p9011_p12), %s9577_s5, 3072, %s1331_s10, [#allocation27], %s9576_s18, %s9576_s18, %s9575_s19  }
  0xdc   : > { %p8074_p3 = pnand %p8073_p1, %p8067_p5 }
  0xde   : > { %8077 = shalt.err (!%p8074_p3)
}
  0xdf   : > { %s9578_s16 = smov 4   ;;  %s9579_s3 = smov 64  }
  0xe0   : > { %7115 = dma.hbm_to_vmem [thread:$0]  (!%p9011_p12), %s8882_s13, 1024, %s1358_s22, [#allocation30], %s9579_s3, %s9579_s3, %s9578_s16  }
  0xe1   : > { %s8696_s26 = smov [#allocation32]   ;;  %s8697_s1 = smov [#allocation35]  }
  0xe2   : > { %s1384_s10 = sshll.u32 %s8696_s26, 4  ;;  %s1411_s4 = sshll.u32 %s8697_s1, 4  ;;  %s1385_s10 = int_to_ptr.vmem [resolvable:$true] %s1384_s10  ;;  %s1412_s4 = int_to_ptr.vmem [resolvable:$true] %s1411_s4 }
  0xe3   : > { %s8089_s5 = scalar_lea.vmem %s1385_s10, 16  ;;  %s8096_s11 = scalar_lea.vmem %s1385_s10, 32 }
  0xe4   : > { %p8090_p2 = scmp.ne.s32.totalorder %s1385_s10, %s8089_s5  ;;  %p8097_p8 = scmp.lt.s32.totalorder %s1385_s10, %s1385_s10 }
  0xe5   : > { %p8098_p11 = scmp.lt.s32.totalorder %s8096_s11, %s8089_s5 }
  0xe6   : > { %p8092_p4 = pnand %p8090_p2, %p9017_p13 }
  0xe7   : > { %p8099_p0 = por %p8098_p11, %p8097_p8 }
  0xe8   : > { %p8093_p7 = pneg %p8092_p4 }
  0xea   : > { %p8100_p6 = pnand %p8099_p0, %p8093_p7 }
  0xec   : > { %8103 = shalt.err (!%p8100_p6)
}
  0xed   : > { %7121 = dma.hbm_to_vmem [thread:$0]  (!%p9011_p12), %s8892_s25, 16, %s1385_s10, [#allocation33]  }
  0xee   : > { %s8115_s22 = scalar_lea.vmem %s1412_s4, 1024  ;;  %p8123_p1 = scmp.lt.s32.totalorder %s1412_s4, %s1412_s4 }
  0xef   : > { %p8116_p5 = scmp.ne.s32.totalorder %s1412_s4, %s8115_s22  ;;  %p8124_p3 = scmp.lt.s32.totalorder %s8115_s22, %s8115_s22 }
  0xf1   : > { %p8118_p9 = pnand %p8116_p5, %p9017_p13  ;;  %p8125_p2 = por %p8124_p3, %p8123_p1 }
  0xf3   : > { %p8119_p10 = pneg %p8118_p9 }
  0xf5   : > { %p8126_p4 = pnand %p8125_p2, %p8119_p10 }
  0xf7   : > { %8129 = shalt.err (!%p8126_p4)
}
  0xf8   : > { %7127 = dma.hbm_to_vmem [thread:$0]  (!%p9011_p12), %s8912_s20, 1024, %s1412_s4, [#allocation36], %s9579_s3, %s9579_s3, %s9578_s16  }
  0xf9   : > { %s8698_s5 = smov [#allocation38]   ;;  %s8699_s10 = smov [#allocation2]  }
  0xfa   : > { %s1441_s26 = sshll.u32 %s8698_s5, 4  ;;  %s1111_s1 = sshll.u32 %s8699_s10, 4  ;;  %s1442_s26 = int_to_ptr.vmem [resolvable:$true] %s1441_s26  ;;  %s1112_s1 = int_to_ptr.vmem [resolvable:$true] %s1111_s1 }
  0xfb   : > { %s8141_s11 = scalar_lea.vmem %s1442_s26, 32  ;;  %p8149_p0 = scmp.lt.s32.totalorder %s1442_s26, %s1442_s26 }
  0xfc   : > { %p8142_p7 = scmp.ne.s32.totalorder %s1442_s26, %s8141_s11  ;;  %p8150_p6 = scmp.lt.s32.totalorder %s8141_s11, %s8141_s11 }
  0xfe   : > { %p8144_p8 = pnand %p8142_p7, %p9017_p13  ;;  %p8151_p5 = por %p8150_p6, %p8149_p0 }
 0x100   : > { %p8145_p11 = pneg %p8144_p8 }
 0x102   : > { %p8152_p9 = pnand %p8151_p5, %p8145_p11 }
 0x104   : > { %8155 = shalt.err (!%p8152_p9)
}
 0x105   : > { %7133 = dma.hbm_to_vmem [thread:$0]  (!%p9011_p12), %s8927_s27, 32, %s1442_s26, [#allocation39]  }
 0x106   : > { %s8167_s4 = scalar_lea.vmem %s1112_s1, 4096  ;;  %p8175_p2 = scmp.lt.s32.totalorder %s1112_s1, %s1112_s1 }
 0x107   : > { %p8168_p10 = scmp.ne.s32.totalorder %s1112_s1, %s8167_s4  ;;  %p8176_p4 = scmp.lt.s32.totalorder %s8167_s4, %s8167_s4 }
 0x109   : > { %p8170_p1 = pnand %p8168_p10, %p9017_p13  ;;  %p8177_p7 = por %p8176_p4, %p8175_p2 }
 0x10b   : > { %p8171_p3 = pneg %p8170_p1 }
 0x10d   : > { %p8178_p8 = pnand %p8177_p7, %p8171_p3 }
 0x10f   : > { %8181 = shalt.err (!%p8178_p8)
}
 0x110   : > { %s9580_s9 = sld [smem:[#allocation60_spill]]  ;;  %s8700_s22 = smov [#allocation7]  }
 0x111   : > { %s1152_s5 = sshll.u32 %s8700_s22, 4  ;;  %s1153_s5 = int_to_ptr.vmem [resolvable:$true] %s1152_s5 }
 0x112   : > { %s8193_s26 = scalar_lea.vmem %s1153_s5, 16384  ;;  %p8201_p5 = scmp.lt.s32.totalorder %s1153_s5, %s1153_s5 }
 0x113   : > { %p8194_p11 = scmp.ne.s32.totalorder %s1153_s5, %s8193_s26  ;;  %p8202_p9 = scmp.lt.s32.totalorder %s8193_s26, %s8193_s26 }
 0x115   : > { %p8196_p0 = pnand %p8194_p11, %p9017_p13  ;;  %p8203_p10 = por %p8202_p9, %p8201_p5 }
 0x116   : > { %7064 = dma.hbm_to_vmem [thread:$0]  (!%p9011_p12), %s9580_s9, 4096, %s1112_s1, [#allocation3], %s9576_s18, %s9576_s18, %s9575_s19  }
 0x117   : > { %p8197_p6 = pneg %p8196_p0 }
 0x119   : > { %p8204_p1 = pnand %p8203_p10, %p8197_p6 }
 0x11b   : > { %8207 = shalt.err (!%p8204_p1)
}
 0x11c   : > { %s8701_s10 = smov 256   ;;  %s8702_s11 = smov 16  }
 0x11d   : > { %7070 = dma.hbm_to_vmem [thread:$0]  (!%p9011_p12), %s8767_s8, 16384, %s1153_s5, [#allocation6], %s8701_s10, %s8701_s10, %s8702_s11  }
 0x11e   : > { %s8703_s1 = smov [#allocation10]   ;;  %s8704_s22 = smov [#allocation13]  }
 0x11f   : > { %s1179_s4 = sshll.u32 %s8703_s1, 4  ;;  %s1205_s9 = sshll.u32 %s8704_s22, 4  ;;  %s1180_s4 = int_to_ptr.vmem [resolvable:$true] %s1179_s4  ;;  %s1206_s9 = int_to_ptr.vmem [resolvable:$true] %s1205_s9 }
 0x120   : > { %s8219_s12 = scalar_lea.vmem %s1180_s4, 256  ;;  %p8227_p7 = scmp.lt.s32.totalorder %s1180_s4, %s1180_s4 }
 0x121   : > { %p8220_p3 = scmp.ne.s32.totalorder %s1180_s4, %s8219_s12  ;;  %p8228_p8 = scmp.lt.s32.totalorder %s8219_s12, %s8219_s12 }
 0x123   : > { %p8222_p2 = pnand %p8220_p3, %p9017_p13  ;;  %p8229_p11 = por %p8228_p8, %p8227_p7 }
 0x125   : > { %p8223_p4 = pneg %p8222_p2 }
 0x127   : > { %p8230_p0 = pnand %p8229_p11, %p8223_p4 }
 0x129   : > { %8233 = shalt.err (!%p8230_p0)
}
 0x12a   : > { %s9581_s5 = sld [smem:[#allocation69_spill]]  ;;  %s8245_s26 = scalar_lea.vmem %s1206_s9, 1024 }
 0x12b   : > { %p8246_p6 = scmp.ne.s32.totalorder %s1206_s9, %s8245_s26  ;;  %p8253_p10 = scmp.lt.s32.totalorder %s1206_s9, %s1206_s9 }
 0x12c   : > { %p8254_p1 = scmp.lt.s32.totalorder %s8245_s26, %s8245_s26 }
 0x12d   : > { %p8248_p5 = pnand %p8246_p6, %p9017_p13 }
 0x12e   : > { %p8255_p3 = por %p8254_p1, %p8253_p10 }
 0x12f   : > { %p8249_p9 = pneg %p8248_p5 }
 0x130   : > { %7076 = dma.hbm_to_vmem [thread:$0]  (!%p9011_p12), %s9581_s5, 256, %s1180_s4, [#allocation9], %s9576_s18, %s9576_s18, %s9575_s19  }
 0x131   : > { %p8256_p2 = pnand %p8255_p3, %p8249_p9 }
 0x133   : > { %8259 = shalt.err (!%p8256_p2)
}
 0x134   : > { %s9582_s12 = sld [smem:[#allocation70_spill]]  ;;  %s8705_s10 = smov [#allocation16]  }
 0x135   : > { %s1230_s11 = sshll.u32 %s8705_s10, 4  ;;  %s8706_s1 = smov [#allocation19]   ;;  %s1231_s11 = int_to_ptr.vmem [resolvable:$true] %s1230_s11 }
 0x136   : > { %s1256_s4 = sshll.u32 %s8706_s1, 4  ;;  %s8271_s22 = scalar_lea.vmem %s1231_s11, 16  ;;  %s1257_s4 = int_to_ptr.vmem [resolvable:$true] %s1256_s4 }
 0x137   : > { %p8272_p4 = scmp.ne.s32.totalorder %s1231_s11, %s8271_s22  ;;  %s8278_s5 = scalar_lea.vmem %s1231_s11, 32 }
 0x138   : > { %p8279_p11 = scmp.lt.s32.totalorder %s1231_s11, %s1231_s11  ;;  %p8280_p0 = scmp.lt.s32.totalorder %s8278_s5, %s8271_s22 }
 0x139   : > { %p8274_p7 = pnand %p8272_p4, %p9017_p13 }
 0x13a   : > { %7082 = dma.hbm_to_vmem [thread:$0]  (!%p9011_p12), %s9582_s12, 1024, %s1206_s9, [#allocation12], %s9579_s3, %s9579_s3, %s9578_s16  }
 0x13b   : > { %p8275_p8 = pneg %p8274_p7  ;;  %p8281_p6 = por %p8280_p0, %p8279_p11 }
 0x13d   : > { %p8282_p5 = pnand %p8281_p6, %p8275_p8 }
 0x13f   : > { %8285 = shalt.err (!%p8282_p5)
}
 0x140   : > { %s9583_s9 = sld [smem:[#allocation72_spill]]  ;;  %s8297_s26 = scalar_lea.vmem %s1257_s4, 512 }
 0x141   : > { %p8298_p9 = scmp.ne.s32.totalorder %s1257_s4, %s8297_s26  ;;  %p8305_p3 = scmp.lt.s32.totalorder %s1257_s4, %s1257_s4 }
 0x142   : > { %p8306_p2 = scmp.lt.s32.totalorder %s8297_s26, %s8297_s26 }
 0x143   : > { %p8300_p10 = pnand %p8298_p9, %p9017_p13 }
 0x144   : > { %p8307_p4 = por %p8306_p2, %p8305_p3 }
 0x145   : > { %p8301_p1 = pneg %p8300_p10 }
 0x146   : > { %7088 = dma.hbm_to_vmem [thread:$0]  (!%p9011_p12), %s9583_s9, 16, %s1231_s11, [#allocation15]  }
 0x147   : > { %p8308_p7 = pnand %p8307_p4, %p8301_p1 }
 0x149   : > { %8311 = shalt.err (!%p8308_p7)
}
 0x14a   : > { %s9584_s12 = sld [smem:[#allocation75_spill]]  ;;  %s8707_s10 = smov [#allocation22]  }
 0x14b   : > { %s1281_s11 = sshll.u32 %s8707_s10, 4  ;;  %s8708_s1 = smov [#allocation25]   ;;  %s1282_s11 = int_to_ptr.vmem [resolvable:$true] %s1281_s11 }
 0x14c   : > { %s1317_s22 = sshll.u32 %s8708_s1, 4  ;;  %s8323_s5 = scalar_lea.vmem %s1282_s11, 16  ;;  %s1318_s22 = int_to_ptr.vmem [resolvable:$true] %s1317_s22 }
 0x14d   : > { %p8324_p8 = scmp.ne.s32.totalorder %s1282_s11, %s8323_s5  ;;  %s8330_s9 = scalar_lea.vmem %s1282_s11, 32 }
 0x14e   : > { %p8331_p6 = scmp.lt.s32.totalorder %s1282_s11, %s1282_s11  ;;  %p8332_p5 = scmp.lt.s32.totalorder %s8330_s9, %s8323_s5 }
 0x14f   : > { %p8326_p11 = pnand %p8324_p8, %p9017_p13 }
 0x150   : > { %7094 = dma.hbm_to_vmem [thread:$0]  (!%p9011_p12), %s9584_s12, 512, %s1257_s4, [#allocation18], %s9579_s3, %s9579_s3, %s9578_s16  }
 0x151   : > { %p8327_p0 = pneg %p8326_p11  ;;  %p8333_p9 = por %p8332_p5, %p8331_p6 }
 0x153   : > { %p8334_p10 = pnand %p8333_p9, %p8327_p0 }
 0x155   : > { %8337 = shalt.err (!%p8334_p10)
}
 0x156   : > { %s9585_s4 = sld [smem:[#allocation76_spill]]  ;;  %s8349_s26 = scalar_lea.vmem %s1318_s22, 32 }
 0x157   : > { %p8350_p1 = scmp.ne.s32.totalorder %s1318_s22, %s8349_s26  ;;  %p8357_p4 = scmp.lt.s32.totalorder %s1318_s22, %s1318_s22 }
 0x158   : > { %p8358_p7 = scmp.lt.s32.totalorder %s8349_s26, %s8349_s26 }
 0x159   : > { %p8352_p3 = pnand %p8350_p1, %p9017_p13 }
 0x15a   : > { %p8359_p8 = por %p8358_p7, %p8357_p4 }
 0x15b   : > { %p8353_p2 = pneg %p8352_p3 }
 0x15c   : > { %7100 = dma.hbm_to_vmem [thread:$0]  (!%p9011_p12), %s9585_s4, 16, %s1282_s11, [#allocation21]  }
 0x15d   : > { %p8360_p11 = pnand %p8359_p8, %p8353_p2 }
 0x15f   : > { %8363 = shalt.err (!%p8360_p11)
}
 0x160   : > { %s9586_s12 = sld [smem:[#allocation81_spill]]  ;;  %s8709_s10 = smov [#allocation28]  }
 0x161   : > { %s1347_s1 = sshll.u32 %s8709_s10, 4  ;;  %s8710_s5 = smov [#allocation31]   ;;  %s1348_s1 = int_to_ptr.vmem [resolvable:$true] %s1347_s1 }
 0x162   : > { %s1370_s9 = sshll.u32 %s8710_s5, 4  ;;  %s8375_s11 = scalar_lea.vmem %s1348_s1, 32  ;;  %s1371_s9 = int_to_ptr.vmem [resolvable:$true] %s1370_s9 }
 0x163   : > { %p8376_p0 = scmp.ne.s32.totalorder %s1348_s1, %s8375_s11  ;;  %p8383_p9 = scmp.lt.s32.totalorder %s1348_s1, %s1348_s1 }
 0x164   : > { %p8384_p10 = scmp.lt.s32.totalorder %s8375_s11, %s8375_s11 }
 0x165   : > { %p8378_p6 = pnand %p8376_p0, %p9017_p13 }
 0x166   : > { %7106 = dma.hbm_to_vmem [thread:$0]  (!%p9011_p12), %s9586_s12, 32, %s1318_s22, [#allocation24]  }
 0x167   : > { %p8379_p5 = pneg %p8378_p6  ;;  %p8385_p1 = por %p8384_p10, %p8383_p9 }
 0x169   : > { %p8386_p3 = pnand %p8385_p1, %p8379_p5 }
 0x16b   : > { %8389 = shalt.err (!%p8386_p3)
}
 0x16c   : > { %s9587_s4 = sld [smem:[#allocation85_spill]]  ;;  %s8401_s22 = scalar_lea.vmem %s1371_s9, 512 }
 0x16d   : > { %p8402_p2 = scmp.ne.s32.totalorder %s1371_s9, %s8401_s22  ;;  %p8409_p8 = scmp.lt.s32.totalorder %s1371_s9, %s1371_s9 }
 0x16e   : > { %p8410_p11 = scmp.lt.s32.totalorder %s8401_s22, %s8401_s22 }
 0x16f   : > { %p8404_p4 = pnand %p8402_p2, %p9017_p13 }
 0x170   : > { %p8411_p0 = por %p8410_p11, %p8409_p8 }
 0x171   : > { %p8405_p7 = pneg %p8404_p4 }
 0x172   : > { %7112 = dma.hbm_to_vmem [thread:$0]  (!%p9011_p12), %s9587_s4, 32, %s1348_s1, [#allocation27]  }
 0x173   : > { %p8412_p6 = pnand %p8411_p0, %p8405_p7 }
 0x175   : > { %8415 = shalt.err (!%p8412_p6)
}
 0x176   : > { %s9588_s26 = sld [smem:[#allocation86_spill]]  ;;  %s8711_s12 = smov [#allocation34]  }
 0x177   : > { %s1395_s10 = sshll.u32 %s8711_s12, 4  ;;  %s8712_s1 = smov [#allocation37]   ;;  %s1396_s10 = int_to_ptr.vmem [resolvable:$true] %s1395_s10 }
 0x178   : > { %s1424_s5 = sshll.u32 %s8712_s1, 4  ;;  %s8427_s11 = scalar_lea.vmem %s1396_s10, 16  ;;  %s1425_s5 = int_to_ptr.vmem [resolvable:$true] %s1424_s5 }
 0x179   : > { %p8428_p5 = scmp.ne.s32.totalorder %s1396_s10, %s8427_s11  ;;  %s8434_s4 = scalar_lea.vmem %s1396_s10, 32 }
 0x17a   : > { %p8435_p1 = scmp.lt.s32.totalorder %s1396_s10, %s1396_s10  ;;  %p8436_p3 = scmp.lt.s32.totalorder %s8434_s4, %s8427_s11 }
 0x17b   : > { %p8430_p9 = pnand %p8428_p5, %p9017_p13 }
 0x17c   : > { %7118 = dma.hbm_to_vmem [thread:$0]  (!%p9011_p12), %s9588_s26, 512, %s1371_s9, [#allocation30], %s9579_s3, %s9579_s3, %s9578_s16  }
 0x17d   : > { %p8431_p10 = pneg %p8430_p9  ;;  %p8437_p2 = por %p8436_p3, %p8435_p1 }
 0x17f   : > { %p8438_p4 = pnand %p8437_p2, %p8431_p10 }
 0x181   : > { %8441 = shalt.err (!%p8438_p4)
}
 0x182   : > { %s9589_s16 = sld [smem:[#allocation87_spill]]  ;;  %s8453_s3 = scalar_lea.vmem %s1425_s5, 6144 }
 0x183   : > { %p8454_p7 = scmp.ne.s32.totalorder %s1425_s5, %s8453_s3  ;;  %p8461_p0 = scmp.lt.s32.totalorder %s1425_s5, %s1425_s5 }
 0x184   : > { %p8462_p6 = scmp.lt.s32.totalorder %s8453_s3, %s8453_s3 }
 0x185   : > { %p8456_p8 = pnand %p8454_p7, %p9017_p13 }
 0x186   : > { %p8463_p5 = por %p8462_p6, %p8461_p0 }
 0x187   : > { %p8457_p11 = pneg %p8456_p8 }
 0x188   : > { %7124 = dma.hbm_to_vmem [thread:$0]  (!%p9011_p12), %s9589_s16, 16, %s1396_s10, [#allocation33]  }
 0x189   : > { %p8464_p9 = pnand %p8463_p5, %p8457_p11 }
 0x18b   : > { %8467 = shalt.err (!%p8464_p9)
}
 0x18c   : > { %s9590_s9 = sld [smem:[#allocation90_spill]]  ;;  %s8713_s22 = smov [#allocation40]  }
 0x18d   : > { %s1454_s26 = sshll.u32 %s8713_s22, 4  ;;  %s8714_s12 = smov [#allocation41]   ;;  %s1455_s26 = int_to_ptr.vmem [resolvable:$true] %s1454_s26 }
 0x18e   : > { %s1471_s10 = sshll.u32 %s8714_s12, 4  ;;  %s8479_s1 = scalar_lea.vmem %s1455_s26, 3072  ;;  %s1472_s10 = int_to_ptr.vmem [resolvable:$true] %s1471_s10 }
 0x18f   : > { %p8480_p10 = scmp.ne.s32.totalorder %s1455_s26, %s8479_s1  ;;  %p8487_p2 = scmp.lt.s32.totalorder %s1455_s26, %s1455_s26 }
 0x190   : > { %p8488_p4 = scmp.lt.s32.totalorder %s8479_s1, %s8479_s1 }
 0x191   : > { %p8482_p1 = pnand %p8480_p10, %p9017_p13 }
 0x192   : > { %7130 = dma.hbm_to_vmem [thread:$0]  (!%p9011_p12), %s9590_s9, 6144, %s1425_s5, [#allocation36], %s9576_s18, %s9576_s18, %s9575_s19  }
 0x193   : > { %p8483_p3 = pneg %p8482_p1  ;;  %p8489_p7 = por %p8488_p4, %p8487_p2 }
 0x195   : > { %p8490_p8 = pnand %p8489_p7, %p8483_p3 }
 0x197   : > { %8493 = shalt.err (!%p8490_p8)
}
 0x198   : > { %7136 = dma.hbm_to_vmem [thread:$0]  (!%p9011_p12), %s8937_s29, 3072, %s1455_s26, [#allocation39], %s9576_s18, %s9576_s18, %s9575_s19  }
 0x199   : > { %s8505_s5 = scalar_lea.vmem %s1472_s10, 32  ;;  %p8513_p5 = scmp.lt.s32.totalorder %s1472_s10, %s1472_s10 }
 0x19a   : > { %p8506_p11 = scmp.ne.s32.totalorder %s1472_s10, %s8505_s5  ;;  %p8514_p9 = scmp.lt.s32.totalorder %s8505_s5, %s8505_s5 }
 0x19c   : > { %p8508_p0 = pnand %p8506_p11, %p9017_p13  ;;  %p8515_p10 = por %p8514_p9, %p8513_p5 }
 0x19e   : > { %p8509_p6 = pneg %p8508_p0 }
 0x1a0   : > { %p8516_p1 = pnand %p8515_p10, %p8509_p6 }
 0x1a2   : > { %8519 = shalt.err (!%p8516_p1)
}
 0x1a3   : > { %7139 = dma.hbm_to_vmem [thread:$0]  (!%p9011_p12), %s8947_s24, 32, %s1472_s10, [#allocation42]  }
 0x1a4   : > { %p9591_p3 = scmp.ne.s32.totalorder %s9568_s2, 0 }
 0x1a5   : > { %p9592_p2 = scmp.eq.s32.totalorder (!%p9591_p3), %s8975_s15, 0 }
 0x1a6   : > { %1492 = sbr.rel (%p9591_p3) target bundleno = 4609 (0x1201), region = 200 }
 0x1ab   : > { %8563 = dma.done.wait (%p9592_p2), [#allocation3], 4096   ;;  %p9593_p4 = pmov %p9592_p2 }
 0x1ac   : > { %p9594_p13 = pmov %p9592_p2 }
 0x1ad   : > { %8565 = vsyncadd (%p9593_p4), [#allocation3], 4294963200 }
 0x1ae   : > { %8567 = dma.done.wait (%p9594_p13), [#allocation6], 18432   ;;  %p9595_p7 = pmov %p9592_p2 }
 0x1af   : > { %p9596_p8 = pmov %p9592_p2 }
 0x1b0   : > { %8569 = vsyncadd (%p9595_p7), [#allocation6], 4294948864 }
 0x1b1   : > { %8571 = dma.done.wait (%p9596_p8), [#allocation9], 320   ;;  %p9597_p12 = pmov %p9592_p2 }
 0x1b2   : > { %p9598_p11 = pmov %p9592_p2 }
 0x1b3   : > { %8573 = vsyncadd (%p9597_p12), [#allocation9], 4294966976 }
 0x1b4   : > { %8575 = dma.done.wait (%p9598_p11), [#allocation12], 3072   ;;  %p9599_p0 = pmov %p9592_p2 }
 0x1b6   : > { %8577 = vsyncadd (%p9599_p0), [#allocation12], 4294964224  ;;  %p9600_p6 = pmov %p9599_p0 }
 0x1b7   : > { %p9601_p5 = pmov %p9599_p0 }
 0x1b8   : > { %8579 = dma.done.wait (%p9600_p6), [#allocation15], 48  }
 0x1b9   : > { %8581 = vsyncadd (%p9601_p5), [#allocation15], 4294967248  ;;  %p9602_p9 = pmov %p9599_p0 }
 0x1ba   : > { %p9603_p10 = pmov %p9599_p0 }
 0x1bb   : > { %8583 = dma.done.wait (%p9602_p9), [#allocation18], 1536  }
 0x1bc   : > { %8585 = vsyncadd (%p9603_p10), [#allocation18], 4294965760  ;;  %p9604_p1 = pmov %p9599_p0 }
 0x1bd   : > { %p9605_p3 = pmov %p9599_p0 }
 0x1be   : > { %8587 = dma.done.wait (%p9604_p1), [#allocation21], 32  }
 0x1bf   : > { %8589 = vsyncadd (%p9605_p3), [#allocation21], 4294967264  ;;  %p9606_p2 = pmov %p9599_p0 }
 0x1c0   : > { %p9607_p4 = pmov %p9599_p0 }
 0x1c1   : > { %8591 = dma.done.wait (%p9606_p2), [#allocation24], 800  }
 0x1c2   : > { %8593 = vsyncadd (%p9607_p4), [#allocation24], 4294966496  ;;  %p9608_p13 = pmov %p9599_p0 }
 0x1c3   : > { %p9609_p7 = pmov %p9599_p0 }
 0x1c4   : > { %8595 = dma.done.wait (%p9608_p13), [#allocation27], 3104  }
 0x1c5   : > { %8597 = vsyncadd (%p9609_p7), [#allocation27], 4294964192  ;;  %p9610_p8 = pmov %p9599_p0 }
 0x1c6   : > { %p9611_p12 = pmov %p9599_p0 }
 0x1c7   : > { %8599 = dma.done.wait (%p9610_p8), [#allocation30], 1536  }
 0x1c8   : > { %8601 = vsyncadd (%p9611_p12), [#allocation30], 4294965760  ;;  %p9612_p11 = pmov %p9599_p0 }
 0x1ca   : > { %8603 = dma.done.wait (%p9612_p11), [#allocation33], 32  }
 0x1cb   : > { %8605 = vsyncadd (%p9599_p0), [#allocation33], 4294967264  ;;  %p9613_p6 = pmov %p9599_p0 }
 0x1cc   : > { %p9614_p5 = pmov %p9599_p0 }
 0x1cd   : > { %8607 = dma.done.wait (%p9613_p6), [#allocation36], 7168  }
 0x1ce   : > { %8609 = vsyncadd (%p9614_p5), [#allocation36], 4294960128  ;;  %p9615_p9 = pmov %p9599_p0 }
 0x1cf   : > { %p9616_p10 = pmov %p9599_p0 }
 0x1d0   : > { %8611 = dma.done.wait (%p9615_p9), [#allocation39], 3104  }
 0x1d1   : > { %8613 = vsyncadd (%p9616_p10), [#allocation39], 4294964192  ;;  %p9617_p1 = pmov %p9599_p0 }
 0x1d2   : > { %p9618_p3 = pmov %p9599_p0 }
 0x1d3   : > { %8615 = dma.done.wait (%p9617_p1), [#allocation42], 32  }
 0x1d4   : > { %8617 = vsyncadd (%p9618_p3), [#allocation42], 4294967264  ;;  %s9619_s7 = sld [smem:[#allocation59_spill]]  ;;  %p1699_p2 = scmp.lt.s32.totalorder %s8975_s15, 1  ;;  %v8715_v0 = vmov 0   ;;  %vm1730_vm0 = vcmask 130048   ;;  %v1899_v30 = vlaneseq }
 0x1d5   : > { %1766 = vmatprep.mubr.bf16.mxu0 %v8715_v0  ;;  %1821 = vmatprep.mubr.bf16.mxu1 %v8715_v0  ;;  %s9620_s19 = sld [smem:[#allocation79_spill]]  ;;  %v7309_v1 = vld [vmem:[#allocation23 + $0x14] ss:$8 sps:$4 sm:$0xff]   ;;  %v7311_v2 = vld [vmem:[#allocation23 + $0x10] ss:$8 sps:$4 sm:$0xff]   ;;  %v8716_v10 = vmov 0.0  }
 0x1d6   : > { %s1700_s2 = scalar_select %p1699_p2, %s8975_s15, 1  ;;  %1748 = vmatprep.subr.bf16.mxu0 %v7309_v1  ;;  %v7312_v3 = vld [vmem:[#allocation23 + $0x4] ss:$8 sps:$4 sm:$0xff]   ;;  %v7314_v4 = vld [vmem:[#allocation23] ss:$8 sps:$4 sm:$0xff]   ;;  %vm8717_vm1 = vmmov 0  }
 0x1d7   : > { %1749 = vmatpush1.bf16.msra.mxu0 %v7311_v2  ;;  %v7317_v5 = vld [vmem:[#allocation23 + $0x24] ss:$8 sps:$4 sm:$0xff]   ;;  %1803 = vmatprep.subr.bf16.mxu1 %v7312_v3  ;;  %v7315_v13 = vld [vmem:[#allocation23 + $0x20] ss:$8 sps:$4 sm:$0xff]   ;;  %v7319_v17 = vld [vmem:[#allocation17 + $0x38] sm:$0xff]   ;;  %v9280_v34 = vshrl.u32 %v1899_v30, 7 }
 0x1d8   : > { %s6718_s23 = sshll.u32 %s1700_s2, 4  ;;  %1804 = vmatpush1.bf16.msra.mxu1 %v7314_v4  ;;  %1864 = vmatprep.subr.bf16.mxu0 %v7317_v5  ;;  %v7320_v18 = vld [vmem:[#allocation17 + $0x30] sm:$0xff]   ;;  %v7321_v19 = vld [vmem:[#allocation17 + $0x28] sm:$0xff]   ;;  %v7322_v20 = vld [vmem:[#allocation17 + $0x20] sm:$0xff]   ;;  %s9621_s11 = sld [smem:[#allocation80_spill]]  ;;  %vm2136_vm2 = vcmask 523264  }
 0x1d9   : > { %6821 = vmatprep.subr.bf16.mxu1 %v8716_v10  ;;  %v7323_v21 = vld [vmem:[#allocation17 + $0x18] sm:$0xff]   ;;  %v7324_v22 = vld [vmem:[#allocation17 + $0x10] sm:$0xff]   ;;  %v7325_v23 = vld [vmem:[#allocation17 + $0x8] sm:$0xff]   ;;  %v9283_v37 = vsub.s32 1, %v9280_v34  ;;  %v9287_v62 = vsub.s32 0, %v9280_v34  ;;  %s9622_s4 = sld [smem:[#allocation82_spill]] }
 0x1da   : > { %s1703_s18 = scalar_lea.vmem %s9619_s7, %s6718_s23  ;;  %v7326_v24 = vld [vmem:[#allocation17] sm:$0xff]   ;;  %v7327_v25 = vld [vmem:[#allocation19 + $0x18] sm:$0xff]   ;;  %v7328_v26 = vld [vmem:[#allocation19 + $0x10] sm:$0xff]   ;;  %s9623_s16 = sld [smem:[#allocation84_spill]]  ;;  %vm3749_vm3 = vcmask 1043456   ;;  %vm5085_vm4 = vcmask 1040384  }
 0x1db   : > { %v1705_v6 = vld [vmem:[%s1703_s18] sm:$0xff]  ;;  %v1706_v7 = vld [vmem:[%s1703_s18 + $0x8] sm:$0xf]  ;;  %v1897_v42 = vld [vmem:[#allocation25] sm:$0x3]  ;;  %s9624_s3 = sld [smem:[#allocation78_spill]] }
 0x1dc   : > { %v1709_v8 = vpack.c.bf16 %v1706_v7, %v1705_v6  ;;  %v7318_v9 = vld [vmem:[%s9620_s19] sm:$0xff]   ;;  %v1906_v44 = vrot.slane %v1897_v42, %v9283_v37  ;;  %v1902_v3 = vrot.slane %v1897_v42, %v9287_v62  ;;  %s9625_s9 = sld [smem:[#allocation77_spill]]  ;;  %vm5904_vm5 = vcmask 122880   ;;  %p9637_p13 = scmp.ne.s32.totalorder %s9565_s28, 0 }
 0x1dd   : > { %v7352_v42 = vld [vmem:[#allocation26 + $0x54] ss:$8 sps:$4 sm:$0xff]   ;;  %s9626_s22 = sld [smem:[#allocation91_spill]] }
 0x1de   : > { %v1714_v11 = vshrl.u32 %v1709_v8, 16  ;;  %v1716_v12 = vshll.u32 %v1709_v8, 16  ;;  %6332 = vmatmul.mubr.msk.bf16.vlgmr.msra.gmra.mxu1 %vm1730_vm0, %v1709_v8  ;;  %v1836_v16 = vrot.slane %v1709_v8, 1  ;;  %v6336_v5 = vld [vmem:[%s9621_s11] ss:$0 sm:$0xff]  ;;  %s9627_s26 = sld [smem:[#allocation92_spill]] }
 0x1df   : > { %6822 = vmatpush3.bf16.msra.mxu1 %v7318_v9  ;;  %6823 = vmatprep.mubr.msk.bf16.mxu1 %vm8717_vm1, %v8716_v10  ;;  %s9628_s12 = sld [smem:[#allocation89_spill]]  ;;  %s1697_s11 = sand.u32 1, %s8628_s0  }
 0x1e0   : > { %v1718_v14 = vrot.slane %v1716_v12, 1  ;;  %6847 = vmatprep.subr.bf16.mxu1 %v8716_v10  ;;  %s9629_s10 = sld [smem:[#allocation88_spill]] }
 0x1e1   : > { %s9630_s1 = sld [smem:[#allocation67_spill]] }
 0x1e2   : > { %v1719_v15 = vor.u32 %v1718_v14, %v1714_v11  ;;  %s9631_s5 = sld [smem:[#allocation61_spill]] }
 0x1e3   : > { %s9632_s7 = sld [smem:[#allocation65_spill]] }
 0x1e4   : > { %6329 = vmatmul.mubr.msk.bf16.vlgmr.msra.gmra.mxu0 %vm1730_vm0, %v1719_v15  ;;  %s9633_s2 = sld [smem:[#allocation64_spill]] }
 0x1e5   : > { %1865 = vmatpush1.bf16.msra.mxu0 %v7315_v13  ;;  %1882 = vmatprep.mubr.bf16.mxu0 %v8715_v0  ;;  %s9634_s23 = sld [smem:[#allocation62_spill]] }
 0x1e6   : > { %6827 = vmatprep.subr.bf16.mxu0 %v8716_v10  ;;  %6824 = vmatmul.mubr.msk.bf16.vlgmr.msra.gmra.mxu1 %vm1730_vm0, %v1836_v16  ;;  %s9635_s19 = sld [smem:[#allocation63_spill]] }
 0x1e7   : > { %6855 = vmatprep.mubr.msk.bf16.mxu1 %vm8717_vm1, %v8716_v10  ;;  %6848 = vmatpush3.bf16.msra.mxu1 %v7327_v25  ;;  %v6339_v25 = vld [vmem:[#allocation20] ss:$0 sm:$0xff]  ;;  %s9636_s18 = sld [smem:[#allocation73_spill]] }
 0x1e8   : > { %6849 = vmatprep.subr.bf16.mxu1 %v8716_v10 }
 0x1eb   : > { %6850 = vmatpush3.bf16.msra.mxu1 %v7328_v26 }
 0x1ec   : > { %6335 = vmatmul.mubr.msk.bf16.vlgmr.msra.gmra.mxu0 %vm1730_vm0, %v1836_v16  ;;  %6851 = vmatprep.subr.bf16.mxu1 %v8716_v10 }
 0x1ed   : > { %6843 = vmatprep.mubr.msk.bf16.mxu0 %vm8717_vm1, %v8716_v10  ;;  %6828 = vmatpush3.bf16.msra.mxu0 %v7319_v17 }
 0x1ee   : > { %6829 = vmatprep.subr.bf16.mxu0 %v8716_v10 }
 0x1f1   : > { %6830 = vmatpush3.bf16.msra.mxu0 %v7320_v18  ;;  %v7329_v18 = vld [vmem:[#allocation19 + $0x8] sm:$0xff]  }
 0x1f2   : > { %6831 = vmatprep.subr.bf16.mxu0 %v8716_v10  ;;  %6852 = vmatpush3.bf16.msra.mxu1 %v7329_v18 }
 0x1f3   : > { %6853 = vmatprep.subr.bf16.mxu1 %v8716_v10 }
 0x1f5   : > { %6832 = vmatpush3.bf16.msra.mxu0 %v7321_v19  ;;  %v7330_v19 = vld [vmem:[#allocation19] sm:$0xff]  }
 0x1f6   : > { %6833 = vmatprep.subr.bf16.mxu0 %v8716_v10  ;;  %6854 = vmatpush3.bf16.msra.mxu1 %v7330_v19 }
 0x1f9   : > { %6834 = vmatpush3.bf16.msra.mxu0 %v7322_v20  ;;  %v7331_v20 = vld [vmem:[#allocation26 + $0x30] ss:$8 sps:$4 sm:$0xff]  }
 0x1fa   : > { %6835 = vmatprep.subr.bf16.mxu0 %v8716_v10 }
 0x1fd   : > { %6836 = vmatpush3.bf16.msra.mxu0 %v7323_v21  ;;  %v7333_v21 = vld [vmem:[#allocation26 + $0x34] ss:$8 sps:$4 sm:$0xff]  }
 0x1fe   : > { %6837 = vmatprep.subr.bf16.mxu0 %v8716_v10 }
 0x201   : > { %6838 = vmatpush3.bf16.msra.mxu0 %v7324_v22  ;;  %v7336_v22 = vld [vmem:[#allocation26 + $0x24] ss:$8 sps:$4 sm:$0xff]  }
 0x202   : > { %6839 = vmatprep.subr.bf16.mxu0 %v8716_v10 }
 0x205   : > { %6840 = vmatpush3.bf16.msra.mxu0 %v7325_v23  ;;  %v7334_v23 = vld [vmem:[#allocation26 + $0x20] ss:$8 sps:$4 sm:$0xff]  }
 0x206   : > { %6841 = vmatprep.subr.bf16.mxu0 %v8716_v10 }
 0x209   : > { %6842 = vmatpush3.bf16.msra.mxu0 %v7326_v24 }
 0x20a   : > { %2346 = vmatprep.subr.bf16.mxu0 %v7333_v21 }
 0x29e   : > { %v1823_v27 = vpop.f32.mrf.mxu1 }
 0x2a0   : > { %v1825_v28 = vpop.f32.mrf.mxu1 }
 0x2a2   : > { %v1827_v29 = vpop.f32.mrf.mxu1 }
 0x2a4   : > { %v1768_v31 = vpop.f32.mrf.mxu0  ;;  %v1829_v32 = vpop.f32.mrf.mxu1 }
 0x2a5   : > { %v1824_v63 = vadd.f32 %v1823_v27, %v1768_v31 }
 0x2a6   : > { %v1770_v33 = vpop.f32.mrf.mxu0  ;;  %v1962_v35 = vpop.f32.mrf.mxu1 }
 0x2a7   : > { %v1826_v43 = vadd.f32 %v1825_v28, %v1770_v33  ;;  %v1963_v7 = vadd.f32 %v6336_v5, %v1962_v35  ;;  %v7337_v33 = vld [vmem:[#allocation26 + $0x10] ss:$8 sps:$4 sm:$0xff]   ;;  %v7342_v35 = vld [vmem:[#allocation26 + $0x74] ss:$8 sps:$4 sm:$0xff]  }
 0x2a8   : > { %v1772_v36 = vpop.f32.mrf.mxu0  ;;  %v6825_v38 = vpop.f32.mrf.mxu1  ;;  %2262 = vmatprep.subr.bf16.mxu1 %v7342_v35 }
 0x2a9   : > { %v1828_v1 = vadd.f32 %v1827_v29, %v1772_v36  ;;  %v7340_v36 = vld [vmem:[#allocation26 + $0x70] ss:$8 sps:$4 sm:$0xff]   ;;  %v7345_v38 = vld [vmem:[#allocation26 + $0x4] ss:$8 sps:$4 sm:$0xff]  }
 0x2aa   : > { %v1774_v39 = vpop.f32.mrf.mxu0  ;;  %v1965_v40 = vpop.f32.mrf.mxu1 }
 0x2ab   : > { %v1830_v49 = vadd.f32 %v1829_v32, %v1774_v39  ;;  %v1966_v9 = vadd.f32 %v6336_v5, %v1965_v40  ;;  %v7339_v32 = vld [vmem:[#allocation26 + $0x14] ss:$8 sps:$4 sm:$0xff]   ;;  %v7343_v39 = vld [vmem:[#allocation26] ss:$8 sps:$4 sm:$0xff]   ;;  %v7348_v40 = vld [vmem:[#allocation26 + $0x64] ss:$8 sps:$4 sm:$0xff]  }
 0x2ac   : > { %v1884_v41 = vpop.f32.mrf.mxu0  ;;  %v6826_v45 = vpop.f32.mrf.mxu1 }
 0x2ad   : > { %v1893_v2 = vadd.f32 %v1884_v41, %v1824_v63  ;;  %v7346_v41 = vld [vmem:[#allocation26 + $0x60] ss:$8 sps:$4 sm:$0xff]  }
 0x2ae   : > { %v1886_v46 = vpop.f32.mrf.mxu0  ;;  %v7354_v45 = vld [vmem:[#allocation26 + $0x40] ss:$8 sps:$4 sm:$0xff]  }
 0x2af   : > { %v1894_v47 = vadd.f32 %v1886_v46, %v1826_v43  ;;  %v1909_v6 = vadd.f32 %v1902_v3, %v1893_v2  ;;  %v7350_v43 = vld [vmem:[#allocation26 + $0x50] ss:$8 sps:$4 sm:$0xff]   ;;  %v7360_v46 = vld [vmem:[#allocation26 + $0xb4] ss:$8 sps:$4 sm:$0xff]  }
 0x2b0   : > { %v1888_v48 = vpop.f32.mrf.mxu0 }
 0x2b1   : > { %v1910_v50 = vadd.f32 %v1906_v44, %v1894_v47  ;;  %v1895_v4 = vadd.f32 %v1888_v48, %v1828_v1  ;;  %v1979_v12 = vadd.f32 %v1963_v7, %v1909_v6  ;;  %v6348_v47 = vld [vmem:[#allocation22] ss:$0 sm:$0xff]  ;;  %v7357_v1 = vld [vmem:[%s9622_s4 + $0x8] sm:$0xff]   ;;  %v7361_v7 = vld [vmem:[%s9622_s4] sm:$0xff]  }
 0x2b2   : > { %v1890_v51 = vpop.f32.mrf.mxu0  ;;  %v7364_v6 = vld [vmem:[#allocation26 + $0xa4] ss:$8 sps:$4 sm:$0xff]  }
 0x2b3   : > { %v1969_v52 = vsub.f32 0.0, %v1910_v50  ;;  %v1896_v53 = vadd.f32 %v1890_v51, %v1830_v49  ;;  %v1911_v8 = vadd.f32 %v1902_v3, %v1895_v4  ;;  %v7358_v4 = vld [vmem:[#allocation26 + $0xb0] ss:$8 sps:$4 sm:$0xff]  }
 0x2b5   : > { %v1971_v54 = vmul.f32 1.442695, %v1969_v52  ;;  %v1912_v55 = vadd.f32 %v1906_v44, %v1896_v53  ;;  %v1980_v13 = vadd.f32 %v1966_v9, %v1911_v8  ;;  %v7356_v44 = vld [vmem:[#allocation26 + $0x44] ss:$8 sps:$4 sm:$0xff]   ;;  %v7362_v8 = vld [vmem:[#allocation26 + $0xa0] ss:$8 sps:$4 sm:$0xff]  }
 0x2b6   : > { %v7367_v9 = vld [vmem:[#allocation26 + $0x94] ss:$8 sps:$4 sm:$0xff]  }
 0x2b7   : > { %7810 = vpow2.f32 %v1971_v54  ;;  %v1970_v56 = vsub.f32 0.0, %v1912_v55 }
 0x2b9   : > { %v1973_v57 = vmul.f32 1.442695, %v1970_v56  ;;  %v7349_v56 = vld [vmem:[%s9622_s4 + $0x18] sm:$0xff]  }
 0x2bb   : > { %7812 = vpow2.f32 %v1973_v57 }
 0x2c4   : > { %v7811_v58 = vpop.eup %7810 }
 0x2c5   : > { %v1975_v59 = vadd.f32 1.0, %v7811_v58 }
 0x2c7   : > { %7814 = vrcp.f32 %v1975_v59 }
 0x2c8   : > { %v7813_v60 = vpop.eup %7812 }
 0x2c9   : > { %v1976_v61 = vadd.f32 1.0, %v7813_v60  ;;  %v7353_v60 = vld [vmem:[%s9622_s4 + $0x10] sm:$0xff]  }
 0x2cb   : > { %7816 = vrcp.f32 %v1976_v61 }
 0x2d4   : > { %v7815_v11 = vpop.eup %7814 }
 0x2d5   : > { %v1981_v15 = vmul.f32 %v7815_v11, %v1979_v12  ;;  %v7365_v12 = vld [vmem:[#allocation26 + $0x90] ss:$8 sps:$4 sm:$0xff]  }
 0x2d8   : > { %v7817_v14 = vpop.eup %7816 }
 0x2d9   : > { %v1982_v16 = vmul.f32 %v7817_v14, %v1980_v13  ;;  %v7370_v13 = vld [vmem:[#allocation26 + $0x84] ss:$8 sps:$4 sm:$0xff]   ;;  %v7368_v14 = vld [vmem:[#allocation26 + $0x80] ss:$8 sps:$4 sm:$0xff]  }
 0x2db   : > { %v1983_v17 = vpack.c.bf16 %v1982_v16, %v1981_v15 }
 0x2dd   : > { %6844 = vmatmul.mubr.bf16.vlgmr.msra.gmra.mxu0 %v1983_v17 }
 0x2de   : > { %2370 = vmatprep.mubr.bf16.mxu0 %v8715_v0  ;;  %2347 = vmatpush1.bf16.msra.mxu0 %v7331_v20 }
 0x2df   : > { %2348 = vmatprep.subr.bf16.mxu0 %v7336_v22 }
 0x2e2   : > { %2349 = vmatpush1.bf16.msra.mxu0 %v7334_v23 }
 0x2e3   : > { %2350 = vmatprep.subr.bf16.mxu0 %v7339_v32 }
 0x2e6   : > { %2351 = vmatpush1.bf16.msra.mxu0 %v7337_v33 }
 0x2e7   : > { %2352 = vmatprep.subr.bf16.mxu0 %v7345_v38 }
 0x2ea   : > { %2353 = vmatpush1.bf16.msra.mxu0 %v7343_v39 }
 0x2eb   : > { %6859 = vmatprep.subr.bf16.mxu0 %v8716_v10 }
 0x39d   : > { %v2089_v24 = vpop.f32.mrf.mxu0 }
 0x39e   : > { %v2090_v28 = vadd.f32 %v6339_v25, %v2089_v24 }
 0x39f   : > { %v6845_v26 = vpop.f32.mrf.mxu0 }
 0x3a1   : > { %v2092_v27 = vpop.f32.mrf.mxu0 }
 0x3a2   : > { %v2093_v29 = vadd.f32 %v6339_v25, %v2092_v27 }
 0x3a3   : > { %v6846_v30 = vpop.f32.mrf.mxu0 }
 0x3a4   : > { %v2096_v31 = vpack.c.bf16 %v2093_v29, %v2090_v28 }
 0x3a6   : > { %6856 = vmatmul.mubr.msk.bf16.vlgmr.msra.gmra.mxu1 %vm2136_vm2, %v2096_v31 }
 0x3a7   : > { %2286 = vmatprep.mubr.bf16.mxu1 %v8715_v0  ;;  %2263 = vmatpush1.bf16.msra.mxu1 %v7340_v36 }
 0x3a8   : > { %2264 = vmatprep.subr.bf16.mxu1 %v7348_v40 }
 0x3ab   : > { %2265 = vmatpush1.bf16.msra.mxu1 %v7346_v41 }
 0x3ac   : > { %2266 = vmatprep.subr.bf16.mxu1 %v7352_v42 }
 0x3af   : > { %2267 = vmatpush1.bf16.msra.mxu1 %v7350_v43 }
 0x3b0   : > { %2268 = vmatprep.subr.bf16.mxu1 %v7356_v44 }
 0x3b3   : > { %2269 = vmatpush1.bf16.msra.mxu1 %v7354_v45  ;;  %v6381_v45 = vld [vmem:[%s9623_s16] ss:$0 sm:$0xff]  ;;  %s6715_s16 = sshll.u32 %s8975_s15, 4  ;;  %s8718_s15 = smov [#allocation43]  }
 0x3b4   : > { %2441 = vmatprep.subr.bf16.mxu1 %v7360_v46 }
 0x466   : > { %v2174_v48 = vpop.f32.mrf.mxu1 }
 0x467   : > { %v2175_v49 = vadd.f32 %v6348_v47, %v2174_v48 }
 0x468   : > { %v6857_v50 = vpop.f32.mrf.mxu1 }
 0x469   : > { %v2181_v51 = vadd.f32 %v2175_v49, %v2090_v28  ;;  %v2476_v28 = vld [vmem:[#allocation28] sm:$0x3] }
 0x46a   : > { %v2177_v52 = vpop.f32.mrf.mxu1  ;;  %v2485_v30 = vrot.slane %v2476_v28, %v9283_v37  ;;  %v2481_v44 = vrot.slane %v2476_v28, %v9287_v62 }
 0x46b   : > { %v2183_v53 = vmax.f32 %v2181_v51, 0.0  ;;  %v2178_v54 = vadd.f32 %v6348_v47, %v2177_v52  ;;  %v7371_v51 = vld [vmem:[#allocation37 + $0x70] ss:$8 sps:$4 sm:$0xff]   ;;  %v7373_v52 = vld [vmem:[#allocation37 + $0x74] ss:$8 sps:$4 sm:$0xff]  }
 0x46c   : > { %v6858_v55 = vpop.f32.mrf.mxu1 }
 0x46d   : > { %v2193_v57 = vpack.c.bf16 %v2183_v53, %v2183_v53  ;;  %v2182_v58 = vadd.f32 %v2178_v54, %v2093_v29  ;;  %v7377_v54 = vld [vmem:[#allocation37 + $0xf0] ss:$8 sps:$4 sm:$0xff]   ;;  %v7379_v55 = vld [vmem:[#allocation37 + $0xf4] ss:$8 sps:$4 sm:$0xff]  }
 0x46f   : > { %v2184_v59 = vmax.f32 %v2182_v58, 0.0  ;;  %6371 = vmatmul.mubr.msk.bf16.vlgmr.msra.gmra.mxu0 %vm2136_vm2, %v2193_v57 }
 0x470   : > { %6860 = vmatpush3.bf16.msra.mxu0 %v7349_v56  ;;  %6867 = vmatprep.mubr.msk.bf16.mxu0 %vm8717_vm1, %v8716_v10  ;;  %v7374_v56 = vld [vmem:[#allocation37 + $0x60] ss:$8 sps:$4 sm:$0xff]  }
 0x471   : > { %v2203_v61 = vpack.c.bf16 %v2184_v59, %v2183_v53  ;;  %6861 = vmatprep.subr.bf16.mxu0 %v8716_v10  ;;  %v7376_v53 = vld [vmem:[#allocation37 + $0x64] ss:$8 sps:$4 sm:$0xff]  }
 0x473   : > { %v2207_v63 = vshll.u32 %v2203_v61, 16  ;;  %v2205_v2 = vshrl.u32 %v2203_v61, 16  ;;  %v2389_v11 = vrot.slane %v2203_v61, 1  ;;  %v7382_v61 = vld [vmem:[#allocation37 + $0x54] ss:$8 sps:$4 sm:$0xff]  }
 0x474   : > { %6862 = vmatpush3.bf16.msra.mxu0 %v7353_v60 }
 0x475   : > { %v2209_v3 = vrot.slane %v2207_v63, 1  ;;  %6863 = vmatprep.subr.bf16.mxu0 %v8716_v10  ;;  %v7380_v63 = vld [vmem:[#allocation37 + $0x50] ss:$8 sps:$4 sm:$0xff]  }
 0x477   : > { %v2210_v5 = vor.u32 %v2209_v3, %v2205_v2  ;;  %v7383_v2 = vld [vmem:[#allocation37 + $0xe0] ss:$8 sps:$4 sm:$0xff]   ;;  %v7388_v3 = vld [vmem:[#allocation37 + $0x44] ss:$8 sps:$4 sm:$0xff]  }
 0x478   : > { %6864 = vmatpush3.bf16.msra.mxu0 %v7357_v1  ;;  %v7385_v1 = vld [vmem:[#allocation37 + $0xe4] ss:$8 sps:$4 sm:$0xff]  }
 0x479   : > { %6362 = vmatmul.mubr.msk.bf16.vlgmr.msra.gmra.mxu1 %vm2136_vm2, %v2210_v5  ;;  %6865 = vmatprep.subr.bf16.mxu0 %v8716_v10  ;;  %v7389_v5 = vld [vmem:[#allocation37 + $0xd0] ss:$8 sps:$4 sm:$0xff]  }
 0x47a   : > { %2442 = vmatpush1.bf16.msra.mxu1 %v7358_v4  ;;  %2465 = vmatprep.mubr.bf16.mxu1 %v8715_v0  ;;  %v7386_v4 = vld [vmem:[#allocation37 + $0x40] ss:$8 sps:$4 sm:$0xff]  }
 0x47b   : > { %2443 = vmatprep.subr.bf16.mxu1 %v7364_v6  ;;  %v7391_v6 = vld [vmem:[#allocation37 + $0xd4] ss:$8 sps:$4 sm:$0xff]  }
 0x47c   : > { %6866 = vmatpush3.bf16.msra.mxu0 %v7361_v7  ;;  %v7394_v7 = vld [vmem:[#allocation37 + $0x34] ss:$8 sps:$4 sm:$0xff]  }
 0x47d   : > { %2847 = vmatprep.subr.bf16.mxu0 %v7373_v52  ;;  %v7435_v52 = vld [vmem:[#allocation37 + $0x144] ss:$8 sps:$4 sm:$0xff]  }
 0x47e   : > { %2444 = vmatpush1.bf16.msra.mxu1 %v7362_v8  ;;  %v7392_v8 = vld [vmem:[#allocation37 + $0x30] ss:$8 sps:$4 sm:$0xff]  }
 0x47f   : > { %6868 = vmatmul.mubr.msk.bf16.vlgmr.msra.gmra.mxu0 %vm2136_vm2, %v2389_v11  ;;  %2445 = vmatprep.subr.bf16.mxu1 %v7367_v9  ;;  %v7397_v9 = vld [vmem:[#allocation37 + $0xc4] ss:$8 sps:$4 sm:$0xff]  }
 0x480   : > { %2879 = vmatprep.mubr.bf16.mxu0 %v8715_v0  ;;  %2848 = vmatpush1.bf16.msra.mxu0 %v7371_v51  ;;  %v7429_v51 = vld [vmem:[#allocation37 + $0x150] ss:$8 sps:$4 sm:$0xff]  }
 0x481   : > { %2849 = vmatprep.subr.bf16.mxu0 %v7376_v53  ;;  %v7432_v53 = vld [vmem:[#allocation35 + $0x18] sm:$0xff]  }
 0x482   : > { %2446 = vmatpush1.bf16.msra.mxu1 %v7365_v12  ;;  %v7395_v12 = vld [vmem:[#allocation37 + $0xc0] ss:$8 sps:$4 sm:$0xff]  }
 0x483   : > { %2447 = vmatprep.subr.bf16.mxu1 %v7370_v13  ;;  %v7403_v13 = vld [vmem:[#allocation37 + $0xb4] ss:$8 sps:$4 sm:$0xff]  }
 0x484   : > { %2850 = vmatpush1.bf16.msra.mxu0 %v7374_v56  ;;  %v7436_v56 = vld [vmem:[#allocation35 + $0x10] sm:$0xff]  }
 0x485   : > { %2851 = vmatprep.subr.bf16.mxu0 %v7382_v61  ;;  %v7447_v61 = vld [vmem:[#allocation37 + $0x114] ss:$8 sps:$4 sm:$0xff]  }
 0x486   : > { %2448 = vmatpush1.bf16.msra.mxu1 %v7368_v14  ;;  %v7398_v14 = vld [vmem:[#allocation37 + $0x20] ss:$8 sps:$4 sm:$0xff]  }
 0x487   : > { %2726 = vmatprep.subr.bf16.mxu1 %v7379_v55  ;;  %v7439_v55 = vld [vmem:[#allocation37 + $0x134] ss:$8 sps:$4 sm:$0xff]  }
 0x488   : > { %2852 = vmatpush1.bf16.msra.mxu0 %v7380_v63  ;;  %v7444_v63 = vld [vmem:[#allocation35] sm:$0xff]  }
 0x489   : > { %6380 = vmatmul.mubr.msk.bf16.vlgmr.msra.gmra.mxu1 %vm2136_vm2, %v2389_v11  ;;  %2853 = vmatprep.subr.bf16.mxu0 %v7388_v3  ;;  %v7400_v11 = vld [vmem:[#allocation37 + $0x24] ss:$8 sps:$4 sm:$0xff]  }
 0x48a   : > { %2758 = vmatprep.mubr.bf16.mxu1 %v8715_v0  ;;  %2727 = vmatpush1.bf16.msra.mxu1 %v7377_v54  ;;  %v7433_v54 = vld [vmem:[#allocation37 + $0x140] ss:$8 sps:$4 sm:$0xff]  }
 0x48b   : > { %2728 = vmatprep.subr.bf16.mxu1 %v7385_v1  ;;  %v7445_v1 = vld [vmem:[#allocation37 + $0x110] ss:$8 sps:$4 sm:$0xff]  }
 0x48c   : > { %2854 = vmatpush1.bf16.msra.mxu0 %v7386_v4  ;;  %v7448_v4 = vld [vmem:[#allocation37 + $0x100] ss:$8 sps:$4 sm:$0xff]  }
 0x48d   : > { %2855 = vmatprep.subr.bf16.mxu0 %v7394_v7  ;;  %v7453_v7 = vld [vmem:[#allocation29 + $0x28] sm:$0xff]  }
 0x48e   : > { %2729 = vmatpush1.bf16.msra.mxu1 %v7383_v2  ;;  %v7450_v2 = vld [vmem:[#allocation37 + $0x104] ss:$8 sps:$4 sm:$0xff]  }
 0x48f   : > { %2730 = vmatprep.subr.bf16.mxu1 %v7391_v6  ;;  %v7452_v6 = vld [vmem:[#allocation29 + $0x30] sm:$0xff]  }
 0x490   : > { %2856 = vmatpush1.bf16.msra.mxu0 %v7392_v8  ;;  %v7454_v8 = vld [vmem:[#allocation29 + $0x20] sm:$0xff]  }
 0x491   : > { %2857 = vmatprep.subr.bf16.mxu0 %v7400_v11  ;;  %v7456_v11 = vld [vmem:[#allocation29 + $0x10] sm:$0xff]  }
 0x492   : > { %2731 = vmatpush1.bf16.msra.mxu1 %v7389_v5  ;;  %v7451_v5 = vld [vmem:[#allocation29 + $0x38] sm:$0xff]  }
 0x493   : > { %2732 = vmatprep.subr.bf16.mxu1 %v7397_v9  ;;  %v7455_v9 = vld [vmem:[#allocation29 + $0x18] sm:$0xff]  }
 0x494   : > { %2858 = vmatpush1.bf16.msra.mxu0 %v7398_v14  ;;  %v7459_v14 = vld [vmem:[#allocation31 + $0x18] sm:$0xff]  }
 0x496   : > { %2733 = vmatpush1.bf16.msra.mxu1 %v7395_v12  ;;  %v7457_v12 = vld [vmem:[#allocation29 + $0x8] sm:$0xff]  }
 0x497   : > { %2734 = vmatprep.subr.bf16.mxu1 %v7403_v13  ;;  %v7458_v13 = vld [vmem:[#allocation29] sm:$0xff]  }
 0x52f   : > { %v2372_v15 = vpop.f32.mrf.mxu0 }
 0x531   : > { %v2374_v16 = vpop.f32.mrf.mxu0 }
 0x533   : > { %v2376_v17 = vpop.f32.mrf.mxu0 }
 0x534   : > { %v7409_v17 = vld [vmem:[#allocation37 + $0xa4] ss:$8 sps:$4 sm:$0xff]  }
 0x535   : > { %v2377_v18 = vpop.f32.mrf.mxu0 }
 0x536   : > { %v7404_v18 = vld [vmem:[#allocation37 + $0x10] ss:$8 sps:$4 sm:$0xff]  }
 0x539   : > { %v2288_v19 = vpop.f32.mrf.mxu1 }
 0x53a   : > { %v2373_v42 = vadd.f32 %v2372_v15, %v2288_v19  ;;  %v7406_v15 = vld [vmem:[#allocation37 + $0x14] ss:$8 sps:$4 sm:$0xff]   ;;  %v7412_v19 = vld [vmem:[#allocation37 + $0x4] ss:$8 sps:$4 sm:$0xff]  }
 0x53b   : > { %v2290_v20 = vpop.f32.mrf.mxu1  ;;  %2859 = vmatprep.subr.bf16.mxu0 %v7406_v15  ;;  %v7460_v15 = vld [vmem:[#allocation31 + $0x10] sm:$0xff]  }
 0x53c   : > { %v2375_v29 = vadd.f32 %v2374_v16, %v2290_v20  ;;  %v7401_v16 = vld [vmem:[#allocation37 + $0xb0] ss:$8 sps:$4 sm:$0xff]   ;;  %v7407_v20 = vld [vmem:[#allocation37 + $0xa0] ss:$8 sps:$4 sm:$0xff]   ;;  %2860 = vmatpush1.bf16.msra.mxu0 %v7404_v18 }
 0x53d   : > { %v2292_v21 = vpop.f32.mrf.mxu1  ;;  %2735 = vmatpush1.bf16.msra.mxu1 %v7401_v16  ;;  %2861 = vmatprep.subr.bf16.mxu0 %v7412_v19  ;;  %v7461_v16 = vld [vmem:[#allocation31 + $0x8] sm:$0xff]  }
 0x53e   : > { %2736 = vmatprep.subr.bf16.mxu1 %v7409_v17  ;;  %v7415_v21 = vld [vmem:[#allocation37 + $0x94] ss:$8 sps:$4 sm:$0xff]  }
 0x53f   : > { %v2563_v22 = vpop.f32.mrf.mxu0  ;;  %v2293_v23 = vpop.f32.mrf.mxu1 }
 0x540   : > { %v2564_v47 = vadd.f32 %v6381_v45, %v2563_v22  ;;  %v7410_v22 = vld [vmem:[#allocation37] ss:$8 sps:$4 sm:$0xff]   ;;  %v7413_v23 = vld [vmem:[#allocation37 + $0x90] ss:$8 sps:$4 sm:$0xff]  }
 0x541   : > { %v6869_v24 = vpop.f32.mrf.mxu0  ;;  %2737 = vmatpush1.bf16.msra.mxu1 %v7407_v20  ;;  %2862 = vmatpush1.bf16.msra.mxu0 %v7410_v22 }
 0x542   : > { %2738 = vmatprep.subr.bf16.mxu1 %v7415_v21  ;;  %6871 = vmatprep.subr.bf16.mxu0 %v8716_v10  ;;  %v7419_v24 = vld [vmem:[#allocation37 + $0x84] ss:$8 sps:$4 sm:$0xff]  }
 0x543   : > { %v2566_v25 = vpop.f32.mrf.mxu0 }
 0x544   : > { %v7417_v25 = vld [vmem:[#allocation37 + $0x80] ss:$8 sps:$4 sm:$0xff]  }
 0x545   : > { %v6870_v26 = vpop.f32.mrf.mxu0  ;;  %2739 = vmatpush1.bf16.msra.mxu1 %v7413_v23 }
 0x546   : > { %2740 = vmatprep.subr.bf16.mxu1 %v7419_v24  ;;  %v7423_v26 = vld [vmem:[#allocation37 + $0x174] ss:$8 sps:$4 sm:$0xff]  }
 0x549   : > { %v2467_v27 = vpop.f32.mrf.mxu1  ;;  %2741 = vmatpush1.bf16.msra.mxu1 %v7417_v25 }
 0x54a   : > { %v2474_v43 = vadd.f32 %v2467_v27, %v2373_v42  ;;  %2988 = vmatprep.subr.bf16.mxu1 %v7423_v26 }
 0x54b   : > { %v2469_v31 = vpop.f32.mrf.mxu1 }
 0x54c   : > { %v2475_v32 = vadd.f32 %v2469_v31, %v2375_v29  ;;  %v2488_v46 = vadd.f32 %v2481_v44, %v2474_v43  ;;  %v6387_v31 = vld [vmem:[%s9624_s3] ss:$0 sm:$0xff]  ;;  %v7421_v44 = vld [vmem:[#allocation37 + $0x170] ss:$8 sps:$4 sm:$0xff]   ;;  %s1698_s3 = scalar_lea.vmem [#allocation43], %s1697_s11 }
 0x54d   : > { %v2471_v33 = vpop.f32.mrf.mxu1 }
 0x54e   : > { %v2489_v35 = vadd.f32 %v2485_v30, %v2475_v32  ;;  %v2574_v48 = vadd.f32 %v2564_v47, %v2488_v46  ;;  %v6388_v33 = vld [vmem:[%s9625_s9] ss:$0 sm:$0xff]  ;;  %s5919_s9 = sshll.u32 %s1698_s3, 4  ;;  %s9470_s9 = int_to_ptr.vmem [resolvable:$true] %s5919_s9 }
 0x54f   : > { %v2472_v36 = vpop.f32.mrf.mxu1  ;;  %v7427_v46 = vld [vmem:[#allocation37 + $0x164] ss:$8 sps:$4 sm:$0xff]  }
 0x550   : > { %v2569_v38 = vsub.f32 0.0, %v2489_v35  ;;  %v7424_v47 = vld [vmem:[#allocation35 + $0x28] sm:$0xff]  }
 0x552   : > { %v2570_v39 = vmul.f32 1.442695, %v2569_v38  ;;  %v7416_v38 = vld [vmem:[#allocation35 + $0x38] sm:$0xff]  }
 0x554   : > { %7818 = vpow2.f32 %v2570_v39 }
 0x561   : > { %v7819_v40 = vpop.eup %7818 }
 0x562   : > { %v2572_v41 = vadd.f32 1.0, %v7819_v40 }
 0x564   : > { %7820 = vrcp.f32 %v2572_v41  ;;  %v7420_v41 = vld [vmem:[#allocation35 + $0x30] sm:$0xff]  }
 0x571   : > { %v7821_v49 = vpop.eup %7820 }
 0x572   : > { %v2575_v50 = vmul.f32 %v7821_v49, %v2574_v48  ;;  %v7425_v48 = vld [vmem:[#allocation37 + $0x160] ss:$8 sps:$4 sm:$0xff]   ;;  %v7431_v49 = vld [vmem:[#allocation37 + $0x154] ss:$8 sps:$4 sm:$0xff]  }
 0x574   : > { %2576 = vadd.xlane.f32.xlu0 %v2575_v50 }
 0x5fd   : > { %v2577_v57 = vpop.xlane.xlu0 %2576 }
 0x5fe   : > { %v2579_v58 = vmul.f32 0.0078125, %v2577_v57  ;;  %v7437_v57 = vld [vmem:[#allocation37 + $0x130] ss:$8 sps:$4 sm:$0xff]  }
 0x600   : > { %v9315_v59 = vsub.f32 %v2575_v50, %v2579_v58  ;;  %v7428_v50 = vld [vmem:[#allocation35 + $0x20] sm:$0xff]  }
 0x601   : > { %v7443_v58 = vld [vmem:[#allocation37 + $0x124] ss:$8 sps:$4 sm:$0xff]  }
 0x602   : > { %v2581_v60 = vmul.f32 %v9315_v59, %v9315_v59 }
 0x604   : > { %2582 = vadd.xlane.f32.xlu0 %v2581_v60  ;;  %v7441_v60 = vld [vmem:[#allocation37 + $0x120] ss:$8 sps:$4 sm:$0xff]  }
 0x68d   : > { %v2583_v27 = vpop.xlane.xlu0 %2582 }
 0x68e   : > { %v2584_v28 = vmul.f32 0.0078125, %v2583_v27 }
 0x690   : > { %v2585_v29 = vadd.f32 1e-05, %v2584_v28 }
 0x692   : > { %7822 = vrsqrt.f32 %v2585_v29 }
 0x69f   : > { %v7823_v30 = vpop.eup %7822 }
 0x6a0   : > { %v2587_v32 = vmul.f32 %v7823_v30, %v9315_v59  ;;  %v7440_v59 = vld [vmem:[#allocation35 + $0x8] sm:$0xff]   ;;  %v3031_v30 = vld [vmem:[#allocation38] sm:$0x3] }
 0x6a2   : > { %v2595_v35 = vmul.f32 %v6387_v31, %v2587_v32 }
 0x6a4   : > { %v2603_v36 = vadd.f32 %v6388_v33, %v2595_v35  ;;  %v3040_v33 = vrot.slane %v3031_v30, %v9283_v37 }
 0x6a6   : > { %v9323_v39 = vpack.c.bf16 %v2603_v36, %v2603_v36 }
 0x6a8   : > { %2880 = vmatmul.mubr.bf16.vlgmr.msra.gmra.mxu0 %v9323_v39  ;;  %v2641_v40 = vshll.u32 %v9323_v39, 16  ;;  %v2639_v42 = vshrl.u32 %v9323_v39, 16  ;;  %v2906_v3 = vrot.slane %v9323_v39, 1 }
 0x6a9   : > { %6872 = vmatpush3.bf16.msra.mxu0 %v7416_v38  ;;  %6887 = vmatprep.mubr.msk.bf16.mxu0 %vm8717_vm1, %v8716_v10 }
 0x6aa   : > { %6873 = vmatprep.subr.bf16.mxu0 %v8716_v10  ;;  %v2643_v43 = vrot.slane %v2641_v40, 1 }
 0x6ac   : > { %v2644_v45 = vor.u32 %v2643_v43, %v2639_v42 }
 0x6ad   : > { %6874 = vmatpush3.bf16.msra.mxu0 %v7420_v41 }
 0x6ae   : > { %2759 = vmatmul.mubr.bf16.vlgmr.msra.gmra.mxu1 %v2644_v45  ;;  %6875 = vmatprep.subr.bf16.mxu0 %v8716_v10 }
 0x6af   : > { %2989 = vmatpush1.bf16.msra.mxu1 %v7421_v44  ;;  %3020 = vmatprep.mubr.bf16.mxu1 %v8715_v0 }
 0x6b0   : > { %2990 = vmatprep.subr.bf16.mxu1 %v7427_v46  ;;  %v3036_v46 = vrot.slane %v3031_v30, %v9287_v62 }
 0x6b1   : > { %6876 = vmatpush3.bf16.msra.mxu0 %v7424_v47  ;;  %v6437_v47 = vld [vmem:[%s9626_s22] ss:$0 sm:$0xff]  ;;  %s9468_s22 = scalar_lea.hbm %s8952_s6, %s6715_s16 }
 0x6b2   : > { %6877 = vmatprep.subr.bf16.mxu0 %v8716_v10 }
 0x6b3   : > { %2991 = vmatpush1.bf16.msra.mxu1 %v7425_v48 }
 0x6b4   : > { %2992 = vmatprep.subr.bf16.mxu1 %v7431_v49 }
 0x6b5   : > { %6878 = vmatpush3.bf16.msra.mxu0 %v7428_v50 }
 0x6b6   : > { %6879 = vmatprep.subr.bf16.mxu0 %v8716_v10 }
 0x6b7   : > { %2993 = vmatpush1.bf16.msra.mxu1 %v7429_v51 }
 0x6b8   : > { %2994 = vmatprep.subr.bf16.mxu1 %v7435_v52 }
 0x6b9   : > { %6880 = vmatpush3.bf16.msra.mxu0 %v7432_v53 }
 0x6ba   : > { %6881 = vmatprep.subr.bf16.mxu0 %v8716_v10 }
 0x6bb   : > { %2995 = vmatpush1.bf16.msra.mxu1 %v7433_v54  ;;  %v7462_v54 = vld [vmem:[#allocation31] sm:$0xff]  }
 0x6bc   : > { %2996 = vmatprep.subr.bf16.mxu1 %v7439_v55  ;;  %v7463_v55 = vld [vmem:[#allocation40 + $0x30] ss:$8 sps:$4 sm:$0xff]  }
 0x6bd   : > { %6882 = vmatpush3.bf16.msra.mxu0 %v7436_v56  ;;  %v7465_v56 = vld [vmem:[#allocation40 + $0x34] ss:$8 sps:$4 sm:$0xff]  }
 0x6be   : > { %6883 = vmatprep.subr.bf16.mxu0 %v8716_v10 }
 0x6bf   : > { %2997 = vmatpush1.bf16.msra.mxu1 %v7437_v57  ;;  %v7468_v57 = vld [vmem:[#allocation40 + $0x24] ss:$8 sps:$4 sm:$0xff]  }
 0x6c0   : > { %2998 = vmatprep.subr.bf16.mxu1 %v7443_v58  ;;  %v7471_v58 = vld [vmem:[#allocation40 + $0x74] ss:$8 sps:$4 sm:$0xff]  }
 0x6c1   : > { %6884 = vmatpush3.bf16.msra.mxu0 %v7440_v59  ;;  %v7466_v59 = vld [vmem:[#allocation40 + $0x20] ss:$8 sps:$4 sm:$0xff]  }
 0x6c2   : > { %6885 = vmatprep.subr.bf16.mxu0 %v8716_v10 }
 0x6c3   : > { %2999 = vmatpush1.bf16.msra.mxu1 %v7441_v60  ;;  %v6446_v60 = vld [vmem:[#allocation32] ss:$0 sm:$0xff] }
 0x6c4   : > { %3000 = vmatprep.subr.bf16.mxu1 %v7447_v61 }
 0x6c5   : > { %6886 = vmatpush3.bf16.msra.mxu0 %v7444_v63 }
 0x6c6   : > { %6911 = vmatprep.subr.bf16.mxu0 %v8716_v10 }
 0x6c7   : > { %3001 = vmatpush1.bf16.msra.mxu1 %v7445_v1 }
 0x6c8   : > { %6888 = vmatmul.mubr.bf16.vlgmr.msra.gmra.mxu0 %v2906_v3  ;;  %3002 = vmatprep.subr.bf16.mxu1 %v7450_v2  ;;  %v7469_v2 = vld [vmem:[#allocation40 + $0x70] ss:$8 sps:$4 sm:$0xff]  }
 0x6c9   : > { %6919 = vmatprep.mubr.msk.bf16.mxu0 %vm8717_vm1, %v8716_v10  ;;  %6912 = vmatpush3.bf16.msra.mxu0 %v7459_v14  ;;  %v7481_v14 = vld [vmem:[#allocation40 + $0x50] ss:$8 sps:$4 sm:$0xff]  }
 0x6ca   : > { %6913 = vmatprep.subr.bf16.mxu0 %v8716_v10 }
 0x6cb   : > { %3003 = vmatpush1.bf16.msra.mxu1 %v7448_v4 }
 0x6cc   : > { %6891 = vmatprep.subr.bf16.mxu1 %v8716_v10 }
 0x6cd   : > { %6914 = vmatpush3.bf16.msra.mxu0 %v7460_v15  ;;  %v7487_v15 = vld [vmem:[#allocation40 + $0x44] ss:$8 sps:$4 sm:$0xff]  }
 0x6ce   : > { %3021 = vmatmul.mubr.bf16.vlgmr.msra.gmra.mxu1 %v2906_v3  ;;  %6915 = vmatprep.subr.bf16.mxu0 %v8716_v10 }
 0x6cf   : > { %6907 = vmatprep.mubr.msk.bf16.mxu1 %vm8717_vm1, %v8716_v10  ;;  %6892 = vmatpush3.bf16.msra.mxu1 %v7451_v5 }
 0x6d0   : > { %6893 = vmatprep.subr.bf16.mxu1 %v8716_v10 }
 0x6d1   : > { %6916 = vmatpush3.bf16.msra.mxu0 %v7461_v16  ;;  %v7485_v16 = vld [vmem:[#allocation40 + $0x40] ss:$8 sps:$4 sm:$0xff]  }
 0x6d2   : > { %6917 = vmatprep.subr.bf16.mxu0 %v8716_v10 }
 0x6d3   : > { %6894 = vmatpush3.bf16.msra.mxu1 %v7452_v6  ;;  %v7474_v6 = vld [vmem:[#allocation40 + $0x14] ss:$8 sps:$4 sm:$0xff]  }
 0x6d4   : > { %6895 = vmatprep.subr.bf16.mxu1 %v8716_v10 }
 0x6d5   : > { %6918 = vmatpush3.bf16.msra.mxu0 %v7462_v54 }
 0x6d6   : > { %3436 = vmatprep.subr.bf16.mxu0 %v7471_v58 }
 0x6d7   : > { %6896 = vmatpush3.bf16.msra.mxu1 %v7453_v7  ;;  %v7472_v7 = vld [vmem:[#allocation40 + $0x10] ss:$8 sps:$4 sm:$0xff]  }
 0x6d8   : > { %6897 = vmatprep.subr.bf16.mxu1 %v8716_v10 }
 0x6db   : > { %6898 = vmatpush3.bf16.msra.mxu1 %v7454_v8  ;;  %v7477_v8 = vld [vmem:[#allocation40 + $0x64] ss:$8 sps:$4 sm:$0xff]  }
 0x6dc   : > { %6899 = vmatprep.subr.bf16.mxu1 %v8716_v10 }
 0x6df   : > { %6900 = vmatpush3.bf16.msra.mxu1 %v7455_v9  ;;  %v7475_v9 = vld [vmem:[#allocation40 + $0x60] ss:$8 sps:$4 sm:$0xff]  }
 0x6e0   : > { %6901 = vmatprep.subr.bf16.mxu1 %v8716_v10 }
 0x6e3   : > { %6902 = vmatpush3.bf16.msra.mxu1 %v7456_v11  ;;  %v7480_v11 = vld [vmem:[#allocation40 + $0x4] ss:$8 sps:$4 sm:$0xff]  }
 0x6e4   : > { %6903 = vmatprep.subr.bf16.mxu1 %v8716_v10 }
 0x6e7   : > { %6904 = vmatpush3.bf16.msra.mxu1 %v7457_v12  ;;  %v7478_v12 = vld [vmem:[#allocation40] ss:$8 sps:$4 sm:$0xff]  }
 0x6e8   : > { %6905 = vmatprep.subr.bf16.mxu1 %v8716_v10 }
 0x6eb   : > { %6906 = vmatpush3.bf16.msra.mxu1 %v7458_v13  ;;  %v7483_v13 = vld [vmem:[#allocation40 + $0x54] ss:$8 sps:$4 sm:$0xff]  }
 0x6ec   : > { %3519 = vmatprep.subr.bf16.mxu1 %v7465_v56 }
 0x768   : > { %v2881_v17 = vpop.f32.mrf.mxu0 }
 0x76a   : > { %v2883_v18 = vpop.f32.mrf.mxu0 }
 0x76c   : > { %v2885_v19 = vpop.f32.mrf.mxu0 }
 0x76e   : > { %v2760_v20 = vpop.f32.mrf.mxu1  ;;  %v2886_v21 = vpop.f32.mrf.mxu0 }
 0x76f   : > { %v2882_v22 = vadd.f32 %v2881_v17, %v2760_v20  ;;  %v7491_v17 = vld [vmem:[#allocation40 + $0xb4] ss:$8 sps:$4 sm:$0xff]  }
 0x770   : > { %v2762_v23 = vpop.f32.mrf.mxu1 }
 0x771   : > { %v2884_v32 = vadd.f32 %v2883_v18, %v2762_v23  ;;  %v6455_v18 = vld [vmem:[#allocation34] ss:$0 sm:$0xff] }
 0x772   : > { %v2764_v24 = vpop.f32.mrf.mxu1 }
 0x774   : > { %v2765_v25 = vpop.f32.mrf.mxu1 }
 0x788   : > { %v3150_v26 = vpop.f32.mrf.mxu0 }
 0x789   : > { %v3151_v49 = vadd.f32 %v6437_v47, %v3150_v26  ;;  %v7484_v26 = vld [vmem:[%s9627_s26 + $0x18] sm:$0xff]  }
 0x78a   : > { %v6889_v27 = vpop.f32.mrf.mxu0 }
 0x78c   : > { %v3153_v28 = vpop.f32.mrf.mxu0 }
 0x78e   : > { %v3022_v29 = vpop.f32.mrf.mxu1  ;;  %v6890_v31 = vpop.f32.mrf.mxu0 }
 0x78f   : > { %v3029_v45 = vadd.f32 %v3022_v29, %v2882_v22  ;;  %v7488_v29 = vld [vmem:[%s9627_s26 + $0x10] sm:$0xff]  }
 0x790   : > { %v3024_v35 = vpop.f32.mrf.mxu1 }
 0x791   : > { %v3030_v36 = vadd.f32 %v3024_v35, %v2884_v32  ;;  %v3043_v48 = vadd.f32 %v3036_v46, %v3029_v45  ;;  %v7489_v32 = vld [vmem:[#allocation40 + $0xb0] ss:$8 sps:$4 sm:$0xff]   ;;  %v7495_v35 = vld [vmem:[#allocation40 + $0xa4] ss:$8 sps:$4 sm:$0xff]  }
 0x792   : > { %v3026_v38 = vpop.f32.mrf.mxu1 }
 0x793   : > { %v3044_v39 = vadd.f32 %v3040_v33, %v3030_v36  ;;  %v3161_v50 = vadd.f32 %v3151_v49, %v3043_v48  ;;  %v7492_v36 = vld [vmem:[%s9627_s26 + $0x8] sm:$0xff]   ;;  %v7493_v38 = vld [vmem:[#allocation40 + $0xa0] ss:$8 sps:$4 sm:$0xff]  }
 0x794   : > { %v3027_v40 = vpop.f32.mrf.mxu1 }
 0x795   : > { %v3156_v41 = vsub.f32 0.0, %v3044_v39  ;;  %v7499_v39 = vld [vmem:[#allocation40 + $0x94] ss:$8 sps:$4 sm:$0xff]   ;;  %v7496_v40 = vld [vmem:[%s9627_s26] sm:$0xff]  }
 0x797   : > { %v3157_v42 = vmul.f32 1.442695, %v3156_v41  ;;  %v7497_v41 = vld [vmem:[#allocation40 + $0x90] ss:$8 sps:$4 sm:$0xff]  }
 0x799   : > { %7824 = vpow2.f32 %v3157_v42  ;;  %v7502_v42 = vld [vmem:[#allocation40 + $0x84] ss:$8 sps:$4 sm:$0xff]  }
 0x7a6   : > { %v7825_v43 = vpop.eup %7824 }
 0x7a7   : > { %v3159_v44 = vadd.f32 1.0, %v7825_v43 }
 0x7a9   : > { %7826 = vrcp.f32 %v3159_v44  ;;  %v7500_v44 = vld [vmem:[#allocation40 + $0x80] ss:$8 sps:$4 sm:$0xff]  }
 0x7b6   : > { %v7827_v51 = vpop.eup %7826 }
 0x7b7   : > { %v3162_v52 = vmul.f32 %v7827_v51, %v3161_v50 }
 0x7b9   : > { %v3163_v53 = vpack.c.bf16 %v3162_v52, %v3162_v52 }
 0x7bb   : > { %6908 = vmatmul.mubr.bf16.vlgmr.msra.gmra.mxu1 %v3163_v53 }
 0x7bc   : > { %3543 = vmatprep.mubr.bf16.mxu1 %v8715_v0  ;;  %3520 = vmatpush1.bf16.msra.mxu1 %v7463_v55 }
 0x7bd   : > { %3521 = vmatprep.subr.bf16.mxu1 %v7468_v57  ;;  %v3649_v57 = vld [vmem:[#allocation41] sm:$0x3] }
 0x7c0   : > { %3522 = vmatpush1.bf16.msra.mxu1 %v7466_v59 }
 0x7c1   : > { %3523 = vmatprep.subr.bf16.mxu1 %v7474_v6 }
 0x7c4   : > { %3524 = vmatpush1.bf16.msra.mxu1 %v7472_v7 }
 0x7c5   : > { %3525 = vmatprep.subr.bf16.mxu1 %v7480_v11  ;;  %v3654_v11 = vrot.slane %v3649_v57, %v9287_v62 }
 0x7c8   : > { %3526 = vmatpush1.bf16.msra.mxu1 %v7478_v12  ;;  %v6488_v12 = vld [vmem:[%s8942_s21] ss:$0 sm:$0xff] }
 0x7c9   : > { %6923 = vmatprep.subr.bf16.mxu1 %v8716_v10 }
 0x87b   : > { %v3269_v61 = vpop.f32.mrf.mxu1 }
 0x87c   : > { %v3270_v63 = vadd.f32 %v6446_v60, %v3269_v61  ;;  %v3658_v60 = vrot.slane %v3649_v57, %v9283_v37  ;;  %v7550_v57 = vld [vmem:[#allocation7 + $0x10c] ss:$16 sps:$4 sm:$0xff]  }
 0x87d   : > { %v6909_v1 = vpop.f32.mrf.mxu1 }
 0x87e   : > { %v3275_v3 = vpack.c.bf16 %v3270_v63, %v3270_v63 }
 0x87f   : > { %v3272_v4 = vpop.f32.mrf.mxu1 }
 0x880   : > { %6920 = vmatmul.mubr.msk.bf16.vlgmr.msra.gmra.mxu0 %vm2136_vm2, %v3275_v3 }
 0x881   : > { %v6910_v5 = vpop.f32.mrf.mxu1  ;;  %3437 = vmatpush1.bf16.msra.mxu0 %v7469_v2  ;;  %3460 = vmatprep.mubr.bf16.mxu0 %v8715_v0 }
 0x882   : > { %3438 = vmatprep.subr.bf16.mxu0 %v7477_v8 }
 0x885   : > { %3439 = vmatpush1.bf16.msra.mxu0 %v7475_v9 }
 0x886   : > { %3440 = vmatprep.subr.bf16.mxu0 %v7483_v13 }
 0x889   : > { %3441 = vmatpush1.bf16.msra.mxu0 %v7481_v14 }
 0x88a   : > { %3442 = vmatprep.subr.bf16.mxu0 %v7487_v15 }
 0x88d   : > { %3443 = vmatpush1.bf16.msra.mxu0 %v7485_v16 }
 0x88e   : > { %3614 = vmatprep.subr.bf16.mxu0 %v7491_v17 }
 0x940   : > { %v3352_v19 = vpop.f32.mrf.mxu0 }
 0x941   : > { %v3353_v20 = vadd.f32 %v6455_v18, %v3352_v19  ;;  %v7503_v19 = vld [vmem:[#allocation7 + $0x1e0] ss:$16 sps:$4 sm:$0xff]  }
 0x942   : > { %v6921_v21 = vpop.f32.mrf.mxu0 }
 0x943   : > { %v3358_v22 = vadd.f32 %v3353_v20, %v3270_v63  ;;  %v7505_v20 = vld [vmem:[#allocation7 + $0x1e4] ss:$16 sps:$4 sm:$0xff]   ;;  %v7506_v21 = vld [vmem:[#allocation7 + $0x1e8] ss:$16 sps:$4 sm:$0xff]  }
 0x944   : > { %v3355_v23 = vpop.f32.mrf.mxu0 }
 0x945   : > { %v3359_v24 = vmax.f32 %v3358_v22, 0.0  ;;  %v7508_v22 = vld [vmem:[#allocation7 + $0x1ec] ss:$16 sps:$4 sm:$0xff]   ;;  %v7511_v23 = vld [vmem:[#allocation7 + $0x1c4] ss:$16 sps:$4 sm:$0xff]  }
 0x946   : > { %v6922_v25 = vpop.f32.mrf.mxu0 }
 0x947   : > { %v3368_v27 = vpack.c.bf16 %v3359_v24, %v3359_v24  ;;  %v7514_v24 = vld [vmem:[#allocation7 + $0x1cc] ss:$16 sps:$4 sm:$0xff]   ;;  %v7509_v25 = vld [vmem:[#allocation7 + $0x1c0] ss:$16 sps:$4 sm:$0xff]  }
 0x949   : > { %v3381_v28 = vshll.u32 %v3368_v27, 16  ;;  %6478 = vmatmul.mubr.msk.bf16.vlgmr.msra.gmra.mxu1 %vm2136_vm2, %v3368_v27  ;;  %v3379_v30 = vshrl.u32 %v3368_v27, 16  ;;  %v3562_v43 = vrot.slane %v3368_v27, 1 }
 0x94a   : > { %6924 = vmatpush3.bf16.msra.mxu1 %v7484_v26  ;;  %6931 = vmatprep.mubr.msk.bf16.mxu1 %vm8717_vm1, %v8716_v10  ;;  %v7512_v26 = vld [vmem:[#allocation7 + $0x1c8] ss:$16 sps:$4 sm:$0xff]  }
 0x94b   : > { %v3383_v31 = vrot.slane %v3381_v28, 1  ;;  %6925 = vmatprep.subr.bf16.mxu1 %v8716_v10 }
 0x94d   : > { %v3384_v33 = vor.u32 %v3383_v31, %v3379_v30 }
 0x94e   : > { %6926 = vmatpush3.bf16.msra.mxu1 %v7488_v29 }
 0x94f   : > { %6469 = vmatmul.mubr.msk.bf16.vlgmr.msra.gmra.mxu0 %vm2136_vm2, %v3384_v33  ;;  %6927 = vmatprep.subr.bf16.mxu1 %v8716_v10  ;;  %v7520_v33 = vld [vmem:[#allocation7 + $0x1ac] ss:$16 sps:$4 sm:$0xff]  }
 0x950   : > { %3615 = vmatpush1.bf16.msra.mxu0 %v7489_v32  ;;  %3638 = vmatprep.mubr.bf16.mxu0 %v8715_v0  ;;  %v7517_v32 = vld [vmem:[#allocation7 + $0x1a4] ss:$16 sps:$4 sm:$0xff]  }
 0x951   : > { %3616 = vmatprep.subr.bf16.mxu0 %v7495_v35  ;;  %v7515_v35 = vld [vmem:[#allocation7 + $0x1a0] ss:$16 sps:$4 sm:$0xff]  }
 0x952   : > { %6928 = vmatpush3.bf16.msra.mxu1 %v7492_v36  ;;  %v7518_v36 = vld [vmem:[#allocation7 + $0x1a8] ss:$16 sps:$4 sm:$0xff]  }
 0x953   : > { %6929 = vmatprep.subr.bf16.mxu1 %v8716_v10 }
 0x954   : > { %3617 = vmatpush1.bf16.msra.mxu0 %v7493_v38  ;;  %v7523_v38 = vld [vmem:[#allocation7 + $0x184] ss:$16 sps:$4 sm:$0xff]  }
 0x955   : > { %3618 = vmatprep.subr.bf16.mxu0 %v7499_v39  ;;  %v7526_v39 = vld [vmem:[#allocation7 + $0x18c] ss:$16 sps:$4 sm:$0xff]  }
 0x956   : > { %6930 = vmatpush3.bf16.msra.mxu1 %v7496_v40  ;;  %v7521_v40 = vld [vmem:[#allocation7 + $0x180] ss:$16 sps:$4 sm:$0xff]  }
 0x957   : > { %4050 = vmatprep.subr.bf16.mxu1 %v7508_v22  ;;  %v7569_v22 = vld [vmem:[#allocation7 + $0x80] ss:$16 sps:$4 sm:$0xff]  }
 0x958   : > { %3619 = vmatpush1.bf16.msra.mxu0 %v7497_v41  ;;  %v7524_v41 = vld [vmem:[#allocation7 + $0x188] ss:$16 sps:$4 sm:$0xff]  }
 0x959   : > { %6932 = vmatmul.mubr.msk.bf16.vlgmr.msra.gmra.mxu1 %vm2136_vm2, %v3562_v43  ;;  %3620 = vmatprep.subr.bf16.mxu0 %v7502_v42  ;;  %v7529_v42 = vld [vmem:[#allocation7 + $0x164] ss:$16 sps:$4 sm:$0xff]  }
 0x95a   : > { %4082 = vmatprep.mubr.bf16.mxu1 %v8715_v0  ;;  %4051 = vmatpush1.bf16.msra.mxu1 %v7506_v21  ;;  %v7574_v21 = vld [vmem:[#allocation7 + $0x8c] ss:$16 sps:$4 sm:$0xff]  }
 0x95b   : > { %4052 = vmatprep.subr.bf16.mxu1 %v7514_v24  ;;  %v7577_v24 = vld [vmem:[#allocation7 + $0x64] ss:$16 sps:$4 sm:$0xff]  }
 0x95c   : > { %3621 = vmatpush1.bf16.msra.mxu0 %v7500_v44  ;;  %v7527_v44 = vld [vmem:[#allocation7 + $0x160] ss:$16 sps:$4 sm:$0xff]  }
 0x95d   : > { %4009 = vmatprep.subr.bf16.mxu0 %v7505_v20  ;;  %v7571_v20 = vld [vmem:[#allocation7 + $0x84] ss:$16 sps:$4 sm:$0xff]  }
 0x95e   : > { %4053 = vmatpush1.bf16.msra.mxu1 %v7512_v26  ;;  %v7575_v26 = vld [vmem:[#allocation7 + $0x60] ss:$16 sps:$4 sm:$0xff]  }
 0x95f   : > { %6487 = vmatmul.mubr.msk.bf16.vlgmr.msra.gmra.mxu0 %vm2136_vm2, %v3562_v43  ;;  %4054 = vmatprep.subr.bf16.mxu1 %v7520_v33  ;;  %v7532_v43 = vld [vmem:[#allocation7 + $0x16c] ss:$16 sps:$4 sm:$0xff]  }
 0x960   : > { %4041 = vmatprep.mubr.bf16.mxu0 %v8715_v0  ;;  %4010 = vmatpush1.bf16.msra.mxu0 %v7503_v19  ;;  %v7566_v19 = vld [vmem:[#allocation7 + $0xa8] ss:$16 sps:$4 sm:$0xff]   ;;  %v7592_v33 = vld [vmem:[#allocation7 + $0x2c] ss:$16 sps:$4 sm:$0xff]  }
 0x961   : > { %4011 = vmatprep.subr.bf16.mxu0 %v7511_v23  ;;  %v7572_v23 = vld [vmem:[#allocation7 + $0x88] ss:$16 sps:$4 sm:$0xff]  }
 0x962   : > { %4055 = vmatpush1.bf16.msra.mxu1 %v7518_v36  ;;  %v7590_v36 = vld [vmem:[#allocation7 + $0x28] ss:$16 sps:$4 sm:$0xff]  }
 0x963   : > { %4056 = vmatprep.subr.bf16.mxu1 %v7526_v39  ;;  %v7598_v39 = vld [vmem:[#allocation7 + $0xc] ss:$16 sps:$4 sm:$0xff]  }
 0x964   : > { %4012 = vmatpush1.bf16.msra.mxu0 %v7509_v25  ;;  %v7580_v25 = vld [vmem:[#allocation7 + $0x6c] ss:$16 sps:$4 sm:$0xff]  }
 0x965   : > { %4013 = vmatprep.subr.bf16.mxu0 %v7517_v32  ;;  %v7589_v32 = vld [vmem:[#allocation7 + $0x24] ss:$16 sps:$4 sm:$0xff]  }
 0x966   : > { %4057 = vmatpush1.bf16.msra.mxu1 %v7524_v41  ;;  %v7596_v41 = vld [vmem:[#allocation7 + $0x8] ss:$16 sps:$4 sm:$0xff]  }
 0x967   : > { %4058 = vmatprep.subr.bf16.mxu1 %v7532_v43  ;;  %v7604_v43 = vld [vmem:[#allocation7 + $0x2ec] ss:$16 sps:$4 sm:$0xff]  }
 0x968   : > { %4014 = vmatpush1.bf16.msra.mxu0 %v7515_v35  ;;  %v7587_v35 = vld [vmem:[#allocation7 + $0x20] ss:$16 sps:$4 sm:$0xff]  }
 0x969   : > { %4015 = vmatprep.subr.bf16.mxu0 %v7523_v38  ;;  %v7595_v38 = vld [vmem:[#allocation7 + $0x4] ss:$16 sps:$4 sm:$0xff]  }
 0x96c   : > { %4016 = vmatpush1.bf16.msra.mxu0 %v7521_v40  ;;  %v7593_v40 = vld [vmem:[#allocation7] ss:$16 sps:$4 sm:$0xff]  }
 0x96d   : > { %4017 = vmatprep.subr.bf16.mxu0 %v7529_v42  ;;  %v7601_v42 = vld [vmem:[#allocation7 + $0x2e4] ss:$16 sps:$4 sm:$0xff]  }
 0x970   : > { %4018 = vmatpush1.bf16.msra.mxu0 %v7527_v44  ;;  %v7599_v44 = vld [vmem:[#allocation7 + $0x2e0] ss:$16 sps:$4 sm:$0xff]  }
 0xa09   : > { %v3545_v45 = vpop.f32.mrf.mxu1 }
 0xa0b   : > { %v3547_v46 = vpop.f32.mrf.mxu1 }
 0xa0d   : > { %v3549_v47 = vpop.f32.mrf.mxu1 }
 0xa0e   : > { %v7538_v47 = vld [vmem:[#allocation7 + $0x14c] ss:$16 sps:$4 sm:$0xff]  }
 0xa0f   : > { %v3462_v48 = vpop.f32.mrf.mxu0  ;;  %v3550_v49 = vpop.f32.mrf.mxu1 }
 0xa10   : > { %v3546_v8 = vadd.f32 %v3545_v45, %v3462_v48  ;;  %v7530_v45 = vld [vmem:[#allocation7 + $0x168] ss:$16 sps:$4 sm:$0xff]   ;;  %v7533_v48 = vld [vmem:[#allocation7 + $0x140] ss:$16 sps:$4 sm:$0xff]  }
 0xa11   : > { %v3464_v50 = vpop.f32.mrf.mxu0  ;;  %4059 = vmatpush1.bf16.msra.mxu1 %v7530_v45  ;;  %v7536_v49 = vld [vmem:[#allocation7 + $0x148] ss:$16 sps:$4 sm:$0xff]  }
 0xa12   : > { %v3548_v59 = vadd.f32 %v3547_v46, %v3464_v50  ;;  %v7535_v46 = vld [vmem:[#allocation7 + $0x144] ss:$16 sps:$4 sm:$0xff]   ;;  %4060 = vmatprep.subr.bf16.mxu1 %v7538_v47  ;;  %v7602_v45 = vld [vmem:[#allocation7 + $0x2e8] ss:$16 sps:$4 sm:$0xff]   ;;  %v7610_v47 = vld [vmem:[#allocation7 + $0x2cc] ss:$16 sps:$4 sm:$0xff]  }
 0xa13   : > { %v3466_v51 = vpop.f32.mrf.mxu0  ;;  %4019 = vmatprep.subr.bf16.mxu0 %v7535_v46  ;;  %v7541_v50 = vld [vmem:[#allocation7 + $0x124] ss:$16 sps:$4 sm:$0xff]  }
 0xa14   : > { %4020 = vmatpush1.bf16.msra.mxu0 %v7533_v48  ;;  %v7544_v51 = vld [vmem:[#allocation7 + $0x12c] ss:$16 sps:$4 sm:$0xff]   ;;  %v7607_v46 = vld [vmem:[#allocation7 + $0x2c4] ss:$16 sps:$4 sm:$0xff]   ;;  %v7605_v48 = vld [vmem:[#allocation7 + $0x2c0] ss:$16 sps:$4 sm:$0xff]  }
 0xa15   : > { %v3467_v52 = vpop.f32.mrf.mxu0  ;;  %4061 = vmatpush1.bf16.msra.mxu1 %v7536_v49  ;;  %4021 = vmatprep.subr.bf16.mxu0 %v7541_v50  ;;  %v7608_v49 = vld [vmem:[#allocation7 + $0x2c8] ss:$16 sps:$4 sm:$0xff]   ;;  %v7613_v50 = vld [vmem:[#allocation7 + $0x2a4] ss:$16 sps:$4 sm:$0xff]  }
 0xa16   : > { %v7539_v52 = vld [vmem:[#allocation7 + $0x120] ss:$16 sps:$4 sm:$0xff]   ;;  %4062 = vmatprep.subr.bf16.mxu1 %v7544_v51  ;;  %v7616_v51 = vld [vmem:[#allocation7 + $0x2ac] ss:$16 sps:$4 sm:$0xff]  }
 0xa18   : > { %4022 = vmatpush1.bf16.msra.mxu0 %v7539_v52  ;;  %v7611_v52 = vld [vmem:[#allocation7 + $0x2a0] ss:$16 sps:$4 sm:$0xff]  }
 0xa19   : > { %v3736_v53 = vpop.f32.mrf.mxu1 }
 0xa1a   : > { %v3737_v14 = vadd.f32 %v6488_v12, %v3736_v53  ;;  %v7542_v53 = vld [vmem:[#allocation7 + $0x128] ss:$16 sps:$4 sm:$0xff]   ;;  %v7559_v12 = vld [vmem:[#allocation7 + $0xc4] ss:$16 sps:$4 sm:$0xff]  }
 0xa1b   : > { %v6933_v54 = vpop.f32.mrf.mxu1  ;;  %4063 = vmatpush1.bf16.msra.mxu1 %v7542_v53  ;;  %v7614_v53 = vld [vmem:[#allocation7 + $0x2a8] ss:$16 sps:$4 sm:$0xff]  }
 0xa1c   : > { %v7545_v54 = vld [vmem:[#allocation7 + $0x100] ss:$16 sps:$4 sm:$0xff]   ;;  %4064 = vmatprep.subr.bf16.mxu1 %v7550_v57  ;;  %v7620_v57 = vld [vmem:[#allocation7 + $0x288] ss:$16 sps:$4 sm:$0xff]  }
 0xa1d   : > { %v3739_v55 = vpop.f32.mrf.mxu1 }
 0xa1e   : > { %v7547_v55 = vld [vmem:[#allocation7 + $0x104] ss:$16 sps:$4 sm:$0xff]  }
 0xa1f   : > { %v3640_v56 = vpop.f32.mrf.mxu0  ;;  %v6934_v58 = vpop.f32.mrf.mxu1  ;;  %4023 = vmatprep.subr.bf16.mxu0 %v7547_v55  ;;  %v7622_v55 = vld [vmem:[#allocation7 + $0x28c] ss:$16 sps:$4 sm:$0xff]  }
 0xa20   : > { %v3647_v9 = vadd.f32 %v3640_v56, %v3546_v8  ;;  %v7548_v56 = vld [vmem:[#allocation7 + $0x108] ss:$16 sps:$4 sm:$0xff]   ;;  %v7553_v58 = vld [vmem:[#allocation7 + $0xe4] ss:$16 sps:$4 sm:$0xff]   ;;  %4024 = vmatpush1.bf16.msra.mxu0 %v7545_v54  ;;  %v7551_v8 = vld [vmem:[#allocation7 + $0xe0] ss:$16 sps:$4 sm:$0xff]  }
 0xa21   : > { %v3642_v61 = vpop.f32.mrf.mxu0  ;;  %4065 = vmatpush1.bf16.msra.mxu1 %v7548_v56  ;;  %4251 = vmatprep.subr.bf16.mxu0 %v7553_v58  ;;  %v7619_v54 = vld [vmem:[#allocation7 + $0x284] ss:$16 sps:$4 sm:$0xff]   ;;  %v7617_v56 = vld [vmem:[#allocation7 + $0x280] ss:$16 sps:$4 sm:$0xff]  }
 0xa22   : > { %v3648_v63 = vadd.f32 %v3642_v61, %v3548_v59  ;;  %v3661_v13 = vadd.f32 %v3654_v11, %v3647_v9  ;;  %v7556_v59 = vld [vmem:[#allocation7 + $0xec] ss:$16 sps:$4 sm:$0xff]   ;;  %v7554_v9 = vld [vmem:[#allocation7 + $0xe8] ss:$16 sps:$4 sm:$0xff]   ;;  %v7625_v58 = vld [vmem:[#allocation7 + $0x264] ss:$16 sps:$4 sm:$0xff]  }
 0xa23   : > { %v3644_v1 = vpop.f32.mrf.mxu0  ;;  %4292 = vmatprep.subr.bf16.mxu1 %v7556_v59  ;;  %v7628_v59 = vld [vmem:[#allocation7 + $0x26c] ss:$16 sps:$4 sm:$0xff]  }
 0xa24   : > { %v3662_v2 = vadd.f32 %v3658_v60, %v3648_v63  ;;  %v3747_v15 = vadd.f32 %v3737_v14, %v3661_v13  ;;  %v7562_v13 = vld [vmem:[#allocation7 + $0xcc] ss:$16 sps:$4 sm:$0xff]   ;;  %v7557_v14 = vld [vmem:[#allocation7 + $0xc0] ss:$16 sps:$4 sm:$0xff]  }
 0xa25   : > { %v3645_v3 = vpop.f32.mrf.mxu0 }
 0xa26   : > { %v3742_v4 = vsub.f32 0.0, %v3662_v2  ;;  %v6494_v2 = vld [vmem:[%s9628_s12] ss:$0 sm:$0xff]  ;;  %s5907_s12 = scalar_lea.sflag [#allocation4], %s1697_s11 }
 0xa28   : > { %v3743_v5 = vmul.f32 1.442695, %v3742_v4  ;;  %v6495_v4 = vld [vmem:[%s9629_s10] ss:$0 sm:$0xff]  ;;  %s8520_s10 = scalar_lea.vmem %s9470_s9, 16 }
 0xa29   : > { %p8521_p4 = scmp.ne.s32.totalorder %s9470_s9, %s8520_s10 }
 0xa2a   : > { %7828 = vpow2.f32 %v3743_v5 }
 0xa2b   : > { %p8522_p7 = pnand %p8521_p4, %p9637_p13 }
 0xa2d   : > { %p8523_p8 = pneg %p8522_p7 }
 0xa37   : > { %v7829_v6 = vpop.eup %7828 }
 0xa38   : > { %v3745_v7 = vadd.f32 1.0, %v7829_v6 }
 0xa3a   : > { %7830 = vrcp.f32 %v3745_v7 }
 0xa47   : > { %v7831_v16 = vpop.eup %7830 }
 0xa48   : > { %v3748_v17 = vmul.f32 %v7831_v16, %v3747_v15  ;;  %v7560_v15 = vld [vmem:[#allocation7 + $0xc8] ss:$16 sps:$4 sm:$0xff]   ;;  %v7565_v16 = vld [vmem:[#allocation7 + $0xa4] ss:$16 sps:$4 sm:$0xff]  }
 0xa4a   : > { %v3750_v18 = vsel %vm3749_vm3, %v3748_v17, 0.0 }
 0xa4b   : > { %3751 = vadd.xlane.f32.xlu1 %v3750_v18  ;;  %v7563_v18 = vld [vmem:[#allocation7 + $0xa0] ss:$16 sps:$4 sm:$0xff]  }
 0xad4   : > { %v3752_v27 = vpop.xlane.xlu1 %3751 }
 0xad5   : > { %v3753_v28 = vmul.f32 0.0078125, %v3752_v27  ;;  %v7578_v27 = vld [vmem:[#allocation7 + $0x68] ss:$16 sps:$4 sm:$0xff]  }
 0xad7   : > { %v3754_v29 = vsub.f32 %v3748_v17, %v3753_v28  ;;  %v7568_v17 = vld [vmem:[#allocation7 + $0xac] ss:$16 sps:$4 sm:$0xff]   ;;  %v7583_v28 = vld [vmem:[#allocation7 + $0x44] ss:$16 sps:$4 sm:$0xff]  }
 0xad9   : > { %v3755_v30 = vmul.f32 %v3754_v29, %v3754_v29 }
 0xadb   : > { %v3756_v31 = vsel %vm3749_vm3, %v3755_v30, 0.0  ;;  %v7581_v30 = vld [vmem:[#allocation7 + $0x40] ss:$16 sps:$4 sm:$0xff]  }
 0xadc   : > { %3757 = vadd.xlane.f32.xlu1 %v3756_v31  ;;  %v7584_v31 = vld [vmem:[#allocation7 + $0x48] ss:$16 sps:$4 sm:$0xff]  }
 0xb65   : > { %v3758_v60 = vpop.xlane.xlu1 %3757 }
 0xb66   : > { %v3759_v61 = vmul.f32 0.0078125, %v3758_v60  ;;  %v7623_v60 = vld [vmem:[#allocation7 + $0x260] ss:$16 sps:$4 sm:$0xff]  }
 0xb68   : > { %v3760_v63 = vadd.f32 1e-05, %v3759_v61  ;;  %v7626_v61 = vld [vmem:[#allocation7 + $0x268] ss:$16 sps:$4 sm:$0xff]  }
 0xb6a   : > { %7832 = vrsqrt.f32 %v3760_v63  ;;  %v7631_v63 = vld [vmem:[#allocation7 + $0x244] ss:$16 sps:$4 sm:$0xff]  }
 0xb77   : > { %v7833_v1 = vpop.eup %7832 }
 0xb78   : > { %v3762_v3 = vmul.f32 %v7833_v1, %v3754_v29  ;;  %v7586_v29 = vld [vmem:[#allocation7 + $0x4c] ss:$16 sps:$4 sm:$0xff]  }
 0xb79   : > { %v7634_v1 = vld [vmem:[#allocation7 + $0x24c] ss:$16 sps:$4 sm:$0xff]  }
 0xb7a   : > { %v3770_v5 = vmul.f32 %v6494_v2, %v3762_v3  ;;  %v7629_v2 = vld [vmem:[#allocation7 + $0x240] ss:$16 sps:$4 sm:$0xff]   ;;  %v7632_v3 = vld [vmem:[#allocation7 + $0x248] ss:$16 sps:$4 sm:$0xff]  }
 0xb7c   : > { %v3778_v6 = vadd.f32 %v6495_v4, %v3770_v5  ;;  %v7637_v4 = vld [vmem:[#allocation7 + $0x224] ss:$16 sps:$4 sm:$0xff]   ;;  %v7640_v5 = vld [vmem:[#allocation7 + $0x22c] ss:$16 sps:$4 sm:$0xff]  }
 0xb7e   : > { %v9385_v7 = vpack.c.bf16 %v3778_v6, %v3778_v6  ;;  %v7635_v6 = vld [vmem:[#allocation7 + $0x220] ss:$16 sps:$4 sm:$0xff]  }
 0xb80   : > { %v9388_v11 = vshrl.u32 %v9385_v7, 16 }
 0xb82   : > { %4042 = vmatmul.mubr.bf16.vlgmr.msra.gmra.mxu0 %v9388_v11  ;;  %4083 = vmatmul.mubr.bf16.vlgmr.msra.gmra.mxu1 %v9388_v11 }
 0xb83   : > { %4252 = vmatpush1.bf16.msra.mxu0 %v7551_v8  ;;  %4293 = vmatpush1.bf16.msra.mxu1 %v7554_v9  ;;  %v7638_v8 = vld [vmem:[#allocation7 + $0x228] ss:$16 sps:$4 sm:$0xff]   ;;  %v7643_v9 = vld [vmem:[#allocation7 + $0x204] ss:$16 sps:$4 sm:$0xff]  }
 0xb84   : > { %4253 = vmatprep.subr.bf16.mxu0 %v7559_v12  ;;  %4294 = vmatprep.subr.bf16.mxu1 %v7562_v13  ;;  %v7646_v12 = vld [vmem:[#allocation7 + $0x20c] ss:$16 sps:$4 sm:$0xff]   ;;  %v7641_v13 = vld [vmem:[#allocation7 + $0x200] ss:$16 sps:$4 sm:$0xff]  }
 0xb85   : > { %4283 = vmatprep.mubr.bf16.mxu0 %v8715_v0  ;;  %4324 = vmatprep.mubr.bf16.mxu1 %v8715_v0 }
 0xb87   : > { %4254 = vmatpush1.bf16.msra.mxu0 %v7557_v14  ;;  %4295 = vmatpush1.bf16.msra.mxu1 %v7560_v15  ;;  %v7644_v14 = vld [vmem:[#allocation7 + $0x208] ss:$16 sps:$4 sm:$0xff]   ;;  %v7649_v15 = vld [vmem:[#allocation7 + $0x3e4] ss:$16 sps:$4 sm:$0xff]  }
 0xb88   : > { %4255 = vmatprep.subr.bf16.mxu0 %v7565_v16  ;;  %4296 = vmatprep.subr.bf16.mxu1 %v7568_v17  ;;  %v7652_v16 = vld [vmem:[#allocation7 + $0x3ec] ss:$16 sps:$4 sm:$0xff]   ;;  %v7647_v17 = vld [vmem:[#allocation7 + $0x3e0] ss:$16 sps:$4 sm:$0xff]  }
 0xb8b   : > { %4256 = vmatpush1.bf16.msra.mxu0 %v7563_v18  ;;  %4297 = vmatpush1.bf16.msra.mxu1 %v7566_v19  ;;  %v7650_v18 = vld [vmem:[#allocation7 + $0x3e8] ss:$16 sps:$4 sm:$0xff]   ;;  %v4367_v19 = vrot.slane %v9385_v7, 1 }
 0xb8c   : > { %4257 = vmatprep.subr.bf16.mxu0 %v7571_v20  ;;  %4298 = vmatprep.subr.bf16.mxu1 %v7574_v21  ;;  %v7655_v20 = vld [vmem:[#allocation7 + $0x3c4] ss:$16 sps:$4 sm:$0xff]   ;;  %v7658_v21 = vld [vmem:[#allocation7 + $0x3cc] ss:$16 sps:$4 sm:$0xff]  }
 0xb8f   : > { %4258 = vmatpush1.bf16.msra.mxu0 %v7569_v22  ;;  %4299 = vmatpush1.bf16.msra.mxu1 %v7572_v23  ;;  %v7653_v22 = vld [vmem:[#allocation7 + $0x3c0] ss:$16 sps:$4 sm:$0xff]   ;;  %v7656_v23 = vld [vmem:[#allocation7 + $0x3c8] ss:$16 sps:$4 sm:$0xff]  }
 0xb90   : > { %4259 = vmatprep.subr.bf16.mxu0 %v7577_v24  ;;  %4300 = vmatprep.subr.bf16.mxu1 %v7580_v25  ;;  %v7661_v24 = vld [vmem:[#allocation7 + $0x3a4] ss:$16 sps:$4 sm:$0xff]   ;;  %v7664_v25 = vld [vmem:[#allocation7 + $0x3ac] ss:$16 sps:$4 sm:$0xff]  }
 0xb93   : > { %4260 = vmatpush1.bf16.msra.mxu0 %v7575_v26  ;;  %4301 = vmatpush1.bf16.msra.mxu1 %v7578_v27  ;;  %v7662_v26 = vld [vmem:[#allocation7 + $0x3a8] ss:$16 sps:$4 sm:$0xff]   ;;  %v7667_v27 = vld [vmem:[#allocation7 + $0x384] ss:$16 sps:$4 sm:$0xff]  }
 0xb94   : > { %4261 = vmatprep.subr.bf16.mxu0 %v7583_v28  ;;  %4302 = vmatprep.subr.bf16.mxu1 %v7586_v29  ;;  %v7670_v28 = vld [vmem:[#allocation7 + $0x38c] ss:$16 sps:$4 sm:$0xff]   ;;  %v7665_v29 = vld [vmem:[#allocation7 + $0x380] ss:$16 sps:$4 sm:$0xff]  }
 0xb97   : > { %4262 = vmatpush1.bf16.msra.mxu0 %v7581_v30  ;;  %4303 = vmatpush1.bf16.msra.mxu1 %v7584_v31  ;;  %v7668_v30 = vld [vmem:[#allocation7 + $0x388] ss:$16 sps:$4 sm:$0xff]   ;;  %v7673_v31 = vld [vmem:[#allocation7 + $0x364] ss:$16 sps:$4 sm:$0xff]  }
 0xb98   : > { %4263 = vmatprep.subr.bf16.mxu0 %v7589_v32  ;;  %4304 = vmatprep.subr.bf16.mxu1 %v7592_v33  ;;  %v7676_v32 = vld [vmem:[#allocation7 + $0x36c] ss:$16 sps:$4 sm:$0xff]   ;;  %v7671_v33 = vld [vmem:[#allocation7 + $0x360] ss:$16 sps:$4 sm:$0xff]  }
 0xb9b   : > { %4264 = vmatpush1.bf16.msra.mxu0 %v7587_v35  ;;  %4305 = vmatpush1.bf16.msra.mxu1 %v7590_v36  ;;  %v7674_v35 = vld [vmem:[#allocation7 + $0x368] ss:$16 sps:$4 sm:$0xff]   ;;  %v7679_v36 = vld [vmem:[#allocation7 + $0x344] ss:$16 sps:$4 sm:$0xff]  }
 0xb9c   : > { %4265 = vmatprep.subr.bf16.mxu0 %v7595_v38  ;;  %4306 = vmatprep.subr.bf16.mxu1 %v7598_v39  ;;  %v7682_v38 = vld [vmem:[#allocation7 + $0x34c] ss:$16 sps:$4 sm:$0xff]   ;;  %v7677_v39 = vld [vmem:[#allocation7 + $0x340] ss:$16 sps:$4 sm:$0xff]  }
 0xb9f   : > { %4266 = vmatpush1.bf16.msra.mxu0 %v7593_v40  ;;  %4307 = vmatpush1.bf16.msra.mxu1 %v7596_v41  ;;  %v7680_v40 = vld [vmem:[#allocation7 + $0x348] ss:$16 sps:$4 sm:$0xff]   ;;  %v7685_v41 = vld [vmem:[#allocation7 + $0x324] ss:$16 sps:$4 sm:$0xff]  }
 0xba0   : > { %4529 = vmatprep.subr.bf16.mxu0 %v7601_v42  ;;  %4570 = vmatprep.subr.bf16.mxu1 %v7604_v43  ;;  %v7688_v42 = vld [vmem:[#allocation7 + $0x32c] ss:$16 sps:$4 sm:$0xff]   ;;  %v7683_v43 = vld [vmem:[#allocation7 + $0x320] ss:$16 sps:$4 sm:$0xff]  }
 0xba2   : > { %4284 = vmatmul.mubr.bf16.vlgmr.msra.gmra.mxu0 %v9385_v7  ;;  %4325 = vmatmul.mubr.bf16.vlgmr.msra.gmra.mxu1 %v9385_v7  ;;  %v7659_v7 = vld [vmem:[#allocation7 + $0x3a0] ss:$16 sps:$4 sm:$0xff]  }
 0xba3   : > { %4530 = vmatpush1.bf16.msra.mxu0 %v7599_v44  ;;  %4571 = vmatpush1.bf16.msra.mxu1 %v7602_v45  ;;  %v7686_v44 = vld [vmem:[#allocation7 + $0x328] ss:$16 sps:$4 sm:$0xff]   ;;  %v7691_v45 = vld [vmem:[#allocation7 + $0x304] ss:$16 sps:$4 sm:$0xff]  }
 0xba4   : > { %4531 = vmatprep.subr.bf16.mxu0 %v7607_v46  ;;  %4572 = vmatprep.subr.bf16.mxu1 %v7610_v47  ;;  %v7694_v46 = vld [vmem:[#allocation7 + $0x30c] ss:$16 sps:$4 sm:$0xff]   ;;  %v7689_v47 = vld [vmem:[#allocation7 + $0x300] ss:$16 sps:$4 sm:$0xff]  }
 0xba5   : > { %4561 = vmatprep.mubr.bf16.mxu0 %v8715_v0  ;;  %4602 = vmatprep.mubr.bf16.mxu1 %v8715_v0 }
 0xba7   : > { %4532 = vmatpush1.bf16.msra.mxu0 %v7605_v48  ;;  %4573 = vmatpush1.bf16.msra.mxu1 %v7608_v49  ;;  %v7692_v48 = vld [vmem:[#allocation7 + $0x308] ss:$16 sps:$4 sm:$0xff]   ;;  %v7697_v49 = vld [vmem:[#allocation5 + $0x74] ss:$8 sps:$4 sm:$0xff]  }
 0xba8   : > { %4533 = vmatprep.subr.bf16.mxu0 %v7613_v50  ;;  %4574 = vmatprep.subr.bf16.mxu1 %v7616_v51  ;;  %v7695_v50 = vld [vmem:[#allocation5 + $0x70] ss:$8 sps:$4 sm:$0xff]   ;;  %v4648_v51 = vrot.slane %v9388_v11, 1 }
 0xba9   : > { %v7707_v11 = vld [vmem:[#allocation5 + $0x30] ss:$8 sps:$4 sm:$0xff]  }
 0xbab   : > { %4534 = vmatpush1.bf16.msra.mxu0 %v7611_v52  ;;  %4575 = vmatpush1.bf16.msra.mxu1 %v7614_v53  ;;  %v7700_v52 = vld [vmem:[#allocation5 + $0x64] ss:$8 sps:$4 sm:$0xff]   ;;  %v7698_v53 = vld [vmem:[#allocation5 + $0x60] ss:$8 sps:$4 sm:$0xff]  }
 0xbac   : > { %4535 = vmatprep.subr.bf16.mxu0 %v7619_v54  ;;  %4576 = vmatprep.subr.bf16.mxu1 %v7622_v55  ;;  %v7703_v54 = vld [vmem:[#allocation5 + $0x54] ss:$8 sps:$4 sm:$0xff]   ;;  %v7701_v55 = vld [vmem:[#allocation5 + $0x50] ss:$8 sps:$4 sm:$0xff]  }
 0xbaf   : > { %4536 = vmatpush1.bf16.msra.mxu0 %v7617_v56  ;;  %4577 = vmatpush1.bf16.msra.mxu1 %v7620_v57  ;;  %v7706_v56 = vld [vmem:[#allocation5 + $0x44] ss:$8 sps:$4 sm:$0xff]   ;;  %v7704_v57 = vld [vmem:[#allocation5 + $0x40] ss:$8 sps:$4 sm:$0xff]  }
 0xbb0   : > { %4537 = vmatprep.subr.bf16.mxu0 %v7625_v58  ;;  %4578 = vmatprep.subr.bf16.mxu1 %v7628_v59  ;;  %v7709_v58 = vld [vmem:[#allocation5 + $0x34] ss:$8 sps:$4 sm:$0xff]   ;;  %v7712_v59 = vld [vmem:[#allocation5 + $0x24] ss:$8 sps:$4 sm:$0xff]  }
 0xbb3   : > { %4538 = vmatpush1.bf16.msra.mxu0 %v7623_v60  ;;  %4579 = vmatpush1.bf16.msra.mxu1 %v7626_v61  ;;  %v7710_v60 = vld [vmem:[#allocation5 + $0x20] ss:$8 sps:$4 sm:$0xff]   ;;  %v7715_v61 = vld [vmem:[#allocation5 + $0x14] ss:$8 sps:$4 sm:$0xff]  }
 0xbb4   : > { %4539 = vmatprep.subr.bf16.mxu0 %v7631_v63  ;;  %4580 = vmatprep.subr.bf16.mxu1 %v7634_v1  ;;  %v7713_v63 = vld [vmem:[#allocation5 + $0x10] ss:$8 sps:$4 sm:$0xff]   ;;  %v7718_v1 = vld [vmem:[#allocation5 + $0x4] ss:$8 sps:$4 sm:$0xff]  }
 0xbb7   : > { %4540 = vmatpush1.bf16.msra.mxu0 %v7629_v2  ;;  %4581 = vmatpush1.bf16.msra.mxu1 %v7632_v3  ;;  %v7716_v2 = vld [vmem:[#allocation5] ss:$8 sps:$4 sm:$0xff]  }
 0xbb8   : > { %4541 = vmatprep.subr.bf16.mxu0 %v7637_v4  ;;  %4582 = vmatprep.subr.bf16.mxu1 %v7640_v5 }
 0xbbb   : > { %4542 = vmatpush1.bf16.msra.mxu0 %v7635_v6  ;;  %4583 = vmatpush1.bf16.msra.mxu1 %v7638_v8 }
 0xbbc   : > { %4543 = vmatprep.subr.bf16.mxu0 %v7643_v9  ;;  %4584 = vmatprep.subr.bf16.mxu1 %v7646_v12 }
 0xbbf   : > { %4544 = vmatpush1.bf16.msra.mxu0 %v7641_v13  ;;  %4585 = vmatpush1.bf16.msra.mxu1 %v7644_v14 }
 0xbc0   : > { %4810 = vmatprep.subr.bf16.mxu0 %v7649_v15  ;;  %4851 = vmatprep.subr.bf16.mxu1 %v7652_v16 }
 0xbc2   : > { %4562 = vmatmul.mubr.bf16.vlgmr.msra.gmra.mxu0 %v4367_v19  ;;  %4603 = vmatmul.mubr.bf16.vlgmr.msra.gmra.mxu1 %v4367_v19 }
 0xbc3   : > { %4811 = vmatpush1.bf16.msra.mxu0 %v7647_v17  ;;  %4852 = vmatpush1.bf16.msra.mxu1 %v7650_v18 }
 0xbc4   : > { %4812 = vmatprep.subr.bf16.mxu0 %v7655_v20  ;;  %4853 = vmatprep.subr.bf16.mxu1 %v7658_v21 }
 0xbc5   : > { %4842 = vmatprep.mubr.bf16.mxu0 %v8715_v0  ;;  %4883 = vmatprep.mubr.bf16.mxu1 %v8715_v0 }
 0xbc7   : > { %4813 = vmatpush1.bf16.msra.mxu0 %v7653_v22  ;;  %4854 = vmatpush1.bf16.msra.mxu1 %v7656_v23 }
 0xbc8   : > { %4814 = vmatprep.subr.bf16.mxu0 %v7661_v24  ;;  %4855 = vmatprep.subr.bf16.mxu1 %v7664_v25 }
 0xbcb   : > { %4815 = vmatpush1.bf16.msra.mxu0 %v7659_v7  ;;  %4856 = vmatpush1.bf16.msra.mxu1 %v7662_v26 }
 0xbcc   : > { %4816 = vmatprep.subr.bf16.mxu0 %v7667_v27  ;;  %4857 = vmatprep.subr.bf16.mxu1 %v7670_v28 }
 0xbcf   : > { %4817 = vmatpush1.bf16.msra.mxu0 %v7665_v29  ;;  %4858 = vmatpush1.bf16.msra.mxu1 %v7668_v30 }
 0xbd0   : > { %4818 = vmatprep.subr.bf16.mxu0 %v7673_v31  ;;  %4859 = vmatprep.subr.bf16.mxu1 %v7676_v32  ;;  %v4908_v32 = vsub.s32 2, %v9280_v34 }
 0xbd3   : > { %4819 = vmatpush1.bf16.msra.mxu0 %v7671_v33  ;;  %4860 = vmatpush1.bf16.msra.mxu1 %v7674_v35  ;;  %v4896_v33 = vld [vmem:[#allocation8] sm:$0xf] }
 0xbd4   : > { %4820 = vmatprep.subr.bf16.mxu0 %v7679_v36  ;;  %4861 = vmatprep.subr.bf16.mxu1 %v7682_v38  ;;  %v4912_v36 = vsub.s32 3, %v9280_v34 }
 0xbd7   : > { %4821 = vmatpush1.bf16.msra.mxu0 %v7677_v39  ;;  %4862 = vmatpush1.bf16.msra.mxu1 %v7680_v40  ;;  %v4909_v40 = vrot.slane %v4896_v33, %v4908_v32  ;;  %v7730_v32 = vld [vmem:[#allocation2 + $0x44] ss:$8 sps:$4 sm:$0xff]  }
 0xbd8   : > { %4822 = vmatprep.subr.bf16.mxu0 %v7685_v41  ;;  %4863 = vmatprep.subr.bf16.mxu1 %v7688_v42 }
 0xbdb   : > { %4823 = vmatpush1.bf16.msra.mxu0 %v7683_v43  ;;  %4864 = vmatpush1.bf16.msra.mxu1 %v7686_v44 }
 0xbdc   : > { %4824 = vmatprep.subr.bf16.mxu0 %v7691_v45  ;;  %4865 = vmatprep.subr.bf16.mxu1 %v7694_v46  ;;  %v4913_v45 = vrot.slane %v4896_v33, %v4912_v36  ;;  %v7731_v36 = vld [vmem:[#allocation2 + $0x30] ss:$8 sps:$4 sm:$0xff]  }
 0xbdf   : > { %4825 = vmatpush1.bf16.msra.mxu0 %v7689_v47  ;;  %4866 = vmatpush1.bf16.msra.mxu1 %v7692_v48 }
 0xbe0   : > { %5030 = vmatprep.subr.bf16.mxu0 %v7697_v49 }
 0xbe2   : > { %4843 = vmatmul.mubr.bf16.vlgmr.msra.gmra.mxu0 %v4648_v51  ;;  %4884 = vmatmul.mubr.bf16.vlgmr.msra.gmra.mxu1 %v4648_v51 }
 0xbe3   : > { %5031 = vmatpush1.bf16.msra.mxu0 %v7695_v50  ;;  %5062 = vmatprep.mubr.bf16.mxu0 %v8715_v0 }
 0xbe4   : > { %5032 = vmatprep.subr.bf16.mxu0 %v7700_v52 }
 0xbe7   : > { %5033 = vmatpush1.bf16.msra.mxu0 %v7698_v53 }
 0xbe8   : > { %5034 = vmatprep.subr.bf16.mxu0 %v7703_v54 }
 0xbeb   : > { %5035 = vmatpush1.bf16.msra.mxu0 %v7701_v55 }
 0xbec   : > { %5036 = vmatprep.subr.bf16.mxu0 %v7706_v56 }
 0xbef   : > { %5037 = vmatpush1.bf16.msra.mxu0 %v7704_v57 }
 0xbf0   : > { %5038 = vmatprep.subr.bf16.mxu0 %v7709_v58 }
 0xbf3   : > { %5039 = vmatpush1.bf16.msra.mxu0 %v7707_v11 }
 0xbf4   : > { %5040 = vmatprep.subr.bf16.mxu0 %v7712_v59 }
 0xbf7   : > { %5041 = vmatpush1.bf16.msra.mxu0 %v7710_v60 }
 0xbf8   : > { %5042 = vmatprep.subr.bf16.mxu0 %v7715_v61  ;;  %v4938_v61 = vld [vmem:[%s9630_s1] sm:$0x3]  ;;  %s8524_s1 = sshll.u32 %s8718_s15, 4  ;;  %s8525_s1 = int_to_ptr.vmem [resolvable:$false] %s8524_s1 }
 0xbf9   : > { %p8527_p12 = scmp.lt.s32.totalorder %s9470_s9, %s8525_s1 }
 0xbfb   : > { %5043 = vmatpush1.bf16.msra.mxu0 %v7713_v63  ;;  %v5023_v63 = vrot.slane %v4938_v61, %v9287_v62 }
 0xbfc   : > { %5044 = vmatprep.subr.bf16.mxu0 %v7718_v1 }
 0xbff   : > { %5045 = vmatpush1.bf16.msra.mxu0 %v7716_v2 }
 0xc02   : > { %5063 = vmatmul.mubr.bf16.vlgmr.msra.gmra.mxu0 %v4648_v51 }
 0xc42   : > { %v4043_v3 = vpop.f32.mrf.mxu0  ;;  %v4084_v4 = vpop.f32.mrf.mxu1 }
 0xc44   : > { %v4045_v5 = vpop.f32.mrf.mxu0  ;;  %v4086_v6 = vpop.f32.mrf.mxu1 }
 0xc46   : > { %v4047_v8 = vpop.f32.mrf.mxu0  ;;  %v4088_v9 = vpop.f32.mrf.mxu1 }
 0xc47   : > { %v4905_v8 = vrot.slane %v4896_v33, %v9283_v37 }
 0xc48   : > { %v4048_v12 = vpop.f32.mrf.mxu0  ;;  %v4089_v13 = vpop.f32.mrf.mxu1 }
 0xc62   : > { %v4285_v14 = vpop.f32.mrf.mxu0  ;;  %v4326_v15 = vpop.f32.mrf.mxu1 }
 0xc63   : > { %v4286_v16 = vadd.f32 %v4285_v14, %v4043_v3  ;;  %v4327_v35 = vadd.f32 %v4326_v15, %v4084_v4  ;;  %v4901_v3 = vrot.slane %v4896_v33, %v9287_v62  ;;  %v5027_v4 = vrot.slane %v4938_v61, %v9283_v37  ;;  %v7728_v33 = vld [vmem:[#allocation2 + $0x40] ss:$8 sps:$4 sm:$0xff]   ;;  %v7760_v61 = vld [vmem:[#allocation2 + $0xa4] ss:$8 sps:$4 sm:$0xff]  }
 0xc64   : > { %v4287_v17 = vpop.f32.mrf.mxu0  ;;  %v4328_v18 = vpop.f32.mrf.mxu1 }
 0xc65   : > { %v4288_v19 = vadd.f32 %v4287_v17, %v4045_v5  ;;  %v4329_v38 = vadd.f32 %v4328_v18, %v4086_v6 }
 0xc66   : > { %v4289_v20 = vpop.f32.mrf.mxu0  ;;  %v4330_v21 = vpop.f32.mrf.mxu1 }
 0xc68   : > { %v4290_v22 = vpop.f32.mrf.mxu0  ;;  %v4331_v23 = vpop.f32.mrf.mxu1 }
 0xc82   : > { %v4563_v24 = vpop.f32.mrf.mxu0  ;;  %v4604_v25 = vpop.f32.mrf.mxu1 }
 0xc83   : > { %v4611_v7 = vadd.f32 %v4563_v24, %v4286_v16  ;;  %v4613_v39 = vadd.f32 %v4604_v25, %v4327_v35  ;;  %v7733_v35 = vld [vmem:[#allocation2 + $0x34] ss:$8 sps:$4 sm:$0xff]  }
 0xc84   : > { %v4565_v26 = vpop.f32.mrf.mxu0  ;;  %v4606_v27 = vpop.f32.mrf.mxu1 }
 0xc85   : > { %v4614_v43 = vadd.f32 %v4606_v27, %v4329_v38  ;;  %v4612_v1 = vadd.f32 %v4565_v26, %v4288_v19  ;;  %v7719_v26 = vld [vmem:[#allocation2 + $0x70] ss:$8 sps:$4 sm:$0xff]   ;;  %v7721_v27 = vld [vmem:[#allocation2 + $0x74] ss:$8 sps:$4 sm:$0xff]   ;;  %v7736_v38 = vld [vmem:[#allocation2 + $0x24] ss:$8 sps:$4 sm:$0xff]  }
 0xc86   : > { %v4567_v28 = vpop.f32.mrf.mxu0  ;;  %v4608_v29 = vpop.f32.mrf.mxu1  ;;  %5341 = vmatprep.subr.bf16.mxu1 %v7721_v27 }
 0xc87   : > { %v7724_v28 = vld [vmem:[#allocation2 + $0x64] ss:$8 sps:$4 sm:$0xff]   ;;  %5342 = vmatpush1.bf16.msra.mxu1 %v7719_v26  ;;  %v7722_v29 = vld [vmem:[#allocation2 + $0x60] ss:$8 sps:$4 sm:$0xff]  }
 0xc88   : > { %v4568_v30 = vpop.f32.mrf.mxu0  ;;  %v4609_v31 = vpop.f32.mrf.mxu1  ;;  %5343 = vmatprep.subr.bf16.mxu1 %v7724_v28 }
 0xc89   : > { %v7727_v30 = vld [vmem:[#allocation2 + $0x54] ss:$8 sps:$4 sm:$0xff]   ;;  %v7725_v31 = vld [vmem:[#allocation2 + $0x50] ss:$8 sps:$4 sm:$0xff]  }
 0xc8b   : > { %5344 = vmatpush1.bf16.msra.mxu1 %v7722_v29 }
 0xc8c   : > { %5345 = vmatprep.subr.bf16.mxu1 %v7727_v30 }
 0xc8f   : > { %5346 = vmatpush1.bf16.msra.mxu1 %v7725_v31 }
 0xc90   : > { %5347 = vmatprep.subr.bf16.mxu1 %v7730_v32 }
 0xc93   : > { %5348 = vmatpush1.bf16.msra.mxu1 %v7728_v33 }
 0xc94   : > { %5349 = vmatprep.subr.bf16.mxu1 %v7733_v35 }
 0xc97   : > { %5350 = vmatpush1.bf16.msra.mxu1 %v7731_v36 }
 0xc98   : > { %5351 = vmatprep.subr.bf16.mxu1 %v7736_v38 }
 0xca2   : > { %v4844_v41 = vpop.f32.mrf.mxu0  ;;  %v4885_v42 = vpop.f32.mrf.mxu1 }
 0xca3   : > { %v4894_v44 = vadd.f32 %v4885_v42, %v4613_v39  ;;  %v4892_v2 = vadd.f32 %v4844_v41, %v4611_v7  ;;  %v7734_v39 = vld [vmem:[#allocation2 + $0x20] ss:$8 sps:$4 sm:$0xff]   ;;  %v7737_v41 = vld [vmem:[#allocation2 + $0x10] ss:$8 sps:$4 sm:$0xff]   ;;  %v7742_v42 = vld [vmem:[#allocation2 + $0x4] ss:$8 sps:$4 sm:$0xff]  }
 0xca4   : > { %v4846_v46 = vpop.f32.mrf.mxu0  ;;  %v4887_v47 = vpop.f32.mrf.mxu1  ;;  %5352 = vmatpush1.bf16.msra.mxu1 %v7734_v39  ;;  %v7779_v39 = vld [vmem:[%s9631_s5 + $0x48] sm:$0xff]  }
 0xca5   : > { %v4920_v48 = vadd.f32 %v4909_v40, %v4894_v44  ;;  %v4895_v49 = vadd.f32 %v4887_v47, %v4614_v43  ;;  %v4893_v6 = vadd.f32 %v4846_v46, %v4612_v1  ;;  %v4918_v13 = vadd.f32 %v4901_v3, %v4892_v2  ;;  %v7739_v40 = vld [vmem:[#allocation2 + $0x14] ss:$8 sps:$4 sm:$0xff]   ;;  %v7740_v43 = vld [vmem:[#allocation2] ss:$8 sps:$4 sm:$0xff]   ;;  %v7748_v46 = vld [vmem:[#allocation2 + $0xe4] ss:$8 sps:$4 sm:$0xff]  }
 0xca6   : > { %v4848_v50 = vpop.f32.mrf.mxu0  ;;  %v4889_v51 = vpop.f32.mrf.mxu1  ;;  %5353 = vmatprep.subr.bf16.mxu1 %v7739_v40  ;;  %v7745_v44 = vld [vmem:[#allocation2 + $0xf4] ss:$8 sps:$4 sm:$0xff]   ;;  %v7746_v47 = vld [vmem:[#allocation2 + $0xe0] ss:$8 sps:$4 sm:$0xff]   ;;  %v7761_v2 = vld [vmem:[#allocation2 + $0x90] ss:$8 sps:$4 sm:$0xff]  }
 0xca7   : > { %v5071_v52 = vsub.f32 0.0, %v4920_v48  ;;  %v4921_v53 = vadd.f32 %v4913_v45, %v4895_v49  ;;  %v4919_v16 = vadd.f32 %v4905_v8, %v4893_v6  ;;  %v7743_v45 = vld [vmem:[#allocation2 + $0xf0] ss:$8 sps:$4 sm:$0xff]   ;;  %v7763_v1 = vld [vmem:[#allocation2 + $0x94] ss:$8 sps:$4 sm:$0xff]   ;;  %v7780_v40 = vld [vmem:[%s9631_s5 + $0x8] sm:$0xff]  }
 0xca8   : > { %v4849_v54 = vpop.f32.mrf.mxu0  ;;  %v4890_v55 = vpop.f32.mrf.mxu1  ;;  %5354 = vmatpush1.bf16.msra.mxu1 %v7737_v41  ;;  %v7766_v3 = vld [vmem:[#allocation2 + $0x84] ss:$8 sps:$4 sm:$0xff]   ;;  %v7768_v6 = vld [vmem:[%s9631_s5 + $0x38] sm:$0xff]   ;;  %v7769_v8 = vld [vmem:[%s9631_s5 + $0x70] sm:$0xff]  }
 0xca9   : > { %v5073_v34 = vmul.f32 1.442695, %v5071_v52  ;;  %v5072_v56 = vsub.f32 0.0, %v4921_v53  ;;  %5355 = vmatprep.subr.bf16.mxu1 %v7742_v42  ;;  %v7781_v41 = vld [vmem:[%s9631_s5 + $0x40] sm:$0xff]  }
 0xcaa   : > { %v7782_v42 = vld [vmem:[%s9631_s5] sm:$0xff]  }
 0xcab   : > { %7834 = vpow2.f32 %v5073_v34  ;;  %v5075_v57 = vmul.f32 1.442695, %v5072_v56  ;;  %v7751_v56 = vld [vmem:[#allocation2 + $0xd4] ss:$8 sps:$4 sm:$0xff]  }
 0xcac   : > { %5356 = vmatpush1.bf16.msra.mxu1 %v7740_v43  ;;  %v5169_v43 = vld [vmem:[%s9634_s23] sm:$0x3] }
 0xcad   : > { %7836 = vpow2.f32 %v5075_v57  ;;  %5357 = vmatprep.subr.bf16.mxu1 %v7745_v44  ;;  %v7749_v57 = vld [vmem:[#allocation2 + $0xd0] ss:$8 sps:$4 sm:$0xff]   ;;  %v5334_v44 = vrot.slane %v5169_v43, %v9287_v62 }
 0xcb0   : > { %5358 = vmatpush2.bf16.msra.mxu1 %v7743_v45  ;;  %v5338_v45 = vrot.slane %v5169_v43, %v9283_v37 }
 0xcb1   : > { %5359 = vmatprep.subr.bf16.mxu1 %v7748_v46 }
 0xcb4   : > { %5360 = vmatpush2.bf16.msra.mxu1 %v7746_v47 }
 0xcb5   : > { %5361 = vmatprep.subr.bf16.mxu1 %v7751_v56  ;;  %v7785_v56 = vld [vmem:[#allocation10 + $0x4] ss:$8 sps:$4 sm:$0xff]  }
 0xcb8   : > { %v7835_v58 = vpop.eup %7834  ;;  %5362 = vmatpush2.bf16.msra.mxu1 %v7749_v57  ;;  %v7786_v57 = vld [vmem:[#allocation11 + $0x78] sm:$0xff]  }
 0xcb9   : > { %v5077_v11 = vadd.f32 1.0, %v7835_v58  ;;  %v7752_v58 = vld [vmem:[#allocation2 + $0xc0] ss:$8 sps:$4 sm:$0xff]  }
 0xcba   : > { %v7837_v59 = vpop.eup %7836 }
 0xcbb   : > { %7838 = vrcp.f32 %v5077_v11  ;;  %v5078_v60 = vadd.f32 1.0, %v7837_v59  ;;  %v7754_v11 = vld [vmem:[#allocation2 + $0xc4] ss:$8 sps:$4 sm:$0xff]   ;;  %v7757_v59 = vld [vmem:[#allocation2 + $0xb4] ss:$8 sps:$4 sm:$0xff]  }
 0xcbc   : > { %5363 = vmatprep.subr.bf16.mxu1 %v7754_v11  ;;  %v7788_v11 = vld [vmem:[#allocation11 + $0x70] sm:$0xff]  }
 0xcbd   : > { %7840 = vrcp.f32 %v5078_v60  ;;  %5364 = vmatpush2.bf16.msra.mxu1 %v7752_v58  ;;  %v7755_v60 = vld [vmem:[#allocation2 + $0xb0] ss:$8 sps:$4 sm:$0xff]  }
 0xcbe   : > { %5365 = vmatprep.subr.bf16.mxu1 %v7757_v59  ;;  %v7787_v58 = vld [vmem:[#allocation11 + $0x38] sm:$0xff]   ;;  %v7789_v59 = vld [vmem:[#allocation11 + $0x30] sm:$0xff]  }
 0xcc1   : > { %5366 = vmatpush2.bf16.msra.mxu1 %v7755_v60  ;;  %v7790_v60 = vld [vmem:[#allocation11 + $0x68] sm:$0xff]  }
 0xcc2   : > { %v5064_v5 = vpop.f32.mrf.mxu0  ;;  %5367 = vmatprep.subr.bf16.mxu1 %v7760_v61  ;;  %v7791_v61 = vld [vmem:[#allocation11 + $0x28] sm:$0xff]  }
 0xcc3   : > { %v5065_v9 = vadd.f32 %v5064_v5, %v5023_v63  ;;  %v7758_v63 = vld [vmem:[#allocation2 + $0xa0] ss:$8 sps:$4 sm:$0xff]   ;;  %v7767_v5 = vld [vmem:[%s9631_s5 + $0x78] sm:$0xff]  }
 0xcc4   : > { %v5066_v12 = vpop.f32.mrf.mxu0  ;;  %6768 = vmatprep.subr.bf16.mxu0 %v7767_v5 }
 0xcc5   : > { %v5067_v14 = vadd.f32 %v5066_v12, %v5027_v4  ;;  %v5081_v17 = vadd.f32 %v5065_v9, %v4918_v13  ;;  %5368 = vmatpush2.bf16.msra.mxu1 %v7758_v63  ;;  %v7764_v4 = vld [vmem:[#allocation2 + $0x80] ss:$8 sps:$4 sm:$0xff]   ;;  %6769 = vmatpush3.bf16.msra.mxu0 %v7768_v6  ;;  %v7770_v9 = vld [vmem:[%s9631_s5 + $0x30] sm:$0xff]  }
 0xcc6   : > { %v5068_v15 = vpop.f32.mrf.mxu0  ;;  %5369 = vmatprep.subr.bf16.mxu1 %v7763_v1  ;;  %6770 = vmatprep.subr.bf16.mxu0 %v7769_v8  ;;  %v7771_v12 = vld [vmem:[%s9631_s5 + $0x68] sm:$0xff]   ;;  %v7792_v63 = vld [vmem:[#allocation11 + $0x60] sm:$0xff]   ;;  %v5418_v6 = vld [vmem:[%s9635_s19] sm:$0x1] }
 0xcc7   : > { %v5082_v21 = vadd.f32 %v5067_v14, %v4919_v16  ;;  %v7772_v13 = vld [vmem:[%s9631_s5 + $0x28] sm:$0xff]   ;;  %v7773_v14 = vld [vmem:[%s9631_s5 + $0x60] sm:$0xff]   ;;  %v7775_v16 = vld [vmem:[%s9631_s5 + $0x58] sm:$0xff]  }
 0xcc8   : > { %v7839_v18 = vpop.eup %7838  ;;  %v5069_v20 = vpop.f32.mrf.mxu0  ;;  %v7774_v15 = vld [vmem:[%s9631_s5 + $0x20] sm:$0xff]   ;;  %v7794_v1 = vld [vmem:[#allocation11 + $0x58] sm:$0xff]  }
 0xcc9   : > { %v5083_v19 = vmul.f32 %v7839_v18, %v5081_v17  ;;  %5370 = vmatpush2.bf16.msra.mxu1 %v7761_v2  ;;  %6771 = vmatpush3.bf16.msra.mxu0 %v7770_v9  ;;  %v7776_v17 = vld [vmem:[%s9631_s5 + $0x18] sm:$0xff]   ;;  %v7777_v18 = vld [vmem:[%s9631_s5 + $0x50] sm:$0xff]  }
 0xcca   : > { %v7841_v22 = vpop.eup %7840  ;;  %5371 = vmatprep.subr.bf16.mxu1 %v7766_v3  ;;  %6772 = vmatprep.subr.bf16.mxu0 %v7771_v12  ;;  %v7778_v20 = vld [vmem:[%s9631_s5 + $0x10] sm:$0xff]   ;;  %v7796_v3 = vld [vmem:[#allocation11 + $0x50] sm:$0xff]  }
 0xccb   : > { %v5084_v23 = vmul.f32 %v7841_v22, %v5082_v21  ;;  %v5086_v24 = vsel %vm5085_vm4, %v5083_v19, 0.0  ;;  %v7795_v2 = vld [vmem:[#allocation11 + $0x18] sm:$0xff]  }
 0xccd   : > { %v5087_v25 = vsel %vm5085_vm4, %v5084_v23, 0.0  ;;  %5372 = vmatpush2.bf16.msra.mxu1 %v7764_v4  ;;  %6773 = vmatpush3.bf16.msra.mxu0 %v7772_v13  ;;  %v7797_v4 = vld [vmem:[#allocation11 + $0x10] sm:$0xff]  }
 0xcce   : > { %v5088_v7 = vadd.f32 %v5087_v25, %v5086_v24  ;;  %6774 = vmatprep.subr.bf16.mxu0 %v7773_v14  ;;  %v5121_v24 = vld [vmem:[%s9633_s2] sm:$0x3]  ;;  %6790 = vmatprep.subr.bf16.mxu1 %v7786_v57 }
 0xccf   : > { %v5126_v28 = vrot.slane %v5121_v24, %v9287_v62  ;;  %v5130_v29 = vrot.slane %v5121_v24, %v9283_v37  ;;  %v7806_v24 = vld [vmem:[#allocation13 + $0x18] sm:$0xff]  }
 0xcd0   : > { %5089 = vadd.xlane.f32.xlu0 %v5088_v7 }
 0xcd1   : > { %6775 = vmatpush3.bf16.msra.mxu0 %v7774_v15 }
 0xcd2   : > { %6776 = vmatprep.subr.bf16.mxu0 %v7775_v16  ;;  %v7798_v16 = vld [vmem:[#allocation11 + $0x48] sm:$0xff]  }
 0xcd5   : > { %6777 = vmatpush3.bf16.msra.mxu0 %v7776_v17  ;;  %v7799_v17 = vld [vmem:[#allocation11 + $0x8] sm:$0xff]  }
 0xcd6   : > { %6778 = vmatprep.subr.bf16.mxu0 %v7777_v18  ;;  %v7800_v18 = vld [vmem:[#allocation11 + $0x40] sm:$0xff]  }
 0xcd9   : > { %6779 = vmatpush3.bf16.msra.mxu0 %v7778_v20  ;;  %v7801_v20 = vld [vmem:[#allocation11] sm:$0xff]  }
 0xcda   : > { %6780 = vmatprep.subr.bf16.mxu0 %v7779_v39  ;;  %v7807_v39 = vld [vmem:[#allocation13 + $0x10] sm:$0xff]  }
 0xcdd   : > { %6781 = vmatpush3.bf16.msra.mxu0 %v7780_v40 }
 0xcde   : > { %6782 = vmatprep.subr.bf16.mxu0 %v7781_v41  ;;  %v5660_v41 = vld [vmem:[#allocation16] sm:$0x1] }
 0xce1   : > { %6783 = vmatpush3.bf16.msra.mxu0 %v7782_v42 }
 0xce2   : > { %5597 = vmatprep.subr.bf16.mxu0 %v7785_v56 }
 0xd59   : > { %v5090_v48 = vpop.xlane.xlu0 %5089 }
 0xd5a   : > { %v5092_v49 = vmul.f32 0.00390625, %v5090_v48 }
 0xd5c   : > { %v9412_v50 = vsub.f32 %v5083_v19, %v5092_v49  ;;  %v9414_v51 = vsub.f32 %v5084_v23, %v5092_v49  ;;  %v5107_v23 = vld [vmem:[%s9632_s7] sm:$0x3]  ;;  %s8526_s7 = scalar_lea.vmem %s8525_s1, 32 }
 0xd5d   : > { %v5112_v25 = vrot.slane %v5107_v23, %v9287_v62  ;;  %v5116_v7 = vrot.slane %v5107_v23, %v9283_v37  ;;  %v7805_v23 = vld [vmem:[#allocation13 + $0x20] sm:$0xff]   ;;  %p8528_p11 = scmp.lt.s32.totalorder %s8526_s7, %s8520_s10 }
 0xd5e   : > { %v5095_v52 = vmul.f32 %v9412_v50, %v9412_v50  ;;  %v5096_v53 = vmul.f32 %v9414_v51, %v9414_v51 }
 0xd5f   : > { %p8529_p0 = por %p8528_p11, %p8527_p12 }
 0xd60   : > { %v5097_v54 = vsel %vm5085_vm4, %v5095_v52, 0.0  ;;  %v5098_v55 = vsel %vm5085_vm4, %v5096_v53, 0.0 }
 0xd61   : > { %v5099_v34 = vadd.f32 %v5098_v55, %v5097_v54  ;;  %p8530_p6 = pnand %p8529_p0, %p8523_p8 }
 0xd63   : > { %5100 = vadd.xlane.f32.xlu1 %v5099_v34  ;;  %v7783_v34 = vld [vmem:[#allocation10] ss:$8 sps:$4 sm:$0xff]  }
 0xdec   : > { %v5101_v21 = vpop.xlane.xlu1 %5100 }
 0xded   : > { %v5102_v19 = vmul.f32 0.00390625, %v5101_v21  ;;  %v7802_v21 = vld [vmem:[#allocation13 + $0x38] sm:$0xff]  }
 0xdef   : > { %v5103_v22 = vadd.f32 1e-05, %v5102_v19  ;;  %v7803_v19 = vld [vmem:[#allocation13 + $0x30] sm:$0xff]  }
 0xdf1   : > { %7842 = vrsqrt.f32 %v5103_v22  ;;  %v7804_v22 = vld [vmem:[#allocation13 + $0x28] sm:$0xff]  }
 0xdfe   : > { %v7843_v26 = vpop.eup %7842 }
 0xdff   : > { %v5106_v27 = vmul.f32 %v7843_v26, %v9414_v51  ;;  %v5105_v30 = vmul.f32 %v7843_v26, %v9412_v50 }
 0xe01   : > { %v5120_v31 = vmul.f32 %v5116_v7, %v5106_v27  ;;  %v5119_v32 = vmul.f32 %v5112_v25, %v5105_v30  ;;  %v5558_v25 = vld [vmem:[#allocation14] sm:$0x3] }
 0xe02   : > { %v5573_v7 = vrot.slane %v5558_v25, %v9287_v62  ;;  %v5577_v26 = vrot.slane %v5558_v25, %v9283_v37  ;;  %v7808_v62 = vld [vmem:[#allocation13 + $0x8] sm:$0xff]   ;;  %v7809_v37 = vld [vmem:[#allocation13] sm:$0xff]  }
 0xe03   : > { %v5134_v33 = vadd.f32 %v5130_v29, %v5120_v31  ;;  %v5133_v35 = vadd.f32 %v5126_v28, %v5119_v32 }
 0xe05   : > { %v5136_v36 = vpack.c.bf16 %v5134_v33, %v5134_v33  ;;  %v5135_v38 = vpack.c.bf16 %v5133_v35, %v5133_v35 }
 0xe07   : > { %5373 = vmatprep.mubr.bf16.mxu1 %v5136_v36 }
 0xe08   : > { %5374 = vmatmul.mubr.bf16.vlgmr.msra.gmra.mxu1 %v5135_v38 }
 0xe09   : > { %6791 = vmatpush3.bf16.msra.mxu1 %v7787_v58 }
 0xe0a   : > { %6792 = vmatprep.subr.bf16.mxu1 %v7788_v11 }
 0xe0d   : > { %6793 = vmatpush3.bf16.msra.mxu1 %v7789_v59 }
 0xe0e   : > { %6794 = vmatprep.subr.bf16.mxu1 %v7790_v60 }
 0xe11   : > { %6795 = vmatpush3.bf16.msra.mxu1 %v7791_v61 }
 0xe12   : > { %6796 = vmatprep.subr.bf16.mxu1 %v7792_v63 }
 0xec8   : > { %v5375_v46 = vpop.f32.mrf.mxu1 }
 0xec9   : > { %v5376_v47 = vadd.f32 %v5375_v46, %v5334_v44 }
 0xeca   : > { %v5377_v48 = vpop.f32.mrf.mxu1 }
 0xecb   : > { %v5378_v49 = vadd.f32 %v5377_v48, %v5338_v45  ;;  %v5382_v50 = vmax.f32 %v5376_v47, 0.0 }
 0xecc   : > { %v5379_v51 = vpop.f32.mrf.mxu1 }
 0xecd   : > { %v5383_v52 = vmax.f32 %v5378_v49, 0.0  ;;  %v5384_v55 = vpack.c.bf16 %v5382_v50, %v5382_v50  ;;  %v5815_v49 = vld [vmem:[%s9636_s18] sm:$0x1] }
 0xece   : > { %v5380_v53 = vpop.f32.mrf.mxu1 }
 0xecf   : > { %v5385_v54 = vpack.c.bf16 %v5383_v52, %v5383_v52 }
 0xed1   : > { %5547 = vmatprep.mubr.bf16.mxu0 %v5385_v54 }
 0xed2   : > { %5548 = vmatmul.mubr.bf16.vlgmr.msra.gmra.mxu0 %v5384_v55 }
 0xed3   : > { %5615 = vmatprep.mubr.bf16.mxu0 %v8715_v0  ;;  %5598 = vmatpush1.bf16.msra.mxu0 %v7783_v34  ;;  %v7793_v0 = vld [vmem:[#allocation11 + $0x20] sm:$0xff]  }
 0xed4   : > { %6935 = vmatprep.subr.bf16.mxu0 %v8716_v10  ;;  %6797 = vmatpush3.bf16.msra.mxu1 %v7793_v0 }
 0xed5   : > { %6798 = vmatprep.subr.bf16.mxu1 %v7794_v1 }
 0xed8   : > { %6799 = vmatpush3.bf16.msra.mxu1 %v7795_v2 }
 0xed9   : > { %6800 = vmatprep.subr.bf16.mxu1 %v7796_v3 }
 0xedc   : > { %6801 = vmatpush3.bf16.msra.mxu1 %v7797_v4 }
 0xedd   : > { %6802 = vmatprep.subr.bf16.mxu1 %v7798_v16 }
 0xee0   : > { %6803 = vmatpush3.bf16.msra.mxu1 %v7799_v17 }
 0xee1   : > { %6804 = vmatprep.subr.bf16.mxu1 %v7800_v18 }
 0xee4   : > { %6805 = vmatpush3.bf16.msra.mxu1 %v7801_v20 }
 0xf92   : > { %v6784_v5 = vpop.f32.mrf.mxu0 }
 0xf94   : > { %v6785_v8 = vpop.f32.mrf.mxu0 }
 0xf95   : > { %v6786_v9 = vadd.f32 %v6785_v8, %v6784_v5 }
 0xf96   : > { %v6787_v12 = vpop.f32.mrf.mxu0 }
 0xf97   : > { %v5550_v13 = vadd.f32 %v6786_v9, %v5418_v6 }
 0xf98   : > { %v6788_v14 = vpop.f32.mrf.mxu0 }
 0xf99   : > { %v5555_v15 = vpack.c.bf16 %v5550_v13, %v5550_v13 }
 0xf9b   : > { %6690 = vmatmul.mubr.msk.bf16.vlgmr.msra.gmra.mxu0 %vm1730_vm0, %v5555_v15 }
 0xf9c   : > { %6951 = vmatprep.mubr.msk.bf16.mxu0 %vm8717_vm1, %v8716_v10  ;;  %6936 = vmatpush3.bf16.msra.mxu0 %v7802_v21 }
 0xf9d   : > { %6937 = vmatprep.subr.bf16.mxu0 %v8716_v10 }
 0xfa0   : > { %6938 = vmatpush3.bf16.msra.mxu0 %v7803_v19 }
 0xfa1   : > { %6939 = vmatprep.subr.bf16.mxu0 %v8716_v10 }
 0xfa4   : > { %6940 = vmatpush3.bf16.msra.mxu0 %v7804_v22 }
 0xfa5   : > { %6941 = vmatprep.subr.bf16.mxu0 %v8716_v10 }
 0xfa8   : > { %6942 = vmatpush3.bf16.msra.mxu0 %v7805_v23 }
 0xfa9   : > { %6943 = vmatprep.subr.bf16.mxu0 %v8716_v10 }
 0xfac   : > { %6944 = vmatpush3.bf16.msra.mxu0 %v7806_v24 }
 0xfad   : > { %6945 = vmatprep.subr.bf16.mxu0 %v8716_v10 }
 0xfb0   : > { %6946 = vmatpush3.bf16.msra.mxu0 %v7807_v39 }
 0xfb1   : > { %6947 = vmatprep.subr.bf16.mxu0 %v8716_v10 }
 0xfb4   : > { %6948 = vmatpush3.bf16.msra.mxu0 %v7808_v62 }
 0xfb5   : > { %6949 = vmatprep.subr.bf16.mxu0 %v8716_v10 }
 0xfb8   : > { %6950 = vmatpush3.bf16.msra.mxu0 %v7809_v37 }
0x105b   : > { %v5617_v27 = vpop.f32.mrf.mxu0 }
0x105c   : > { %v5618_v28 = vadd.f32 %v5617_v27, %v5573_v7 }
0x105d   : > { %v5619_v29 = vpop.f32.mrf.mxu0 }
0x105e   : > { %v5620_v30 = vadd.f32 %v5619_v29, %v5577_v26  ;;  %v5624_v31 = vmax.f32 %v5618_v28, 0.0 }
0x105f   : > { %v5621_v32 = vpop.f32.mrf.mxu0 }
0x1060   : > { %v5625_v33 = vmax.f32 %v5620_v30, 0.0  ;;  %v5626_v38 = vpack.c.bf16 %v5624_v31, %v5624_v31 }
0x1061   : > { %v5622_v35 = vpop.f32.mrf.mxu0 }
0x1062   : > { %v5627_v36 = vpack.c.bf16 %v5625_v33, %v5625_v33 }
0x1064   : > { %5789 = vmatprep.mubr.bf16.mxu1 %v5627_v36 }
0x1065   : > { %5790 = vmatmul.mubr.bf16.vlgmr.msra.gmra.mxu1 %v5626_v38 }
0x1125   : > { %v6806_v40 = vpop.f32.mrf.mxu1 }
0x1127   : > { %v6807_v42 = vpop.f32.mrf.mxu1 }
0x1128   : > { %v6808_v43 = vadd.f32 %v6807_v42, %v6806_v40 }
0x1129   : > { %v6809_v44 = vpop.f32.mrf.mxu1 }
0x112a   : > { %v5792_v45 = vadd.f32 %v6808_v43, %v5660_v41 }
0x112b   : > { %v6810_v46 = vpop.f32.mrf.mxu1 }
0x112c   : > { %v5797_v47 = vmax.f32 %v5792_v45, 0.0 }
0x112e   : > { %v5798_v48 = vpack.c.bf16 %v5797_v47, %v5797_v47 }
0x1130   : > { %6952 = vmatmul.mubr.bf16.vlgmr.msra.gmra.mxu0 %v5798_v48 }
0x11f0   : > { %v5898_v10 = vpop.f32.mrf.mxu0 }
0x11f1   : > { %v5899_v50 = vadd.f32 %v5898_v10, %v5815_v49 }
0x11f2   : > { %v6953_v51 = vpop.f32.mrf.mxu0 }
0x11f3   : > { %5905 = vst.msk [vmem:[%s1698_s3] sm:$0x1] %vm5904_vm5, %v5899_v50 }
0x11f4   : > { %v5901_v52 = vpop.f32.mrf.mxu0 }
0x11f5   : > { %8533 = shalt.err (!%p8530_p6)
}
0x11f6   : > { %s8534_s2 = scalar_lea.hbm %s9468_s22, 16  ;;  %s8538_s23 = scalar_lea.hbm %s8952_s6, 32 }
0x11f7   : > { %p8535_p5 = scmp.ne.s32.totalorder %s9468_s22, %s8534_s2  ;;  %p8539_p1 = scmp.lt.s32.totalorder %s9468_s22, %s8952_s6 }
0x11f8   : > { %p8540_p3 = scmp.lt.s32.totalorder %s8538_s23, %s8534_s2 }
0x11f9   : > { %p8536_p9 = pnand %p8535_p5, %p9637_p13 }
0x11fa   : > { %p8541_p2 = por %p8540_p3, %p8539_p1 }
0x11fb   : > { %p8537_p10 = pneg %p8536_p9 }
0x11fd   : > { %p8542_p4 = pnand %p8541_p2, %p8537_p10 }
0x11ff   : > { %8545 = shalt.err (!%p8542_p4)
}
0x1200   : > { %7059 = dma.vmem_to_hbm [thread:$0]  (%p9637_p13), %s9470_s9, 16, %s9468_s22, %s5907_s12   ;;  %v6954_v53 = vpop.f32.mrf.mxu0 }
0x1201 PF: > { %s9638_s19 = sld [smem:[#allocation95_spill]] }
0x1202   : > { %s9639_s18 = sld [smem:[#allocation93_spill]] }
0x1203   : > { %s9640_s11 = sld [smem:[#allocation98_spill]] }
0x1207   : > { %p7196_p7 = scmp.ge.s32.totalorder %s9638_s19, 2 }
0x1208   : > { %s5931_s16 = sand.u32 1, %s9639_s18  }
0x1209   : > { %p9641_p8 = scmp.ne.s32.totalorder %s9640_s11, 0  ;;  %s5932_s3 = scalar_lea.sflag [#allocation4], %s5931_s16 }
0x120b   : > { %p7141_p12 = pnand %p7196_p7, %p9641_p8 }
0x120d   : > { %p7142_p11 = pneg %p7141_p12 }
0x120f   : > { %8619 = dma.done.wait (%p7142_p11), %s5932_s3, 16  }
0x1210   : > { %8621 = vsyncadd (%p7142_p11), %s5932_s3, 4294967280  ;;  %s9642_s11 = sld [smem:[#allocation96_spill]]  ;;  %s9645_s7 = smov %s8628_s0 }
0x1211   : > { %s9643_s10 = sld [smem:[#allocation94_spill]] }
0x1212   : > { %s9644_s28 = sld [smem:[#allocation97_spill]] }
0x1216   : > { %p115_p0 = scmp.ge.s32.totalorder %s9642_s11, 4  }
0x1217   : > { %s9646_s0 = smov %s9643_s10 }
0x1218   : > { %s9647_s10 = smov %s9644_s28  ;;  %117 = sbr.rel (!%p115_p0) target bundleno = 100 (0x64), region = 396 }
0x121d   :  { %5936 = vsyncpa [#allocation3], 1 }
0x121e   :  { %5938 = vsyncpa [#allocation3 + $0x1], 1 }
0x121f   :  { %5939 = vsyncpa [#allocation6], 1 }
0x1220   :  { %5940 = vsyncpa [#allocation9], 1 }
0x1221   :  { %5941 = vsyncpa [#allocation12], 1 }
0x1222   :  { %5942 = vsyncpa [#allocation15], 1 }
0x1223   :  { %5943 = vsyncpa [#allocation18], 1 }
0x1224   :  { %5944 = vsyncpa [#allocation21], 1 }
0x1225   :  { %5945 = vsyncpa [#allocation24], 1 }
0x1226   :  { %5946 = vsyncpa [#allocation27], 1 }
0x1227   :  { %5947 = vsyncpa [#allocation30], 1 }
0x1228   :  { %5948 = vsyncpa [#allocation33], 1 }
0x1229   :  { %5949 = vsyncpa [#allocation36], 1 }
0x122a   :  { %5950 = vsyncpa [#allocation39], 1 }
0x122b   :  { %5951 = vsyncpa [#allocation42], 1 }
0x122c   :  { %5952 = vsyncpa [#allocation4], 1 }
0x122d   :  { %5954 = vsyncpa [#allocation4 + $0x1], 1 }

</bundles_post_ra>
